<compile_context>
chip_gen: v6e
topology: v6e:2x2x1
jax: 0.10.0
libtpu: 0.0.40
codegen_flags: <defaults>
</compile_context>

<pallas_src>
import jax
import jax.numpy as jnp
from jax.experimental import pallas as pl
from jax.experimental.pallas import tpu as pltpu


def _round_up(v, m):
    return ((v + m - 1) // m) * m


# --------------------------------------------------------------------------
# Kernel: one tile of TILE_E edges, activations feature-major (band, TILE_E)
# --------------------------------------------------------------------------
def scn_kernel(src_ref, dst_ref, c_ref, f_ref, w_ref, b_ref, wd_ref, out_ref):
    f32 = jnp.float32
    te = src_ref.shape[1]          # TILE_E
    n = c_ref.shape[1]             # padded node count
    d = w_ref.shape[0]             # 2 * band
    band = d // 2

    # ---- one-hot columns for [src | dst], built once, shared by both gathers
    ids = jnp.concatenate([src_ref[...], dst_ref[...]], axis=1)        # (1, 2te)
    iota = jax.lax.broadcasted_iota(jnp.int32, (n, 2 * te), 0)
    onehot = iota == ids                                               # bool (n, 2te)
    oh_f = onehot.astype(f32)

    # ---- feature gather: [xi | xj] in one MXU push (f32, tiny M=band) ----
    feat = jnp.dot(f_ref[...], oh_f, preferred_element_type=f32)       # (band, 2te)
    xij = feat[:, :te] * feat[:, te:]                                  # (band, te)

    # ---- common-neighbor counts from precomputed C = A @ A^T (bf16, exact)
    cj = jnp.dot(c_ref[...], onehot[:, te:].astype(c_ref.dtype),
                 preferred_element_type=f32)                           # (n, te) = C[:, dst]
    xcn = jnp.sum(oh_f[:, :te] * cj, axis=0, keepdims=True)            # (1, te)

    # ---- packed biases ----------------------------------------------------
    wc1 = b_ref[:band, 0:1]
    bc1 = b_ref[:band, 1:2]
    bA, bB, bC = b_ref[:, 2:3], b_ref[:, 3:4], b_ref[:, 4:5]

    def W(k):                                                          # (d, d) slice
        return w_ref[:, k * d:(k + 1) * d]

    # band-packed MLP: [xcnlin branch ; xijlin branch] share every matmul
    h1 = jnp.maximum(wc1 * xcn + bc1, 0.0)                             # (band, te)
    act0 = jnp.concatenate([h1, xij], axis=0)                          # (d, te)
    act1 = jnp.maximum(jnp.dot(W(0), act0, preferred_element_type=f32) + bA, 0.0)
    act2 = jnp.dot(W(1), act1, preferred_element_type=f32) + bB        # [hc ; gij]
    act3 = jnp.maximum(jnp.dot(W(2), act2, preferred_element_type=f32) + bC, 0.0)

    wd = wd_ref[...]                                                   # (out_pad, d)
    bd = b_ref[:wd.shape[0], 5:6]                                      # (out_pad, 1)
    out_ref[...] = jnp.dot(wd, act3, preferred_element_type=f32) + bd


# --------------------------------------------------------------------------
# Wrapper: packing / padding glue + pallas_call
# --------------------------------------------------------------------------
def scn_link_predictor(x, adj_dense, tar_ei, params, *, tile_e=1024):
    f32 = jnp.float32
    assert tile_e % 128 == 0
    n_nodes, in_ch = x.shape
    hidden = params["wc2"].shape[0]
    out_ch = params["wl2"].shape[1]
    E = tar_ei.shape[1]

    band = max(_round_up(hidden, 8), _round_up(in_ch, 8))
    d = 2 * band
    out_pad = _round_up(out_ch, 8)
    n_pad = _round_up(n_nodes, 128)        # keep the gather contraction dim MXU-aligned
    beta = params["beta"][0, 0]

    # ---- resident common-neighbor table C = A @ A^T (counts) --------------
    a = jnp.pad(adj_dense.astype(f32),
                ((0, n_pad - n_nodes), (0, n_pad - n_nodes)))
    C = a @ a.T
    c_dtype = jnp.bfloat16 if n_nodes <= 256 else f32   # bf16 exact for counts <= 256
    cpack = C.astype(c_dtype)

    # ---- resident feature table x^T, zero-padded to one band --------------
    fpack = jnp.zeros((band, n_pad), f32).at[:in_ch, :n_nodes].set(x.T.astype(f32))

    # ---- band-block-diagonal weight packs (beta folded into stage B) ------
    def blockdiag(blocks):
        W = jnp.zeros((d, d), f32)
        for r, c, m in blocks:
            W = W.at[r:r + m.shape[0], c:c + m.shape[1]].set(m.astype(f32))
        return W

    W_A = blockdiag([(0, 0, params["wc2"].T), (band, band, params["wi1"].T)])
    W_B = blockdiag([(0, 0, (params["wc3"] * beta).T), (band, band, params["wi2"].T)])
    W_C = blockdiag([(0, 0, params["wl1"].T), (0, band, params["wl1"].T)])  # hc + gij
    wpack = jnp.concatenate([W_A, W_B, W_C], axis=1)                   # (d, 3d)
    wdt = jnp.zeros((out_pad, d), f32).at[:out_ch, :hidden].set(params["wl2"].T)

    def col(v, rows):
        v = jnp.asarray(v, f32).reshape(-1, 1)
        return jnp.pad(v, ((0, rows - v.shape[0]), (0, 0)))

    bpack = jnp.concatenate([
        col(params["wc1"], d),                                         # col 0
        col(params["bc1"], d),                                         # col 1
        jnp.concatenate([col(params["bc2"], band),
                         col(params["bi1"], band)], axis=0),           # col 2
        jnp.concatenate([col(params["bc3"] * beta, band),
                         col(params["bi2"], band)], axis=0),           # col 3
        jnp.concatenate([col(params["bl1"], band),
                         jnp.zeros((band, 1), f32)], axis=0),          # col 4
        col(params["bl2"], d),                                         # col 5
    ], axis=1)                                                         # (d, 6)

    # ---- lane-dense edge indices, padded to a multiple of tile_e ----------
    e_pad = pl.cdiv(E, tile_e) * tile_e
    src = jnp.pad(tar_ei[0].astype(jnp.int32), (0, e_pad - E)).reshape(1, e_pad)
    dst = jnp.pad(tar_ei[1].astype(jnp.int32), (0, e_pad - E)).reshape(1, e_pad)

    def resident(arr):   # whole-array block, constant index_map -> fetched once
        return pl.BlockSpec(arr.shape, lambda i: (0, 0))

    out = pl.pallas_call(
        scn_kernel,
        out_shape=jax.ShapeDtypeStruct((out_pad, e_pad), f32),
        grid_spec=pltpu.PrefetchScalarGridSpec(
            num_scalar_prefetch=0,
            grid=(e_pad // tile_e,),
            in_specs=[
                pl.BlockSpec((1, tile_e), lambda i: (0, i)),           # src ids
                pl.BlockSpec((1, tile_e), lambda i: (0, i)),           # dst ids
                resident(cpack),
                resident(fpack),
                resident(wpack),
                resident(bpack),
                resident(wdt),
            ],
            out_specs=pl.BlockSpec((out_pad, tile_e), lambda i: (0, i)),
        ),
        compiler_params=pltpu.CompilerParams(
            dimension_semantics=("parallel",)),
    )(src, dst, cpack, fpack, wpack, bpack, wdt)

    return out[:out_ch, :E].T                                          # (E, out_ch)


# --------------------------------------------------------------------------
# Pure-JAX reference (same forward, edge-major) for correctness checking
# --------------------------------------------------------------------------
def reference(x, adj_dense, tar_ei, p):
    ai = adj_dense[tar_ei[0]]
    aj = adj_dense[tar_ei[1]]
    xcn = jnp.sum(ai * aj, axis=-1, keepdims=True)
    xij_in = x[tar_ei[0]] * x[tar_ei[1]]

    h = jnp.maximum(xcn @ p["wc1"] + p["bc1"], 0.0)
    h = jnp.maximum(h @ p["wc2"] + p["bc2"], 0.0)
    hc = h @ p["wc3"] + p["bc3"]

    g = jnp.maximum(xij_in @ p["wi1"] + p["bi1"], 0.0)
    gij = g @ p["wi2"] + p["bi2"]

    z = hc * p["beta"][0, 0] + gij
    z = jnp.maximum(z @ p["wl1"] + p["bl1"], 0.0)
    return z @ p["wl2"] + p["bl2"]


def init_params(key, in_channels, hidden, out_channels, beta=1.0):
    ks = jax.random.split(key, 7)
    f32 = jnp.float32

    def w(k, shape):
        return (0.1 * jax.random.normal(k, shape)).astype(f32)

    return {
        # xcnlin: Linear(1,H), Linear(H,H), Linear(H,H)
        "wc1": w(ks[0], (1, hidden)), "bc1": jnp.zeros((1, hidden), f32),
        "wc2": w(ks[1], (hidden, hidden)), "bc2": jnp.full((1, hidden), 0.01, f32),
        "wc3": w(ks[2], (hidden, hidden)), "bc3": jnp.zeros((1, hidden), f32),
        # xijlin: Linear(in,H), Linear(H,H)
        "wi1": w(ks[3], (in_channels, hidden)), "bi1": jnp.full((1, hidden), 0.01, f32),
        "wi2": w(ks[4], (hidden, hidden)), "bi2": jnp.zeros((1, hidden), f32),
        # lin: Linear(H,H), Linear(H,out)
        "wl1": w(ks[5], (hidden, hidden)), "bl1": jnp.full((1, hidden), 0.01, f32),
        "wl2": w(ks[6], (hidden, out_channels)), "bl2": jnp.zeros((1, out_channels), f32),
        # beta parameter (scalar, stored as (1,1))
        "beta": jnp.full((1, 1), beta, f32),
    }


if __name__ == "__main__":
    key = jax.random.PRNGKey(0)
    k_x, k_adj, k_src, k_dst, k_w = jax.random.split(key, 5)

    N = 128          # number of nodes
    IN_CH = 16       # in_channels
    HID = 32         # hidden_channels
    OUT_CH = 1       # out_channels
    E = 2048         # number of target edges
    TILE_E = 1024    # 2 grid steps -> both v7x TensorCores get work

    x = jax.random.normal(k_x, (N, IN_CH), dtype=jnp.float32)
    adj_dense = jax.random.bernoulli(k_adj, 0.1, (N, N)).astype(jnp.float32)
    tar_ei = jnp.stack([
        jax.random.randint(k_src, (E,), 0, N, dtype=jnp.int32),
        jax.random.randint(k_dst, (E,), 0, N, dtype=jnp.int32),
    ], axis=0)

    params = init_params(k_w, IN_CH, HID, OUT_CH, beta=0.75)  # exercise beta folding

    out = scn_link_predictor(x, adj_dense, tar_ei, params, tile_e=TILE_E)
    out = jax.block_until_ready(out)

    ref = reference(x, adj_dense, tar_ei, params)
    assert out.shape == (E, OUT_CH)
    assert jnp.allclose(out, ref, atol=1e-4, rtol=1e-4), "mismatch vs reference"

    print("KERNEL_OK")
</pallas_src>

<mosaic_0001>
module attributes {stable_mosaic.version = 11 : i64} {
  func.func @scn_kernel(%arg0: i32, %arg1: memref<1x1024xi32, #tpu.memory_space<vmem>>, %arg2: memref<1x1024xi32, #tpu.memory_space<vmem>>, %arg3: memref<128x128xbf16, #tpu.memory_space<vmem>>, %arg4: memref<32x128xf32, #tpu.memory_space<vmem>>, %arg5: memref<64x192xf32, #tpu.memory_space<vmem>>, %arg6: memref<64x6xf32, #tpu.memory_space<vmem>>, %arg7: memref<8x64xf32, #tpu.memory_space<vmem>>, %arg8: memref<8x1024xf32, #tpu.memory_space<vmem>>) attributes {dimension_semantics = [#tpu.dimension_semantics<parallel>], iteration_bounds = array<i64: 2>, scalar_prefetch = 0 : i64, scratch_operands = 0 : i64, tpu.core_type = #tpu.core_type<tc>, window_params = [{transform_indices = @transform_0, window_bounds = array<i64: 1, 1024>}, {transform_indices = @transform_1, window_bounds = array<i64: 1, 1024>}, {pipeline_mode = #tpu.pipeline_mode<synchronous>, transform_indices = @transform_2, window_bounds = array<i64: 128, 128>}, {pipeline_mode = #tpu.pipeline_mode<synchronous>, transform_indices = @transform_3, window_bounds = array<i64: 32, 128>}, {pipeline_mode = #tpu.pipeline_mode<synchronous>, transform_indices = @transform_4, window_bounds = array<i64: 64, 192>}, {pipeline_mode = #tpu.pipeline_mode<synchronous>, transform_indices = @transform_5, window_bounds = array<i64: 64, 6>}, {pipeline_mode = #tpu.pipeline_mode<synchronous>, transform_indices = @transform_6, window_bounds = array<i64: 8, 64>}, {transform_indices = @transform_7, window_bounds = array<i64: 8, 1024>}]} {
    %c0 = arith.constant 0 : index
    %c0_0 = arith.constant 0 : index
    %0 = vector.load %arg1[%c0, %c0_0] : memref<1x1024xi32, #tpu.memory_space<vmem>>, vector<1x1024xi32>
    %c0_1 = arith.constant 0 : index
    %c0_2 = arith.constant 0 : index
    %1 = vector.load %arg2[%c0_1, %c0_2] : memref<1x1024xi32, #tpu.memory_space<vmem>>, vector<1x1024xi32>
    %2 = tpu.concatenate %0, %1 in 1 : vector<1x1024xi32>, vector<1x1024xi32> -> vector<1x2048xi32>
    %3 = tpu.iota {dimensions = array<i32: 0>} : vector<128x2048xi32>
    %4 = vector.broadcast %2 : vector<1x2048xi32> to vector<128x2048xi32>
    %5 = arith.cmpi eq, %3, %4 : vector<128x2048xi32>
    %6 = arith.extui %5 : vector<128x2048xi1> to vector<128x2048xi32>
    %7 = arith.sitofp %6 : vector<128x2048xi32> to vector<128x2048xf32>
    %c0_3 = arith.constant 0 : index
    %c0_4 = arith.constant 0 : index
    %8 = vector.load %arg4[%c0_3, %c0_4] : memref<32x128xf32, #tpu.memory_space<vmem>>, vector<32x128xf32>
    %cst = arith.constant dense<0.000000e+00> : vector<32x2048xf32>
    %9 = tpu.matmul %8, %7, %cst {dimension_numbers = #tpu.dot_dimension_numbers<[1], [0], [0], [1], [0, 0, 1, 1], [], []>} : vector<32x128xf32>, vector<128x2048xf32>, vector<32x2048xf32> -> vector<32x2048xf32>
    %10 = vector.extract_strided_slice %9 {offsets = [0, 0], sizes = [32, 1024], strides = [1, 1]} : vector<32x2048xf32> to vector<32x1024xf32>
    %11 = vector.extract_strided_slice %9 {offsets = [0, 1024], sizes = [32, 1024], strides = [1, 1]} : vector<32x2048xf32> to vector<32x1024xf32>
    %12 = arith.mulf %10, %11 : vector<32x1024xf32>
    %c0_5 = arith.constant 0 : index
    %c0_6 = arith.constant 0 : index
    %13 = vector.load %arg3[%c0_5, %c0_6] : memref<128x128xbf16, #tpu.memory_space<vmem>>, vector<128x128xbf16>
    %14 = vector.extract_strided_slice %5 {offsets = [0, 1024], sizes = [128, 1024], strides = [1, 1]} : vector<128x2048xi1> to vector<128x1024xi1>
    %15 = arith.extui %14 : vector<128x1024xi1> to vector<128x1024xi32>
    %16 = arith.sitofp %15 : vector<128x1024xi32> to vector<128x1024xf32>
    %17 = arith.truncf %16 : vector<128x1024xf32> to vector<128x1024xbf16>
    %cst_7 = arith.constant dense<0.000000e+00> : vector<128x1024xf32>
    %18 = tpu.matmul %13, %17, %cst_7 {dimension_numbers = #tpu.dot_dimension_numbers<[1], [0], [0], [1], [0, 0, 1, 1], [], []>} : vector<128x128xbf16>, vector<128x1024xbf16>, vector<128x1024xf32> -> vector<128x1024xf32>
    %19 = vector.extract_strided_slice %7 {offsets = [0, 0], sizes = [128, 1024], strides = [1, 1]} : vector<128x2048xf32> to vector<128x1024xf32>
    %20 = arith.mulf %19, %18 : vector<128x1024xf32>
    %cst_8 = arith.constant dense<0.000000e+00> : vector<1024xf32>
    %21 = vector.multi_reduction <add>, %20, %cst_8 [0] : vector<128x1024xf32> to vector<1024xf32>
    %22 = vector.shape_cast %21 : vector<1024xf32> to vector<1x1024xf32>
    %c0_9 = arith.constant 0 : index
    %c0_10 = arith.constant 0 : index
    %23 = vector.load %arg6[%c0_9, %c0_10] : memref<64x6xf32, #tpu.memory_space<vmem>>, vector<32x1xf32>
    %c0_11 = arith.constant 0 : index
    %c1 = arith.constant 1 : index
    %24 = vector.load %arg6[%c0_11, %c1] : memref<64x6xf32, #tpu.memory_space<vmem>>, vector<32x1xf32>
    %c0_12 = arith.constant 0 : index
    %c2 = arith.constant 2 : index
    %25 = vector.load %arg6[%c0_12, %c2] : memref<64x6xf32, #tpu.memory_space<vmem>>, vector<64x1xf32>
    %c0_13 = arith.constant 0 : index
    %c3 = arith.constant 3 : index
    %26 = vector.load %arg6[%c0_13, %c3] : memref<64x6xf32, #tpu.memory_space<vmem>>, vector<64x1xf32>
    %c0_14 = arith.constant 0 : index
    %c4 = arith.constant 4 : index
    %27 = vector.load %arg6[%c0_14, %c4] : memref<64x6xf32, #tpu.memory_space<vmem>>, vector<64x1xf32>
    %28 = vector.broadcast %23 : vector<32x1xf32> to vector<32x1024xf32>
    %29 = vector.broadcast %22 : vector<1x1024xf32> to vector<32x1024xf32>
    %30 = arith.mulf %28, %29 : vector<32x1024xf32>
    %31 = vector.broadcast %24 : vector<32x1xf32> to vector<32x1024xf32>
    %32 = arith.addf %30, %31 : vector<32x1024xf32>
    %cst_15 = arith.constant 0.000000e+00 : f32
    %33 = vector.broadcast %cst_15 : f32 to vector<32x1024xf32>
    %34 = arith.maximumf %32, %33 : vector<32x1024xf32>
    %35 = tpu.concatenate %34, %12 in 0 : vector<32x1024xf32>, vector<32x1024xf32> -> vector<64x1024xf32>
    %c0_16 = arith.constant 0 : index
    %c0_17 = arith.constant 0 : index
    %36 = vector.load %arg5[%c0_16, %c0_17] : memref<64x192xf32, #tpu.memory_space<vmem>>, vector<64x64xf32>
    %cst_18 = arith.constant dense<0.000000e+00> : vector<64x1024xf32>
    %37 = tpu.matmul %36, %35, %cst_18 {dimension_numbers = #tpu.dot_dimension_numbers<[1], [0], [0], [1], [0, 0, 1, 1], [], []>} : vector<64x64xf32>, vector<64x1024xf32>, vector<64x1024xf32> -> vector<64x1024xf32>
    %38 = vector.broadcast %25 : vector<64x1xf32> to vector<64x1024xf32>
    %39 = arith.addf %37, %38 : vector<64x1024xf32>
    %cst_19 = arith.constant 0.000000e+00 : f32
    %40 = vector.broadcast %cst_19 : f32 to vector<64x1024xf32>
    %41 = arith.maximumf %39, %40 : vector<64x1024xf32>
    %c0_20 = arith.constant 0 : index
    %c64 = arith.constant 64 : index
    %42 = vector.load %arg5[%c0_20, %c64] : memref<64x192xf32, #tpu.memory_space<vmem>>, vector<64x64xf32>
    %cst_21 = arith.constant dense<0.000000e+00> : vector<64x1024xf32>
    %43 = tpu.matmul %42, %41, %cst_21 {dimension_numbers = #tpu.dot_dimension_numbers<[1], [0], [0], [1], [0, 0, 1, 1], [], []>} : vector<64x64xf32>, vector<64x1024xf32>, vector<64x1024xf32> -> vector<64x1024xf32>
    %44 = vector.broadcast %26 : vector<64x1xf32> to vector<64x1024xf32>
    %45 = arith.addf %43, %44 : vector<64x1024xf32>
    %c0_22 = arith.constant 0 : index
    %c128 = arith.constant 128 : index
    %46 = vector.load %arg5[%c0_22, %c128] : memref<64x192xf32, #tpu.memory_space<vmem>>, vector<64x64xf32>
    %cst_23 = arith.constant dense<0.000000e+00> : vector<64x1024xf32>
    %47 = tpu.matmul %46, %45, %cst_23 {dimension_numbers = #tpu.dot_dimension_numbers<[1], [0], [0], [1], [0, 0, 1, 1], [], []>} : vector<64x64xf32>, vector<64x1024xf32>, vector<64x1024xf32> -> vector<64x1024xf32>
    %48 = vector.broadcast %27 : vector<64x1xf32> to vector<64x1024xf32>
    %49 = arith.addf %47, %48 : vector<64x1024xf32>
    %cst_24 = arith.constant 0.000000e+00 : f32
    %50 = vector.broadcast %cst_24 : f32 to vector<64x1024xf32>
    %51 = arith.maximumf %49, %50 : vector<64x1024xf32>
    %c0_25 = arith.constant 0 : index
    %c0_26 = arith.constant 0 : index
    %52 = vector.load %arg7[%c0_25, %c0_26] : memref<8x64xf32, #tpu.memory_space<vmem>>, vector<8x64xf32>
    %c0_27 = arith.constant 0 : index
    %c5 = arith.constant 5 : index
    %53 = vector.load %arg6[%c0_27, %c5] : memref<64x6xf32, #tpu.memory_space<vmem>>, vector<8x1xf32>
    %cst_28 = arith.constant dense<0.000000e+00> : vector<8x1024xf32>
    %54 = tpu.matmul %52, %51, %cst_28 {dimension_numbers = #tpu.dot_dimension_numbers<[1], [0], [0], [1], [0, 0, 1, 1], [], []>} : vector<8x64xf32>, vector<64x1024xf32>, vector<8x1024xf32> -> vector<8x1024xf32>
    %55 = vector.broadcast %53 : vector<8x1xf32> to vector<8x1024xf32>
    %56 = arith.addf %54, %55 : vector<8x1024xf32>
    %c0_29 = arith.constant 0 : index
    %c0_30 = arith.constant 0 : index
    %57 = vector.load %arg8[%c0_29, %c0_30] : memref<8x1024xf32, #tpu.memory_space<vmem>>, vector<8x1024xf32>
    tpu.vector_store %arg8[%c0_29, %c0_30], %56 {strides = array<i32>} : memref<8x1024xf32, #tpu.memory_space<vmem>>, vector<8x1024xf32>,
    return
  }
  func.func @transform_0(%arg0: i32) -> (i32, i32) {
    %c0_i32 = arith.constant 0 : i32
    %c0_i32_0 = arith.constant 0 : i32
    return %c0_i32, %arg0 : i32, i32
  }
  func.func @transform_1(%arg0: i32) -> (i32, i32) {
    %c0_i32 = arith.constant 0 : i32
    %c0_i32_0 = arith.constant 0 : i32
    return %c0_i32, %arg0 : i32, i32
  }
  func.func @transform_2(%arg0: i32) -> (i32, i32) {
    %c0_i32 = arith.constant 0 : i32
    %c0_i32_0 = arith.constant 0 : i32
    %c0_i32_1 = arith.constant 0 : i32
    return %c0_i32, %c0_i32_0 : i32, i32
  }
  func.func @transform_3(%arg0: i32) -> (i32, i32) {
    %c0_i32 = arith.constant 0 : i32
    %c0_i32_0 = arith.constant 0 : i32
    %c0_i32_1 = arith.constant 0 : i32
    return %c0_i32, %c0_i32_0 : i32, i32
  }
  func.func @transform_4(%arg0: i32) -> (i32, i32) {
    %c0_i32 = arith.constant 0 : i32
    %c0_i32_0 = arith.constant 0 : i32
    %c0_i32_1 = arith.constant 0 : i32
    return %c0_i32, %c0_i32_0 : i32, i32
  }
  func.func @transform_5(%arg0: i32) -> (i32, i32) {
    %c0_i32 = arith.constant 0 : i32
    %c0_i32_0 = arith.constant 0 : i32
    %c0_i32_1 = arith.constant 0 : i32
    return %c0_i32, %c0_i32_0 : i32, i32
  }
  func.func @transform_6(%arg0: i32) -> (i32, i32) {
    %c0_i32 = arith.constant 0 : i32
    %c0_i32_0 = arith.constant 0 : i32
    %c0_i32_1 = arith.constant 0 : i32
    return %c0_i32, %c0_i32_0 : i32, i32
  }
  func.func @transform_7(%arg0: i32) -> (i32, i32) {
    %c0_i32 = arith.constant 0 : i32
    %c0_i32_0 = arith.constant 0 : i32
    return %c0_i32, %arg0 : i32, i32
  }
}

</mosaic_0001>

<bundles_post_ra>
// kernel: tpu_custom_call.1
= control target key start
LH: loop header
LB: loop body
LE: loop exit
PB: predicated region body
PF: predicated region fallthrough
CT: control target
= control target key end

     0   :  { %s11483_s0 = inlined_call_operand.hbm [shape: s32[1,2048], index: 0, kind: input, shape index: {}]   ;;  %s11484_s1 = inlined_call_operand.hbm [shape: s32[1,2048], index: 1, kind: input, shape index: {}]   ;;  %s11485_s2 = inlined_call_operand.vmem [shape: bf16[128,128], index: 2, kind: input, shape index: {}]   ;;  %s11486_s3 = inlined_call_operand.hbm [shape: f32[32,128], index: 3, kind: input, shape index: {}]   ;;  %s11487_s4 = inlined_call_operand.hbm [shape: f32[64,192], index: 4, kind: input, shape index: {}]   ;;  %s11488_s5 = inlined_call_operand.vmem [shape: f32[64,6], index: 5, kind: input, shape index: {}]   ;;  %s11489_s6 = inlined_call_operand.vmem [shape: f32[8,64], index: 6, kind: input, shape index: {}]   ;;  %s11490_s7 = inlined_call_operand.hbm [shape: f32[8,2048], index: 7, kind: output, shape index: {}]  }
   0x1   :  { %11752 = sst [smem:[#allocation114_spill]] %s11486_s3 }
   0x2   :  { %11753 = sst [smem:[#allocation115_spill]] %s11487_s4 }
   0x3   :  { %12 = vsyncpa [#allocation3], 0 }
   0x4   :  { %14 = vsyncpa [#allocation3 + $0x1], 0 }
   0x5   :  { %15 = vsyncpa [#allocation6], 0 }
   0x6   :  { %17 = vsyncpa [#allocation6 + $0x1], 0 }
   0x7   :  { %18 = vsyncpa [#allocation9], 0 }
   0x8   :  { %19 = vsyncpa [#allocation4], 0 }
   0x9   :  { %21 = vsyncpa [#allocation4 + $0x1], 0  ;;  %s6288_s24 = smov 0   ;;  %s6290_s25 = smov 0  }
   0xa   :  { %s6292_s26 = smov 0   ;;  %s6294_s27 = smov 0  }
   0xb LB: > { %11754 = sst [smem:[#allocation16_spill]] %s6223_s26  ;;  %s6309_s28 = sadd.s32 4294967295, %s6227_s27   ;;  %s6227_s27 = sphi %s6294_s27, %s12662_s27   ;;  %s6223_s26 = sphi %s6292_s26, %s12659_s26   ;;  %s6219_s25 = sphi %s6290_s25, %s12661_s25   ;;  %s6215_s24 = sphi %s6288_s24, %s12660_s24  }
   0xc   : > { %s5155_s29 = sadd.s32 4294967294, %s6227_s27   ;;  %p47_p0 = scmp.ne.s32.totalorder %s6219_s25, %s6215_s24 }
   0xd   : > { %p11491_p1 = scmp.eq.s32.totalorder %s6309_s28, 0  ;;  %p208_p3 = scmp.eq.s32.totalorder %s5155_s29, 1 }
   0xe   : > { %p5156_p5 = scmp.ge.s32.totalorder %s6227_s27, 1  ;;  %p215_p7 = scmp.lt.s32.totalorder %s6227_s27, 3 }
   0xf   : > { %p6318_p4 = por %p11491_p1, %p47_p0  ;;  %p6323_p6 = por %p208_p3, %p47_p0 }
  0x10   : > { %p6328_p8 = pnand %p5156_p5, %p215_p7  ;;  %s6229_s10 = smov [#allocation7]  }
  0x11   : > { %s11755_s30 = scalar_select %p6318_p4, 1, 0 }
  0x12   : > { %s11756_s8 = scalar_select %p6323_p6, 1, 0 }
  0x13   : > { %s11757_s9 = scalar_select %p6328_p8, 1, 0 }
  0x14   : > { %s230_s11 = sshll.u32 %s6229_s10, 4  ;;  %p5942_p9 = pneg %p6328_p8  ;;  %s231_s11 = int_to_ptr.vmem [resolvable:$true] %s230_s11 }
  0x15   : > { %s6230_s13 = smov [#allocation8]   ;;  %s6054_s15 = scalar_lea.vmem %s231_s11, 512 }
  0x16   : > { %p6337_p11 = pnand %p5942_p9, %p11491_p1  ;;  %s243_s14 = sshll.u32 %s6230_s13, 4  ;;  %s244_s14 = int_to_ptr.vmem [resolvable:$true] %s243_s14 }
  0x17   : > { %p6055_p13 = scmp.ne.s32.totalorder %s231_s11, %s6054_s15  ;;  %p6062_p5 = scmp.lt.s32.totalorder %s231_s11, %s231_s11 }
  0x18   : > { %p6045_p12 = pneg %p6337_p11  ;;  %p6063_p7 = scmp.lt.s32.totalorder %s6054_s15, %s6054_s15 }
  0x1a   : > { %p6057_p0 = pnand %p6055_p13, %p6045_p12  ;;  %p6064_p10 = por %p6063_p7, %p6062_p5 }
  0x1c   : > { %p6058_p3 = pneg %p6057_p0 }
  0x1e   : > { %p6065_p9 = pnand %p6064_p10, %p6058_p3 }
  0x20   : > { %6068 = shalt.err (!%p6065_p9)
}
  0x21   : > { %s6231_s16 = smov 128   ;;  %s6232_s17 = smov 8  }
  0x22   : > { %s11759_s3 = sld [smem:[#allocation114_spill]]  ;;  %s6080_s20 = scalar_lea.vmem %s244_s14, 2048 }
  0x23   : > { %p6081_p1 = scmp.ne.s32.totalorder %s244_s14, %s6080_s20  ;;  %p6088_p2 = scmp.lt.s32.totalorder %s244_s14, %s244_s14 }
  0x24   : > { %p6089_p6 = scmp.lt.s32.totalorder %s6080_s20, %s6080_s20 }
  0x25   : > { %p6083_p13 = pnand %p6081_p1, %p6045_p12 }
  0x26   : > { %p6090_p5 = por %p6089_p6, %p6088_p2 }
  0x27   : > { %p6084_p0 = pneg %p6083_p13 }
  0x28   : > { %5945 = dma.hbm_to_vmem [thread:$0]  (!%p6337_p11), %s11759_s3, 512, %s231_s11, [#allocation6], %s6231_s16, %s6231_s16, %s6232_s17  }
  0x29   : > { %p6091_p10 = pnand %p6090_p5, %p6084_p0 }
  0x2b   : > { %6094 = shalt.err (!%p6091_p10)
}
  0x2c   : > { %s6233_s21 = smov 256   ;;  %s6234_s22 = smov 16  }
  0x2d   : > { %s11760_s4 = sld [smem:[#allocation115_spill]]  ;;  %s6360_s10 = sadd.s32 1, %s6227_s27  }
  0x2e   : > { %s31_s11 = ssub.s32 %s6227_s27, %s6360_s10  ;;  %s34_s13 = sadd.s32 1, %s6223_s26 }
  0x2f   : > { %p32_p1 = scmp.eq.s32.totalorder %s31_s11, 0  ;;  %p41_p2 = scmp.ne.s32.totalorder %s6223_s26, %s6219_s25 }
  0x30   : > { %p42_p6 = scmp.eq.s32.totalorder %s6227_s27, 0  ;;  %p11762_p3 = scmp.eq.s32.totalorder %s6309_s28, 1 }
  0x31   : > { %s6369_s15 = scalar_select %p32_p1, %s6223_s26, %s34_s13  }
  0x32   : > { %p43_p12 = por %p42_p6, %p41_p2  ;;  %p6373_p7 = por %p11762_p3, %p41_p2 }
  0x33   : > { %5948 = dma.hbm_to_vmem [thread:$0]  (!%p6337_p11), %s11760_s4, 2048, %s244_s14, [#allocation9], %s6233_s21, %s6233_s21, %s6234_s22  }
  0x34   : > { %11761 = sst [smem:[#allocation17_spill]] %s6369_s15  ;;  %p5962_p9 = scmp.lt.s32.totalorder %s6227_s27, 2 }
  0x35   : > { %s11763_s16 = scalar_select %p6373_p7, 1, 0 }
  0x36   : > { %s263_s12 = sand.u32 1, %s6223_s26   ;;  %s5925_s17 = sshll.u32 %s6227_s27, 7 }
  0x37   : > { %s6379_s14 = sshll.u32 %s263_s12, 3  ;;  %s6385_s20 = scalar_lea.hbm %s11483_s0, %s5925_s17 }
  0x38   : > { %s267_s21 = scalar_lea.vmem [#allocation2], %s6379_s14  ;;  %p6390_p11 = pnand %p5962_p9, %p43_p12 }
  0x39   : > { %s275_s22 = sshll.u32 %s267_s21, 4  ;;  %s6397_s13 = scalar_lea.hbm %s11484_s1, %s5925_s17  ;;  %s6388_s22 = int_to_ptr.vmem [resolvable:$true] %s275_s22 }
  0x3a   : > { %s282_s18 = sand.u32 1, %s6227_s27   ;;  %s264_s19 = scalar_lea.sflag [#allocation3], %s263_s12 }
  0x3b   : > { %s6095_s3 = scalar_lea.hbm %s6385_s20, 128  ;;  %p6097_p0 = pneg %p6390_p11 }
  0x3c   : > { %p6096_p13 = scmp.ne.s32.totalorder %s6385_s20, %s6095_s3  ;;  %s6100_s15 = scalar_lea.hbm %s11483_s0, 256 }
  0x3d   : > { %p6101_p1 = scmp.lt.s32.totalorder %s6385_s20, %s11483_s0  ;;  %p6102_p2 = scmp.lt.s32.totalorder %s6100_s15, %s6095_s3 }
  0x3e   : > { %p6098_p5 = pnand %p6097_p0, %p6096_p13 }
  0x3f   : > { %p6103_p6 = por %p6102_p2, %p6101_p1 }
  0x40   : > { %p6099_p10 = pneg %p6098_p5 }
  0x42   : > { %p6104_p12 = pnand %p6103_p6, %p6099_p10 }
  0x44   : > { %6107 = shalt.err (!%p6104_p12)
}
  0x45   : > { %s6108_s12 = scalar_lea.vmem %s6388_s22, 128  ;;  %s6235_s4 = smov [#allocation2]  }
  0x46   : > { %p6109_p3 = scmp.ne.s32.totalorder %s6388_s22, %s6108_s12  ;;  %s6113_s17 = sshll.u32 %s6235_s4, 4  ;;  %s6114_s17 = int_to_ptr.vmem [resolvable:$false] %s6113_s17 }
  0x47   : > { %s6115_s11 = scalar_lea.vmem %s6114_s17, 256  ;;  %p6116_p5 = scmp.lt.s32.totalorder %s6388_s22, %s6114_s17 }
  0x48   : > { %p6111_p9 = pnand %p6109_p3, %p6097_p0  ;;  %p6117_p7 = scmp.lt.s32.totalorder %s6115_s11, %s6108_s12 }
  0x4a   : > { %p6112_p13 = pneg %p6111_p9  ;;  %p6118_p4 = por %p6117_p7, %p6116_p5 }
  0x4c   : > { %p6119_p1 = pnand %p6118_p4, %p6112_p13 }
  0x4e   : > { %6122 = shalt.err (!%p6119_p1)
}
  0x4f   : > { %5952 = dma.hbm_to_vmem [thread:$0]  (!%p6390_p11), %s6385_s20, 128, %s6388_s22, %s264_s19  }
  0x50   : > { %s286_s3 = scalar_lea.vmem [#allocation5], %s6379_s14  ;;  %s283_s15 = scalar_lea.sflag [#allocation6], %s282_s18 }
  0x51   : > { %s294_s26 = sshll.u32 %s286_s3, 4  ;;  %s6123_s21 = scalar_lea.hbm %s6397_s13, 128  ;;  %s295_s26 = int_to_ptr.vmem [resolvable:$true] %s294_s26 }
  0x52   : > { %p6124_p7 = scmp.ne.s32.totalorder %s6397_s13, %s6123_s21  ;;  %s6128_s4 = scalar_lea.hbm %s11484_s1, 256 }
  0x53   : > { %p6129_p2 = scmp.lt.s32.totalorder %s6397_s13, %s11484_s1  ;;  %p6130_p6 = scmp.lt.s32.totalorder %s6128_s4, %s6123_s21 }
  0x54   : > { %p6126_p4 = pnand %p6124_p7, %p6097_p0 }
  0x55   : > { %p6131_p12 = por %p6130_p6, %p6129_p2 }
  0x56   : > { %p6127_p10 = pneg %p6126_p4 }
  0x58   : > { %p6132_p3 = pnand %p6131_p12, %p6127_p10 }
  0x5a   : > { %6135 = shalt.err (!%p6132_p3)
}
  0x5b   : > { %s6136_s14 = scalar_lea.vmem %s295_s26, 128  ;;  %s6236_s20 = smov [#allocation5]  }
  0x5c   : > { %p6137_p9 = scmp.ne.s32.totalorder %s295_s26, %s6136_s14  ;;  %s6141_s22 = sshll.u32 %s6236_s20, 4  ;;  %s6142_s22 = int_to_ptr.vmem [resolvable:$false] %s6141_s22 }
  0x5d   : > { %s6143_s18 = scalar_lea.vmem %s6142_s22, 256  ;;  %p6144_p1 = scmp.lt.s32.totalorder %s295_s26, %s6142_s22 }
  0x5e   : > { %p6139_p13 = pnand %p6137_p9, %p6097_p0  ;;  %p6145_p7 = scmp.lt.s32.totalorder %s6143_s18, %s6136_s14 }
  0x60   : > { %p6140_p5 = pneg %p6139_p13  ;;  %p6146_p4 = por %p6145_p7, %p6144_p1 }
  0x62   : > { %p6147_p8 = pnand %p6146_p4, %p6140_p5 }
  0x64   : > { %6150 = shalt.err (!%p6147_p8)
}
  0x65   : > { %5955 = dma.hbm_to_vmem [thread:$0]  (!%p6390_p11), %s6397_s13, 128, %s295_s26, %s283_s15  }
  0x66   : > { %p11765_p10 = scmp.ne.s32.totalorder %s11757_s9, 0 }
  0x68   : > { %303 = sbr.rel (%p11765_p10) target bundleno = 1637 (0x665), region = 48 }
  0x6d   : > { %s6448_s19 = sand.u32 1, %s6219_s25   ;;  %p11766_p0 = scmp.ne.s32.totalorder %s11755_s30, 0 }
  0x6e   : > { %s5167_s3 = sshll.u32 %s6448_s19, 3  ;;  %s306_s21 = scalar_lea.sflag [#allocation3], %s6448_s19 }
  0x6f   : > { %s309_s29 = scalar_lea.vmem [#allocation2], %s5167_s3 }
  0x70   : > { %6194 = dma.done.wait (%p11766_p0), %s306_s21, 128  }
  0x71   : > { %6196 = vsyncadd (%p11766_p0), %s306_s21, 4294967168  ;;  %s314_s23 = sand.u32 1, %s6309_s28   ;;  %s6457_s9 = scalar_lea.vmem [#allocation5], %s5167_s3 }
  0x72   : > { %s315_s13 = scalar_lea.sflag [#allocation6], %s314_s23 }
  0x73   : > { %6198 = dma.done.wait (%p11766_p0), %s315_s13, 128  }
  0x74   : > { %6200 = vsyncadd (%p11766_p0), %s315_s13, 4294967168  ;;  %p11767_p8 = scmp.eq.s32.totalorder %s6309_s28, 0 }
  0x76   : > { %6202 = dma.done.wait (%p11767_p8), [#allocation6], 512   ;;  %p11768_p11 = pmov %p11767_p8 }
  0x77   : > { %p11769_p2 = pmov %p11767_p8 }
  0x78   : > { %6204 = vsyncadd (%p11768_p11), [#allocation6], 4294966784 }
  0x79   : > { %6206 = dma.done.wait (%p11769_p2), [#allocation9], 2048   ;;  %p11770_p6 = pmov %p11769_p2 }
  0x7a   : > { %v368_v0 = vlaneseq  ;;  %v11624_v1 = vmov 0.0   ;;  %v6481_v7 = vld [vmem:[%s309_s29] sm:$0xff]  ;;  %v11655_v20 = vmov 1.0   ;;  %v6940_v44 = vld [vmem:[%s6457_s9] sm:$0xff]  ;;  %s6243_s13 = smov 64   ;;  %s5171_s15 = sshll.u32 %s6448_s19, 6 }
  0x7b   : > { %6208 = vsyncadd (%p11770_p6), [#allocation9], 4294965248  ;;  %1349 = vmatprep.mubr.f32.mxu0 %v11624_v1  ;;  %1438 = vmatprep.mubr.f32.mxu1 %v11624_v1  ;;  %v6950_v45 = vld [vmem:[#allocation7] sm:$0xff]  ;;  %v7262_v56 = vld [vmem:[#allocation7 + $0x8] sm:$0xff]  ;;  %s361_s12 = scalar_lea.vmem [#allocation10], %s5171_s15  ;;  %s5927_s4 = sshll.u32 %s6309_s28, 10 }
  0x7c   : > { %v6473_v2 = vshrl.u32 %v368_v0, 7  ;;  %v7396_v63 = vld [vmem:[#allocation7 + $0x10] sm:$0xff]  ;;  %v9023_v58 = vld [vmem:[%s11488_s5 + $0x8] sm:$0xff]  ;;  %s5043_s17 = sshll.u32 %s361_s12, 4  ;;  %s11446_s20 = scalar_lea.hbm %s11490_s7, %s5927_s4  ;;  %s5044_s17 = int_to_ptr.vmem [resolvable:$true] %s5043_s17 }
  0x7d   : > { %v9018_v57 = vld [vmem:[%s11488_s5 + $0x10] sm:$0xff]  ;;  %s5029_s22 = scalar_lea.sflag [#allocation4], %s6448_s19  ;;  %s6151_s18 = scalar_lea.vmem %s5044_s17, 1024 }
  0x7e   : > { %v6476_v3 = vsub.s32 0, %v6473_v2  ;;  %v374_v4 = vsub.s32 1, %v6473_v2  ;;  %v382_v5 = vsub.s32 3, %v6473_v2  ;;  %v378_v6 = vsub.s32 2, %v6473_v2  ;;  %p6152_p12 = scmp.ne.s32.totalorder %s5044_s17, %s6151_s18  ;;  %p12655_p3 = scmp.ne.s32.totalorder %s11763_s16, 0 }
  0x7f   : > { %v6484_v8 = vadd.s32 120, %v6473_v2  ;;  %v6498_v13 = vadd.s32 112, %v6473_v2  ;;  %v6501_v14 = vadd.s32 104, %v6473_v2  ;;  %v6516_v19 = vadd.s32 96, %v6473_v2  ;;  %s6247_s28 = smov [#allocation10]  }
  0x80   : > { %v375_v9 = vrot.slane %v6481_v7, %v374_v4  ;;  %v383_v10 = vrot.slane %v6481_v7, %v382_v5  ;;  %v371_v11 = vrot.slane %v6481_v7, %v6476_v3  ;;  %v379_v12 = vrot.slane %v6481_v7, %v378_v6  ;;  %p6153_p9 = pnand %p6152_p12, %p12655_p3  ;;  %s6155_s3 = sshll.u32 %s6247_s28, 4  ;;  %s6156_s3 = int_to_ptr.vmem [resolvable:$false] %s6155_s3 }
  0x81   : > { %11771 = vst [vmem:[#allocation18_spill] sm:$0xff] %v6484_v8  ;;  %11772 = vst [vmem:[#allocation19_spill] sm:$0xff] %v6498_v13  ;;  %v6539_v21 = vadd.s32 88, %v6473_v2  ;;  %v6582_v22 = vadd.s32 80, %v6473_v2  ;;  %v6609_v23 = vadd.s32 72, %v6473_v2  ;;  %v6636_v24 = vadd.s32 64, %v6473_v2  ;;  %p6158_p5 = scmp.lt.s32.totalorder %s5044_s17, %s6156_s3 }
  0x82   : > { %11773 = vst [vmem:[#allocation20_spill] sm:$0xff] %v6501_v14  ;;  %v6504_v15 = vrot.slane %v375_v9, %v6476_v3  ;;  %v6507_v16 = vrot.slane %v383_v10, %v6476_v3  ;;  %v6510_v17 = vrot.slane %v371_v11, %v6476_v3  ;;  %v6513_v18 = vrot.slane %v379_v12, %v6476_v3  ;;  %v7530_v10 = vld [vmem:[#allocation7 + $0x18] sm:$0xff]  ;;  %p6154_p13 = pneg %p6153_p9  ;;  %s6157_s21 = scalar_lea.vmem %s6156_s3, 2048 }
  0x83   : > { %11778 = vst [vmem:[#allocation25_spill] sm:$0xff] %v6516_v19  ;;  %11779 = vst [vmem:[#allocation26_spill] sm:$0xff] %v6539_v21  ;;  %v6663_v25 = vadd.s32 56, %v6473_v2  ;;  %v6690_v26 = vadd.s32 48, %v6473_v2  ;;  %v6717_v27 = vadd.s32 40, %v6473_v2  ;;  %v6744_v28 = vadd.s32 32, %v6473_v2  ;;  %p6159_p1 = scmp.lt.s32.totalorder %s6157_s21, %s6151_s18 }
  0x84   : > { %11774 = vst [vmem:[#allocation21_spill] sm:$0xff] %v6504_v15  ;;  %11775 = vst [vmem:[#allocation22_spill] sm:$0xff] %v6507_v16  ;;  %vm11571_vm0 = vcmp.eq.s32.totalorder %v6484_v8, %v6504_v15  ;;  %vm11568_vm1 = vcmp.eq.s32.totalorder %v6484_v8, %v6507_v16  ;;  %vm11497_vm2 = vcmp.eq.s32.totalorder %v6484_v8, %v6510_v17  ;;  %v390_v29 = vsub.s32 5, %v6473_v2 }
  0x85   : > { %11776 = vst [vmem:[#allocation23_spill] sm:$0xff] %v6510_v17  ;;  %11777 = vst [vmem:[#allocation24_spill] sm:$0xff] %v6513_v18  ;;  %vm11496_vm3 = vcmp.eq.s32.totalorder %v6484_v8, %v6513_v18  ;;  %5428 = vmatprep.subr.msk.mxu0 %vm11571_vm0, %v11655_v20  ;;  %5460 = vmatprep.subr.msk.mxu1 %vm11568_vm1, %v11655_v20  ;;  %vm11499_vm4 = vcmp.eq.s32.totalorder %v6498_v13, %v6504_v15  ;;  %v6772_v30 = vadd.s32 24, %v6473_v2  ;;  %v11838_v9 = vmov 0  ;;  %p6160_p7 = por %p6159_p1, %p6158_p5 }
  0x86   : > { %vm11498_vm5 = vcmp.eq.s32.totalorder %v6498_v13, %v6507_v16  ;;  %5429 = vmatpush1.msk.msra.mxu0 %vm11497_vm2, %v11655_v20  ;;  %5461 = vmatpush1.msk.msra.mxu1 %vm11496_vm3, %v11655_v20  ;;  %vm11501_vm6 = vcmp.eq.s32.totalorder %v6498_v13, %v6510_v17  ;;  %vm11500_vm7 = vcmp.eq.s32.totalorder %v6498_v13, %v6513_v18  ;;  %v6787_v31 = vadd.s32 16, %v6473_v2 }
  0x87   : > { %vm11503_vm8 = vcmp.eq.s32.totalorder %v6501_v14, %v6504_v15  ;;  %5430 = vmatprep.subr.msk.mxu0 %vm11499_vm4, %v11655_v20  ;;  %5462 = vmatprep.subr.msk.mxu1 %vm11498_vm5, %v11655_v20  ;;  %vm11502_vm9 = vcmp.eq.s32.totalorder %v6501_v14, %v6507_v16  ;;  %vm11505_vm10 = vcmp.eq.s32.totalorder %v6501_v14, %v6510_v17  ;;  %v398_v32 = vsub.s32 7, %v6473_v2  ;;  %p6161_p4 = pnand %p6160_p7, %p6154_p13 }
  0x88   : > { %vm11504_vm11 = vcmp.eq.s32.totalorder %v6501_v14, %v6513_v18  ;;  %5431 = vmatpush1.msk.msra.mxu0 %vm11501_vm6, %v11655_v20  ;;  %5463 = vmatpush1.msk.msra.mxu1 %vm11500_vm7, %v11655_v20  ;;  %vm11507_vm12 = vcmp.eq.s32.totalorder %v6516_v19, %v6504_v15  ;;  %vm11506_vm13 = vcmp.eq.s32.totalorder %v6516_v19, %v6507_v16  ;;  %v386_v33 = vsub.s32 4, %v6473_v2 }
  0x89   : > { %11780 = vst [vmem:[#allocation27_spill] sm:$0xff] %v6582_v22  ;;  %5432 = vmatprep.subr.msk.mxu0 %vm11503_vm8, %v11655_v20  ;;  %5464 = vmatprep.subr.msk.mxu1 %vm11502_vm9, %v11655_v20  ;;  %vm11509_vm14 = vcmp.eq.s32.totalorder %v6516_v19, %v6510_v17  ;;  %vm11508_vm15 = vcmp.eq.s32.totalorder %v6516_v19, %v6513_v18  ;;  %11781 = vst [vmem:[#allocation28_spill] sm:$0xff] %v6609_v23  ;;  %v11623_v34 = vsub.s32 6, %v6473_v2  ;;  %v11843_v11 = vmov 0 }
  0x8a   : > { %5433 = vmatpush1.msk.msra.mxu0 %vm11505_vm10, %v11655_v20  ;;  %5465 = vmatpush1.msk.msra.mxu1 %vm11504_vm11, %v11655_v20  ;;  %vm11511_vm3 = vcmp.eq.s32.totalorder %v6539_v21, %v6504_v15  ;;  %vm11510_vm2 = vcmp.eq.s32.totalorder %v6539_v21, %v6507_v16  ;;  %vm11513_vm5 = vcmp.eq.s32.totalorder %v6539_v21, %v6510_v17  ;;  %v6817_v35 = vadd.s32 8, %v6473_v2 }
  0x8b   : > { %5434 = vmatprep.subr.msk.mxu0 %vm11507_vm12, %v11655_v20  ;;  %5466 = vmatprep.subr.msk.mxu1 %vm11506_vm13, %v11655_v20  ;;  %vm11512_vm4 = vcmp.eq.s32.totalorder %v6539_v21, %v6513_v18  ;;  %vm11515_vm7 = vcmp.eq.s32.totalorder %v6582_v22, %v6504_v15  ;;  %vm11514_vm6 = vcmp.eq.s32.totalorder %v6582_v22, %v6507_v16  ;;  %v11846_v12 = vmov 0 }
  0x8c   : > { %5435 = vmatpush1.msk.msra.mxu0 %vm11509_vm14, %v11655_v20  ;;  %5467 = vmatpush1.msk.msra.mxu1 %vm11508_vm15, %v11655_v20  ;;  %11782 = vst [vmem:[#allocation29_spill] sm:$0xff] %v6636_v24  ;;  %vm11517_vm9 = vcmp.eq.s32.totalorder %v6582_v22, %v6510_v17  ;;  %vm11516_vm8 = vcmp.eq.s32.totalorder %v6582_v22, %v6513_v18  ;;  %11783 = vst [vmem:[#allocation30_spill] sm:$0xff] %v6663_v25 }
  0x8d   : > { %5436 = vmatprep.subr.msk.mxu0 %vm11511_vm3, %v11655_v20  ;;  %5468 = vmatprep.subr.msk.mxu1 %vm11510_vm2, %v11655_v20  ;;  %vm11519_vm11 = vcmp.eq.s32.totalorder %v6609_v23, %v6504_v15  ;;  %vm11518_vm10 = vcmp.eq.s32.totalorder %v6609_v23, %v6507_v16  ;;  %vm11521_vm13 = vcmp.eq.s32.totalorder %v6609_v23, %v6510_v17 }
  0x8e   : > { %5437 = vmatpush1.msk.msra.mxu0 %vm11513_vm5, %v11655_v20  ;;  %5469 = vmatpush1.msk.msra.mxu1 %vm11512_vm4, %v11655_v20  ;;  %vm11520_vm12 = vcmp.eq.s32.totalorder %v6609_v23, %v6513_v18  ;;  %vm11523_vm15 = vcmp.eq.s32.totalorder %v6636_v24, %v6504_v15  ;;  %vm11522_vm14 = vcmp.eq.s32.totalorder %v6636_v24, %v6507_v16 }
  0x8f   : > { %5438 = vmatprep.subr.msk.mxu0 %vm11515_vm7, %v11655_v20  ;;  %5470 = vmatprep.subr.msk.mxu1 %vm11514_vm6, %v11655_v20  ;;  %11784 = vst [vmem:[#allocation31_spill] sm:$0xff] %v6690_v26  ;;  %vm11525_vm2 = vcmp.eq.s32.totalorder %v6636_v24, %v6510_v17  ;;  %vm11524_vm3 = vcmp.eq.s32.totalorder %v6636_v24, %v6513_v18  ;;  %11785 = vst [vmem:[#allocation32_spill] sm:$0xff] %v6717_v27 }
  0x90   : > { %5439 = vmatpush1.msk.msra.mxu0 %vm11517_vm9, %v11655_v20  ;;  %5471 = vmatpush1.msk.msra.mxu1 %vm11516_vm8, %v11655_v20  ;;  %vm11527_vm4 = vcmp.eq.s32.totalorder %v6663_v25, %v6504_v15  ;;  %vm11526_vm5 = vcmp.eq.s32.totalorder %v6663_v25, %v6507_v16  ;;  %vm11529_vm6 = vcmp.eq.s32.totalorder %v6663_v25, %v6510_v17 }
  0x91   : > { %5440 = vmatprep.subr.msk.mxu0 %vm11519_vm11, %v11655_v20  ;;  %5472 = vmatprep.subr.msk.mxu1 %vm11518_vm10, %v11655_v20  ;;  %vm11528_vm7 = vcmp.eq.s32.totalorder %v6663_v25, %v6513_v18  ;;  %vm11531_vm8 = vcmp.eq.s32.totalorder %v6690_v26, %v6504_v15  ;;  %vm11530_vm9 = vcmp.eq.s32.totalorder %v6690_v26, %v6507_v16 }
  0x92   : > { %5441 = vmatpush1.msk.msra.mxu0 %vm11521_vm13, %v11655_v20  ;;  %5473 = vmatpush1.msk.msra.mxu1 %vm11520_vm12, %v11655_v20  ;;  %11786 = vst [vmem:[#allocation33_spill] sm:$0xff] %v6744_v28  ;;  %vm11533_vm10 = vcmp.eq.s32.totalorder %v6690_v26, %v6510_v17  ;;  %vm11532_vm11 = vcmp.eq.s32.totalorder %v6690_v26, %v6513_v18  ;;  %11787 = vst [vmem:[#allocation34_spill] sm:$0xff] %v6772_v30 }
  0x93   : > { %5442 = vmatprep.subr.msk.mxu0 %vm11523_vm15, %v11655_v20  ;;  %5474 = vmatprep.subr.msk.mxu1 %vm11522_vm14, %v11655_v20  ;;  %vm11535_vm12 = vcmp.eq.s32.totalorder %v6717_v27, %v6504_v15  ;;  %vm11534_vm13 = vcmp.eq.s32.totalorder %v6717_v27, %v6507_v16  ;;  %vm11537_vm14 = vcmp.eq.s32.totalorder %v6717_v27, %v6510_v17 }
  0x94   : > { %5443 = vmatpush1.msk.msra.mxu0 %vm11525_vm2, %v11655_v20  ;;  %5475 = vmatpush1.msk.msra.mxu1 %vm11524_vm3, %v11655_v20  ;;  %vm11536_vm15 = vcmp.eq.s32.totalorder %v6717_v27, %v6513_v18  ;;  %11788 = vst [vmem:[#allocation35_spill] sm:$0xff] %v6787_v31  ;;  %vm11539_vm3 = vcmp.eq.s32.totalorder %v6744_v28, %v6504_v15 }
  0x95   : > { %5444 = vmatprep.subr.msk.mxu0 %vm11527_vm4, %v11655_v20  ;;  %5476 = vmatprep.subr.msk.mxu1 %vm11526_vm5, %v11655_v20  ;;  %vm11538_vm2 = vcmp.eq.s32.totalorder %v6744_v28, %v6507_v16  ;;  %vm11541_vm5 = vcmp.eq.s32.totalorder %v6744_v28, %v6510_v17  ;;  %vm11540_vm4 = vcmp.eq.s32.totalorder %v6744_v28, %v6513_v18 }
  0x96   : > { %5445 = vmatpush1.msk.msra.mxu0 %vm11529_vm6, %v11655_v20  ;;  %5477 = vmatpush1.msk.msra.mxu1 %vm11528_vm7, %v11655_v20  ;;  %v391_v36 = vrot.slane %v6481_v7, %v390_v29  ;;  %vm11543_vm7 = vcmp.eq.s32.totalorder %v6772_v30, %v6504_v15  ;;  %vm11542_vm6 = vcmp.eq.s32.totalorder %v6772_v30, %v6507_v16 }
  0x97   : > { %5446 = vmatprep.subr.msk.mxu0 %vm11531_vm8, %v11655_v20  ;;  %5478 = vmatprep.subr.msk.mxu1 %vm11530_vm9, %v11655_v20  ;;  %vm11545_vm9 = vcmp.eq.s32.totalorder %v6772_v30, %v6510_v17  ;;  %vm11544_vm8 = vcmp.eq.s32.totalorder %v6772_v30, %v6513_v18  ;;  %v399_v37 = vrot.slane %v6481_v7, %v398_v32 }
  0x98   : > { %5447 = vmatpush1.msk.msra.mxu0 %vm11533_vm10, %v11655_v20  ;;  %5479 = vmatpush1.msk.msra.mxu1 %vm11532_vm11, %v11655_v20  ;;  %vm11547_vm11 = vcmp.eq.s32.totalorder %v6787_v31, %v6504_v15  ;;  %vm11546_vm10 = vcmp.eq.s32.totalorder %v6787_v31, %v6507_v16  ;;  %v387_v38 = vrot.slane %v6481_v7, %v386_v33 }
  0x99   : > { %5448 = vmatprep.subr.msk.mxu0 %vm11535_vm12, %v11655_v20  ;;  %5480 = vmatprep.subr.msk.mxu1 %vm11534_vm13, %v11655_v20  ;;  %v395_v39 = vrot.slane %v6481_v7, %v11623_v34  ;;  %vm11549_vm13 = vcmp.eq.s32.totalorder %v6787_v31, %v6510_v17  ;;  %vm11548_vm12 = vcmp.eq.s32.totalorder %v6787_v31, %v6513_v18  ;;  %v11832_v7 = vmov 0 }
  0x9a   : > { %5449 = vmatpush1.msk.msra.mxu0 %vm11537_vm14, %v11655_v20  ;;  %5481 = vmatpush1.msk.msra.mxu1 %vm11536_vm15, %v11655_v20  ;;  %vm11551_vm15 = vcmp.eq.s32.totalorder %v6817_v35, %v6504_v15  ;;  %vm11550_vm14 = vcmp.eq.s32.totalorder %v6817_v35, %v6507_v16  ;;  %v6906_v40 = vrot.slane %v391_v36, %v6476_v3  ;;  %v11852_v36 = vmov 0 }
  0x9b   : > { %5450 = vmatprep.subr.msk.mxu0 %vm11539_vm3, %v11655_v20  ;;  %5482 = vmatprep.subr.msk.mxu1 %vm11538_vm2, %v11655_v20  ;;  %vm11553_vm2 = vcmp.eq.s32.totalorder %v6817_v35, %v6510_v17  ;;  %vm11552_vm3 = vcmp.eq.s32.totalorder %v6817_v35, %v6513_v18  ;;  %v6909_v41 = vrot.slane %v399_v37, %v6476_v3  ;;  %v11855_v37 = vmov 0 }
  0x9c   : > { %5451 = vmatpush1.msk.msra.mxu0 %vm11541_vm5, %v11655_v20  ;;  %5483 = vmatpush1.msk.msra.mxu1 %vm11540_vm4, %v11655_v20  ;;  %vm11559_vm4 = vcmp.eq.s32.totalorder %v6473_v2, %v6504_v15  ;;  %11789 = vst [vmem:[#allocation36_spill] sm:$0xff] %v6906_v40  ;;  %vm11556_vm5 = vcmp.eq.s32.totalorder %v6473_v2, %v6507_v16  ;;  %v11888_v34 = vmov 0  ;;  %v11947_v16 = vmov 0 }
  0x9d   : > { %5452 = vmatprep.subr.msk.mxu0 %vm11543_vm7, %v11655_v20  ;;  %5484 = vmatprep.subr.msk.mxu1 %vm11542_vm6, %v11655_v20  ;;  %11790 = vst [vmem:[#allocation37_spill] sm:$0xff] %v6909_v41  ;;  %v6922_v42 = vrot.slane %v387_v38, %v6476_v3  ;;  %v6925_v43 = vrot.slane %v395_v39, %v6476_v3  ;;  %v11861_v38 = vmov 0  ;;  %v11867_v39 = vmov 0 }
  0x9e   : > { %5453 = vmatpush1.msk.msra.mxu0 %vm11545_vm9, %v11655_v20  ;;  %5485 = vmatpush1.msk.msra.mxu1 %vm11544_vm8, %v11655_v20  ;;  %vm11565_vm6 = vcmp.eq.s32.totalorder %v6473_v2, %v6510_v17  ;;  %vm11562_vm7 = vcmp.eq.s32.totalorder %v6473_v2, %v6513_v18  ;;  %vm11555_vm8 = vcmp.eq.s32.totalorder %v6484_v8, %v6906_v40  ;;  %v11922_v18 = vmov 0 }
  0x9f   : > { %5454 = vmatprep.subr.msk.mxu0 %vm11547_vm11, %v11655_v20  ;;  %5486 = vmatprep.subr.msk.mxu1 %vm11546_vm10, %v11655_v20  ;;  %11791 = vst [vmem:[#allocation38_spill] sm:$0xff] %v6922_v42  ;;  %11792 = vst [vmem:[#allocation39_spill] sm:$0xff] %v6925_v43  ;;  %vm11554_vm9 = vcmp.eq.s32.totalorder %v6484_v8, %v6909_v41  ;;  %vm11558_vm10 = vcmp.eq.s32.totalorder %v6484_v8, %v6922_v42  ;;  %v11928_v17 = vmov 0  ;;  %v11954_v15 = vmov 0 }
  0xa0   : > { %5455 = vmatpush1.msk.msra.mxu0 %vm11549_vm13, %v11655_v20  ;;  %5487 = vmatpush1.msk.msra.mxu1 %vm11548_vm12, %v11655_v20  ;;  %vm11557_vm11 = vcmp.eq.s32.totalorder %v6484_v8, %v6925_v43  ;;  %v6979_v46 = vrot.slane %v6940_v44, %v374_v4  ;;  %vm11561_vm12 = vcmp.eq.s32.totalorder %v6498_v13, %v6906_v40  ;;  %v11817_v4 = vmov 0 }
  0xa1   : > { %5456 = vmatprep.subr.msk.mxu0 %vm11551_vm15, %v11655_v20  ;;  %5488 = vmatprep.subr.msk.mxu1 %vm11550_vm14, %v11655_v20  ;;  %vm11560_vm13 = vcmp.eq.s32.totalorder %v6498_v13, %v6909_v41  ;;  %vm11567_vm14 = vcmp.eq.s32.totalorder %v6501_v14, %v6906_v40  ;;  %vm11564_vm15 = vcmp.eq.s32.totalorder %v6498_v13, %v6922_v42 }
  0xa2   : > { %5457 = vmatpush1.msk.msra.mxu0 %vm11553_vm2, %v11655_v20  ;;  %5489 = vmatpush1.msk.msra.mxu1 %vm11552_vm3, %v11655_v20  ;;  %vm11563_vm3 = vcmp.eq.s32.totalorder %v6498_v13, %v6925_v43  ;;  %vm11566_vm2 = vcmp.eq.s32.totalorder %v6501_v14, %v6909_v41  ;;  %vm11585_vm1 = vcmp.eq.s32.totalorder %v6609_v23, %v6906_v40 }
  0xa3   : > { %5458 = vmatprep.subr.msk.mxu0 %vm11559_vm4, %v11655_v20  ;;  %5490 = vmatprep.subr.msk.mxu1 %vm11556_vm5, %v11655_v20  ;;  %vm11573_vm5 = vcmp.eq.s32.totalorder %v6516_v19, %v6906_v40  ;;  %vm11574_vm4 = vcmp.eq.s32.totalorder %v6516_v19, %v6925_v43  ;;  %vm11586_vm0 = vcmp.eq.s32.totalorder %v6609_v23, %v6925_v43 }
  0xa4   : > { %5459 = vmatpush1.msk.msra.mxu0 %vm11565_vm6, %v11655_v20  ;;  %5491 = vmatpush1.msk.msra.mxu1 %vm11562_vm7, %v11655_v20  ;;  %vm11579_vm7 = vcmp.eq.s32.totalorder %v6539_v21, %v6922_v42  ;;  %vm11580_vm6 = vcmp.eq.s32.totalorder %v6582_v22, %v6909_v41  ;;  %v7155_v47 = vrot.slane %v6979_v46, %v6476_v3  ;;  %v11873_v46 = vmov 0 }
  0xa5   : > { %1350 = vmatmul.mubr.f32.vlgmr.msra.gmra.mxu0 %v6950_v45  ;;  %1439 = vmatmul.mubr.f32.vlgmr.msra.gmra.mxu1 %v6950_v45  ;;  %v415_v48 = vrot.slane %v6940_v44, %v382_v5  ;;  %v403_v49 = vrot.slane %v6940_v44, %v6476_v3  ;;  %v411_v50 = vrot.slane %v6940_v44, %v378_v6  ;;  %v11823_v5 = vmov 0 }
  0xa6   : > { %5492 = vmatprep.subr.msk.mxu0 %vm11555_vm8, %v11655_v20  ;;  %5524 = vmatprep.subr.msk.mxu1 %vm11554_vm9, %v11655_v20  ;;  %vm11570_vm9 = vcmp.eq.s32.totalorder %v6501_v14, %v6922_v42  ;;  %vm11569_vm8 = vcmp.eq.s32.totalorder %v6501_v14, %v6925_v43  ;;  %v11826_v6 = vmov 0 }
  0xa7   : > { %5493 = vmatpush1.msk.msra.mxu0 %vm11558_vm10, %v11655_v20  ;;  %5525 = vmatpush1.msk.msra.mxu1 %vm11557_vm11, %v11655_v20  ;;  %vm11572_vm11 = vcmp.eq.s32.totalorder %v6516_v19, %v6909_v41  ;;  %vm11575_vm10 = vcmp.eq.s32.totalorder %v6516_v19, %v6922_v42  ;;  %v7186_v51 = vrot.slane %v415_v48, %v6476_v3  ;;  %v11879_v48 = vmov 0 }
  0xa8   : > { %5494 = vmatprep.subr.msk.mxu0 %vm11561_vm12, %v11655_v20  ;;  %5526 = vmatprep.subr.msk.mxu1 %vm11560_vm13, %v11655_v20  ;;  %vm11577_vm13 = vcmp.eq.s32.totalorder %v6539_v21, %v6906_v40  ;;  %vm11576_vm12 = vcmp.eq.s32.totalorder %v6539_v21, %v6909_v41  ;;  %v7201_v52 = vrot.slane %v403_v49, %v6476_v3  ;;  %v11883_v49 = vmov 0 }
  0xa9   : > { %5495 = vmatpush1.msk.msra.mxu0 %vm11564_vm15, %v11655_v20  ;;  %5527 = vmatpush1.msk.msra.mxu1 %vm11563_vm3, %v11655_v20  ;;  %vm11578_vm3 = vcmp.eq.s32.totalorder %v6539_v21, %v6925_v43  ;;  %vm11581_vm15 = vcmp.eq.s32.totalorder %v6582_v22, %v6906_v40  ;;  %v7204_v53 = vrot.slane %v411_v50, %v6476_v3 }
  0xaa   : > { %5496 = vmatprep.subr.msk.mxu0 %vm11567_vm14, %v11655_v20  ;;  %5528 = vmatprep.subr.msk.mxu1 %vm11566_vm2, %v11655_v20  ;;  %vm11583_vm2 = vcmp.eq.s32.totalorder %v6582_v22, %v6922_v42  ;;  %vm11582_vm14 = vcmp.eq.s32.totalorder %v6582_v22, %v6925_v43  ;;  %v423_v50 = vrot.slane %v6940_v44, %v390_v29 }
  0xab   : > { %5497 = vmatpush1.msk.msra.mxu0 %vm11570_vm9, %v11655_v20  ;;  %5529 = vmatpush1.msk.msra.mxu1 %vm11569_vm8, %v11655_v20  ;;  %vm11584_vm8 = vcmp.eq.s32.totalorder %v6609_v23, %v6909_v41  ;;  %vm11591_vm9 = vcmp.eq.s32.totalorder %v6636_v24, %v6922_v42  ;;  %v431_v29 = vrot.slane %v6940_v44, %v398_v32 }
  0xac   : > { %5498 = vmatprep.subr.msk.mxu0 %vm11573_vm5, %v11655_v20  ;;  %5530 = vmatprep.subr.msk.mxu1 %vm11572_vm11, %v11655_v20  ;;  %vm11587_vm11 = vcmp.eq.s32.totalorder %v6636_v24, %v6906_v40  ;;  %vm11592_vm5 = vcmp.eq.s32.totalorder %v6663_v25, %v6909_v41  ;;  %v419_v32 = vrot.slane %v6940_v44, %v386_v33  ;;  %v11901_v33 = vsub.s32 6, %v6473_v2 }
  0xad   : > { %5499 = vmatpush1.msk.msra.mxu0 %vm11575_vm10, %v11655_v20  ;;  %5531 = vmatpush1.msk.msra.mxu1 %vm11574_vm4, %v11655_v20  ;;  %vm11590_vm4 = vcmp.eq.s32.totalorder %v6636_v24, %v6925_v43  ;;  %vm11599_vm10 = vcmp.eq.s32.totalorder %v6690_v26, %v6906_v40 }
  0xae   : > { %5500 = vmatprep.subr.msk.mxu0 %vm11577_vm13, %v11655_v20  ;;  %5532 = vmatprep.subr.msk.mxu1 %vm11576_vm12, %v11655_v20  ;;  %vm11595_vm12 = vcmp.eq.s32.totalorder %v6663_v25, %v6922_v42  ;;  %vm11606_vm13 = vcmp.eq.s32.totalorder %v6690_v26, %v6925_v43 }
  0xaf   : > { %5501 = vmatpush1.msk.msra.mxu0 %vm11579_vm7, %v11655_v20  ;;  %5533 = vmatpush1.msk.msra.mxu1 %vm11578_vm3, %v11655_v20  ;;  %vm11600_vm3 = vcmp.eq.s32.totalorder %v6690_v26, %v6909_v41  ;;  %vm11605_vm7 = vcmp.eq.s32.totalorder %v6690_v26, %v6922_v42 }
  0xb0   : > { %5502 = vmatprep.subr.msk.mxu0 %vm11581_vm15, %v11655_v20  ;;  %5534 = vmatprep.subr.msk.mxu1 %vm11580_vm6, %v11655_v20  ;;  %vm11609_vm6 = vcmp.eq.s32.totalorder %v6717_v27, %v6906_v40  ;;  %vm11610_vm15 = vcmp.eq.s32.totalorder %v6717_v27, %v6909_v41 }
  0xb1   : > { %5503 = vmatpush1.msk.msra.mxu0 %vm11583_vm2, %v11655_v20  ;;  %5535 = vmatpush1.msk.msra.mxu1 %vm11582_vm14, %v11655_v20  ;;  %vm11793_vm14 = vcmp.eq.s32.totalorder %v6609_v23, %v6922_v42  ;;  %vm11589_vm2 = vcmp.eq.s32.totalorder %v6484_v8, %v7155_v47 }
  0xb2   : > { %5504 = vmatprep.subr.msk.mxu0 %vm11585_vm1, %v11655_v20  ;;  %5536 = vmatprep.subr.msk.mxu1 %vm11584_vm8, %v11655_v20  ;;  %vm11588_vm8 = vcmp.eq.s32.totalorder %v6498_v13, %v7155_v47  ;;  %vm11602_vm1 = vcmp.eq.s32.totalorder %v6516_v19, %v7155_v47 }
  0xb3   : > { %5505 = vmatpush1.msk.msra.mxu0 %vm11793_vm14, %v11655_v20  ;;  %5537 = vmatpush1.msk.msra.mxu1 %vm11586_vm0, %v11655_v20  ;;  %vm11794_vm14 = vcmp.eq.s32.totalorder %v6636_v24, %v6909_v41  ;;  %vm7212_vm0 = vmpackc.low %vm11589_vm2, %vm11588_vm8  ;;  %vm11593_vm8 = vcmp.eq.s32.totalorder %v6498_v13, %v7186_v51  ;;  %vm11797_vm2 = vcmp.eq.s32.totalorder %v6663_v25, %v6906_v40 }
  0xb4   : > { %5506 = vmatprep.subr.msk.mxu0 %vm11587_vm11, %v11655_v20  ;;  %5538 = vmatprep.subr.msk.mxu1 %vm11794_vm14, %v11655_v20  ;;  %vm11594_vm11 = vcmp.eq.s32.totalorder %v6484_v8, %v7186_v51  ;;  %vm11596_vm14 = vcmp.eq.s32.totalorder %v6498_v13, %v7201_v52 }
  0xb5   : > { %5507 = vmatpush1.msk.msra.mxu0 %vm11591_vm9, %v11655_v20  ;;  %5539 = vmatpush1.msk.msra.mxu1 %vm11590_vm4, %v11655_v20  ;;  %vm11597_vm9 = vcmp.eq.s32.totalorder %v6484_v8, %v7201_v52  ;;  %vm11603_vm4 = vcmp.eq.s32.totalorder %v6501_v14, %v7155_v47 }
  0xb6   : > { %5508 = vmatprep.subr.msk.mxu0 %vm11797_vm2, %v11655_v20  ;;  %5540 = vmatprep.subr.msk.mxu1 %vm11592_vm5, %v11655_v20  ;;  %vm7250_vm2 = vmpackc.low %vm11594_vm11, %vm11593_vm8  ;;  %vm11800_vm5 = vcmp.eq.s32.totalorder %v6663_v25, %v6925_v43  ;;  %vm11601_vm8 = vcmp.eq.s32.totalorder %v6484_v8, %v7204_v53  ;;  %vm11598_vm11 = vcmp.eq.s32.totalorder %v6498_v13, %v7204_v53 }
  0xb7   : > { %5509 = vmatpush1.msk.msra.mxu0 %vm11595_vm12, %v11655_v20  ;;  %5541 = vmatpush1.msk.msra.mxu1 %vm11800_vm5, %v11655_v20  ;;  %vm7276_vm12 = vmpackc.low %vm11597_vm9, %vm11596_vm14  ;;  %vm11607_vm5 = vcmp.eq.s32.totalorder %v6501_v14, %v7186_v51  ;;  %vm11608_vm9 = vcmp.eq.s32.totalorder %v6516_v19, %v7201_v52 }
  0xb8   : > { %1355 = vmatprep.mubr.f32.mxu0 %v11624_v1  ;;  %1444 = vmatprep.mubr.f32.mxu1 %v11624_v1  ;;  %vm7294_vm14 = vmpackc.low %vm11601_vm8, %vm11598_vm11  ;;  %vm11604_vm11 = vcmp.eq.s32.totalorder %v6516_v19, %v7186_v51  ;;  %vm11611_vm8 = vcmp.eq.s32.totalorder %v6501_v14, %v7201_v52 }
  0xb9   : > { %5510 = vmatprep.subr.msk.mxu0 %vm11599_vm10, %v11655_v20  ;;  %5542 = vmatprep.subr.msk.mxu1 %vm11600_vm3, %v11655_v20  ;;  %vm7318_vm10 = vmpackc.low %vm11603_vm4, %vm11602_vm1  ;;  %vm11613_vm3 = vcmp.eq.s32.totalorder %v6501_v14, %v7204_v53  ;;  %vm11835_vm4 = vcmp.eq.s32.totalorder %v6772_v30, %v6909_v41 }
  0xba   : > { %1356 = vmatmul.mubr.f32.gmra.mxu0 %v7262_v56  ;;  %1445 = vmatmul.mubr.f32.gmra.mxu1 %v7262_v56  ;;  %vm7336_vm1 = vmpackc.low %vm11607_vm5, %vm11604_vm11  ;;  %vm11612_vm11 = vcmp.eq.s32.totalorder %v6516_v19, %v7204_v53  ;;  %vm11615_vm5 = vcmp.eq.s32.totalorder %v6539_v21, %v7155_v47 }
  0xbb   : > { %5511 = vmatpush1.msk.msra.mxu0 %vm11605_vm7, %v11655_v20  ;;  %5543 = vmatpush1.msk.msra.mxu1 %vm11606_vm13, %v11655_v20  ;;  %vm7360_vm7 = vmpackc.low %vm11611_vm8, %vm11608_vm9  ;;  %vm11614_vm9 = vcmp.eq.s32.totalorder %v6582_v22, %v7155_v47  ;;  %vm11814_vm8 = vcmp.eq.s32.totalorder %v6717_v27, %v6925_v43  ;;  %vm11829_vm13 = vcmp.eq.s32.totalorder %v6744_v28, %v6925_v43 }
  0xbc   : > { %5512 = vmatprep.subr.msk.mxu0 %vm11609_vm6, %v11655_v20  ;;  %5544 = vmatprep.subr.msk.mxu1 %vm11610_vm15, %v11655_v20  ;;  %vm7384_vm6 = vmpackc.low %vm11613_vm3, %vm11612_vm11  ;;  %vm11813_vm15 = vcmp.eq.s32.totalorder %v6717_v27, %v6922_v42  ;;  %vm11617_vm11 = vcmp.eq.s32.totalorder %v6539_v21, %v7186_v51  ;;  %vm11616_vm3 = vcmp.eq.s32.totalorder %v6582_v22, %v7186_v51 }
  0xbd   : > { %5513 = vmatpush1.msk.msra.mxu0 %vm11813_vm15, %v11655_v20  ;;  %5545 = vmatpush1.msk.msra.mxu1 %vm11814_vm8, %v11655_v20  ;;  %vm7410_vm15 = vmpackc.low %vm11615_vm5, %vm11614_vm9  ;;  %vm11819_vm5 = vcmp.eq.s32.totalorder %v6744_v28, %v6906_v40  ;;  %vm11820_vm8 = vcmp.eq.s32.totalorder %v6744_v28, %v6909_v41 }
  0xbe   : > { %1361 = vmatprep.mubr.f32.mxu0 %v11624_v1  ;;  %1450 = vmatprep.mubr.f32.mxu1 %v11624_v1  ;;  %vm7428_vm9 = vmpackc.low %vm11617_vm11, %vm11616_vm3  ;;  %vm11618_vm3 = vcmp.eq.s32.totalorder %v6582_v22, %v7204_v53  ;;  %vm11821_vm11 = vcmp.eq.s32.totalorder %v6582_v22, %v7201_v52 }
  0xbf   : > { %v11818_v4 = vsel %vm7428_vm9, 4294967295, %v11817_v4  ;;  %5514 = vmatprep.subr.msk.mxu0 %vm11819_vm5, %v11655_v20  ;;  %5546 = vmatprep.subr.msk.mxu1 %vm11820_vm8, %v11655_v20  ;;  %vm11822_vm5 = vcmp.eq.s32.totalorder %v6539_v21, %v7201_v52  ;;  %vm11828_vm8 = vcmp.eq.s32.totalorder %v6744_v28, %v6922_v42 }
  0xc0   : > { %vm7452_vm9 = vmpackc.low %vm11822_vm5, %vm11821_vm11  ;;  %1362 = vmatmul.mubr.f32.gmra.mxu0 %v7396_v63  ;;  %1451 = vmatmul.mubr.f32.gmra.mxu1 %v7396_v63  ;;  %vm11825_vm11 = vcmp.eq.s32.totalorder %v6539_v21, %v7204_v53 }
  0xc1   : > { %v11824_v5 = vsel %vm7452_vm9, 4294967295, %v11823_v5  ;;  %vm7470_vm5 = vmpackc.low %vm11825_vm11, %vm11618_vm3  ;;  %5515 = vmatpush1.msk.msra.mxu0 %vm11828_vm8, %v11655_v20  ;;  %5547 = vmatpush1.msk.msra.mxu1 %vm11829_vm13, %v11655_v20  ;;  %vm11830_vm3 = vcmp.eq.s32.totalorder %v6636_v24, %v7155_v47  ;;  %vm11831_vm8 = vcmp.eq.s32.totalorder %v6609_v23, %v7155_v47  ;;  %vm11834_vm13 = vcmp.eq.s32.totalorder %v6772_v30, %v6906_v40 }
  0xc2   : > { %v11827_v6 = vsel %vm7470_vm5, 4294967295, %v11826_v6  ;;  %vm7494_vm5 = vmpackc.low %vm11831_vm8, %vm11830_vm3  ;;  %5516 = vmatprep.subr.msk.mxu0 %vm11834_vm13, %v11655_v20  ;;  %5548 = vmatprep.subr.msk.mxu1 %vm11835_vm4, %v11655_v20  ;;  %vm11619_vm3 = vcmp.eq.s32.totalorder %v6636_v24, %v7201_v52  ;;  %vm11836_vm8 = vcmp.eq.s32.totalorder %v6636_v24, %v7186_v51  ;;  %vm11837_vm13 = vcmp.eq.s32.totalorder %v6609_v23, %v7186_v51 }
  0xc3   : > { %v11833_v7 = vsel %vm7494_vm5, 4294967295, %v11832_v7  ;;  %vm7518_vm5 = vmpackc.low %vm11837_vm13, %vm11836_vm8  ;;  %vm11840_vm4 = vcmp.eq.s32.totalorder %v6772_v30, %v6922_v42  ;;  %vm11841_vm9 = vcmp.eq.s32.totalorder %v6772_v30, %v6925_v43  ;;  %vm11620_vm13 = vcmp.eq.s32.totalorder %v6636_v24, %v7204_v53  ;;  %1367 = vmatprep.mubr.f32.mxu0 %v11624_v1  ;;  %1456 = vmatprep.mubr.f32.mxu1 %v11624_v1 }
  0xc4   : > { %v11839_v9 = vsel %vm7518_vm5, 4294967295, %v11838_v9  ;;  %5517 = vmatpush1.msk.msra.mxu0 %vm11840_vm4, %v11655_v20  ;;  %5549 = vmatpush1.msk.msra.mxu1 %vm11841_vm9, %v11655_v20  ;;  %vm11842_vm4 = vcmp.eq.s32.totalorder %v6609_v23, %v7201_v52  ;;  %vm11848_vm9 = vcmp.eq.s32.totalorder %v6787_v31, %v6906_v40  ;;  %vm11849_vm11 = vcmp.eq.s32.totalorder %v6787_v31, %v6909_v41 }
  0xc5   : > { %vm7544_vm5 = vmpackc.low %vm11842_vm4, %vm11619_vm3  ;;  %vm11845_vm4 = vcmp.eq.s32.totalorder %v6609_v23, %v7204_v53  ;;  %5518 = vmatprep.subr.msk.mxu0 %vm11848_vm9, %v11655_v20  ;;  %5550 = vmatprep.subr.msk.mxu1 %vm11849_vm11, %v11655_v20  ;;  %vm11851_vm9 = vcmp.eq.s32.totalorder %v6663_v25, %v7155_v47  ;;  %vm11857_vm11 = vcmp.eq.s32.totalorder %v6787_v31, %v6922_v42 }
  0xc6   : > { %v11844_v11 = vsel %vm7544_vm5, 4294967295, %v11843_v11  ;;  %vm7562_vm3 = vmpackc.low %vm11845_vm4, %vm11620_vm13  ;;  %vm11621_vm4 = vcmp.eq.s32.totalorder %v6690_v26, %v7186_v51  ;;  %vm11850_vm13 = vcmp.eq.s32.totalorder %v6690_v26, %v7155_v47  ;;  %1368 = vmatmul.mubr.f32.gmra.mxu0 %v7530_v10  ;;  %1457 = vmatmul.mubr.f32.gmra.mxu1 %v7530_v10  ;;  %vm11858_vm8 = vcmp.eq.s32.totalorder %v6787_v31, %v6925_v43 }
  0xc7   : > { %v11847_v12 = vsel %vm7562_vm3, 4294967295, %v11846_v12  ;;  %vm7586_vm3 = vmpackc.low %vm11851_vm9, %vm11850_vm13  ;;  %vm11854_vm13 = vcmp.eq.s32.totalorder %v6663_v25, %v7186_v51  ;;  %5519 = vmatpush1.msk.msra.mxu0 %vm11857_vm11, %v11655_v20  ;;  %5551 = vmatpush1.msk.msra.mxu1 %vm11858_vm8, %v11655_v20  ;;  %vm11860_vm11 = vcmp.eq.s32.totalorder %v6663_v25, %v7201_v52  ;;  %vm11863_vm8 = vcmp.eq.s32.totalorder %v6817_v35, %v6906_v40 }
  0xc8   : > { %v11853_v36 = vsel %vm7586_vm3, 4294967295, %v11852_v36  ;;  %vm7604_vm9 = vmpackc.low %vm11854_vm13, %vm11621_vm4  ;;  %vm11859_vm4 = vcmp.eq.s32.totalorder %v6690_v26, %v7201_v52  ;;  %5520 = vmatprep.subr.msk.mxu0 %vm11863_vm8, %v11655_v20  ;;  %vm11864_vm5 = vcmp.eq.s32.totalorder %v6817_v35, %v6909_v41  ;;  %vm11866_vm8 = vcmp.eq.s32.totalorder %v6663_v25, %v7204_v53  ;;  %1527 = vmatprep.mubr.f32.mxu0 %v11624_v1 }
  0xc9   : > { %v11856_v37 = vsel %vm7604_vm9, 4294967295, %v11855_v37  ;;  %vm7628_vm9 = vmpackc.low %vm11860_vm11, %vm11859_vm4  ;;  %5552 = vmatprep.subr.msk.mxu1 %vm11864_vm5, %v11655_v20  ;;  %vm11865_vm11 = vcmp.eq.s32.totalorder %v6690_v26, %v7204_v53  ;;  %vm11869_vm5 = vcmp.eq.s32.totalorder %v6817_v35, %v6922_v42  ;;  %vm11870_vm3 = vcmp.eq.s32.totalorder %v6817_v35, %v6925_v43  ;;  %1616 = vmatprep.mubr.f32.mxu1 %v11624_v1 }
  0xca   : > { %v11862_v38 = vsel %vm7628_vm9, 4294967295, %v11861_v38  ;;  %vm7652_vm9 = vmpackc.low %vm11866_vm8, %vm11865_vm11  ;;  %5521 = vmatpush1.msk.msra.mxu0 %vm11869_vm5, %v11655_v20  ;;  %5553 = vmatpush1.msk.msra.mxu1 %vm11870_vm3, %v11655_v20  ;;  %vm11871_vm8 = vcmp.eq.s32.totalorder %v6744_v28, %v7155_v47  ;;  %vm11872_vm5 = vcmp.eq.s32.totalorder %v6717_v27, %v7155_v47  ;;  %vm11875_vm3 = vcmp.eq.s32.totalorder %v6473_v2, %v6906_v40 }
  0xcb   : > { %v11868_v39 = vsel %vm7652_vm9, 4294967295, %v11867_v39  ;;  %vm7676_vm9 = vmpackc.low %vm11872_vm5, %vm11871_vm8  ;;  %5522 = vmatprep.subr.msk.mxu0 %vm11875_vm3, %v11655_v20  ;;  %vm11876_vm13 = vcmp.eq.s32.totalorder %v6473_v2, %v6909_v41  ;;  %vm11622_vm11 = vcmp.eq.s32.totalorder %v6744_v28, %v7201_v52  ;;  %vm11877_vm8 = vcmp.eq.s32.totalorder %v6744_v28, %v7186_v51 }
  0xcc   : > { %v11874_v46 = vsel %vm7676_vm9, 4294967295, %v11873_v46  ;;  %5554 = vmatprep.subr.msk.mxu1 %vm11876_vm13, %v11655_v20  ;;  %vm11878_vm5 = vcmp.eq.s32.totalorder %v6717_v27, %v7186_v51  ;;  %vm11881_vm13 = vcmp.eq.s32.totalorder %v6473_v2, %v6922_v42  ;;  %vm11626_vm4 = vcmp.eq.s32.totalorder %v6787_v31, %v7155_v47 }
  0xcd   : > { %vm7698_vm9 = vmpackc.low %vm11878_vm5, %vm11877_vm8  ;;  %5523 = vmatpush1.msk.msra.mxu0 %vm11881_vm13, %v11655_v20  ;;  %vm11882_vm8 = vcmp.eq.s32.totalorder %v6717_v27, %v7201_v52  ;;  %vm11885_vm13 = vcmp.eq.s32.totalorder %v6473_v2, %v6925_v43  ;;  %v11891_v1 = vmov 0  ;;  %vm11894_vm3 = vcmp.eq.s32.totalorder %v6484_v8, %v7186_v51 }
  0xce   : > { %v11880_v48 = vsel %vm7698_vm9, 4294967295, %v11879_v48  ;;  %vm7717_vm5 = vmpackc.low %vm11882_vm8, %vm11622_vm11  ;;  %5555 = vmatpush1.msk.msra.mxu1 %vm11885_vm13, %v11655_v20  ;;  %vm11886_vm8 = vcmp.eq.s32.totalorder %v6744_v28, %v7204_v53  ;;  %vm11887_vm11 = vcmp.eq.s32.totalorder %v6717_v27, %v7204_v53  ;;  %1528 = vmatmul.mubr.f32.vlgmr.msra.gmra.mxu0 %v6950_v45  ;;  %vm11893_vm13 = vcmp.eq.s32.totalorder %v6484_v8, %v7155_v47 }
  0xcf   : > { %v11884_v49 = vsel %vm7717_vm5, 4294967295, %v11883_v49  ;;  %vm7739_vm5 = vmpackc.low %vm11887_vm11, %vm11886_vm8  ;;  %1617 = vmatmul.mubr.f32.vlgmr.msra.gmra.mxu1 %v6950_v45  ;;  %vm11890_vm11 = vcmp.eq.s32.totalorder %v6772_v30, %v7155_v47  ;;  %5556 = vmatprep.subr.msk.mxu0 %vm11893_vm13, %v11655_v20  ;;  %vm11896_vm13 = vcmp.eq.s32.totalorder %v6772_v30, %v7186_v51  ;;  %v11897_v41 = vmov 0 }
  0xd0   : > { %v11889_v34 = vsel %vm7739_vm5, 4294967295, %v11888_v34  ;;  %vm7758_vm8 = vmpackc.low %vm11890_vm11, %vm11626_vm4  ;;  %5588 = vmatprep.subr.msk.mxu1 %vm11894_vm3, %v11655_v20  ;;  %vm11895_vm11 = vcmp.eq.s32.totalorder %v6787_v31, %v7186_v51  ;;  %vm11899_vm3 = vcmp.eq.s32.totalorder %v6484_v8, %v7201_v52  ;;  %vm11900_vm5 = vcmp.eq.s32.totalorder %v6484_v8, %v7204_v53 }
  0xd1   : > { %v11892_v1 = vsel %vm7758_vm8, 4294967295, %v11891_v1  ;;  %vm7783_vm4 = vmpackc.low %vm11896_vm13, %vm11895_vm11  ;;  %5557 = vmatpush1.msk.msra.mxu0 %vm11899_vm3, %v11655_v20  ;;  %5589 = vmatpush1.msk.msra.mxu1 %vm11900_vm5, %v11655_v20  ;;  %v427_v40 = vrot.slane %v6940_v44, %v11901_v33  ;;  %vm11902_vm11 = vcmp.eq.s32.totalorder %v6787_v31, %v7201_v52  ;;  %vm11903_vm13 = vcmp.eq.s32.totalorder %v6772_v30, %v7201_v52 }
  0xd2   : > { %v11898_v41 = vsel %vm7783_vm4, 4294967295, %v11897_v41  ;;  %vm7808_vm3 = vmpackc.low %vm11903_vm13, %vm11902_vm11  ;;  %v11904_v43 = vmov 0  ;;  %vm11906_vm5 = vcmp.eq.s32.totalorder %v6498_v13, %v7155_v47  ;;  %vm11907_vm9 = vcmp.eq.s32.totalorder %v6498_v13, %v7186_v51 }
  0xd3   : > { %v11905_v43 = vsel %vm7808_vm3, 4294967295, %v11904_v43  ;;  %5558 = vmatprep.subr.msk.mxu0 %vm11906_vm5, %v11655_v20  ;;  %5590 = vmatprep.subr.msk.mxu1 %vm11907_vm9, %v11655_v20  ;;  %v7825_v44 = vrot.slane %v423_v50, %v6476_v3  ;;  %vm11908_vm11 = vcmp.eq.s32.totalorder %v6787_v31, %v7204_v53  ;;  %vm11909_vm13 = vcmp.eq.s32.totalorder %v6772_v30, %v7204_v53 }
  0xd4   : > { %vm7833_vm5 = vmpackc.low %vm11909_vm13, %vm11908_vm11  ;;  %v11910_v33 = vmov 0  ;;  %vm11912_vm9 = vcmp.eq.s32.totalorder %v6498_v13, %v7201_v52  ;;  %vm11913_vm8 = vcmp.eq.s32.totalorder %v6498_v13, %v7204_v53  ;;  %v7850_v50 = vrot.slane %v431_v29, %v6476_v3 }
  0xd5   : > { %v11911_v33 = vsel %vm7833_vm5, 4294967295, %v11910_v33  ;;  %5559 = vmatpush1.msk.msra.mxu0 %vm11912_vm9, %v11655_v20  ;;  %5591 = vmatpush1.msk.msra.mxu1 %vm11913_vm8, %v11655_v20  ;;  %vm11914_vm11 = vcmp.eq.s32.totalorder %v6473_v2, %v7155_v47  ;;  %vm11915_vm13 = vcmp.eq.s32.totalorder %v6817_v35, %v7155_v47  ;;  %v11916_v42 = vmov 0 }
  0xd6   : > { %vm7858_vm9 = vmpackc.low %vm11915_vm13, %vm11914_vm11  ;;  %vm11918_vm8 = vcmp.eq.s32.totalorder %v6501_v14, %v7155_v47  ;;  %vm11919_vm4 = vcmp.eq.s32.totalorder %v6501_v14, %v7186_v51  ;;  %v7875_v29 = vrot.slane %v419_v32, %v6476_v3  ;;  %vm11920_vm11 = vcmp.eq.s32.totalorder %v6473_v2, %v7186_v51 }
  0xd7   : > { %v11917_v42 = vsel %vm7858_vm9, 4294967295, %v11916_v42  ;;  %5560 = vmatprep.subr.msk.mxu0 %vm11918_vm8, %v11655_v20  ;;  %5592 = vmatprep.subr.msk.mxu1 %vm11919_vm4, %v11655_v20  ;;  %vm11921_vm13 = vcmp.eq.s32.totalorder %v6817_v35, %v7186_v51  ;;  %vm11924_vm4 = vcmp.eq.s32.totalorder %v6501_v14, %v7201_v52  ;;  %vm11925_vm3 = vcmp.eq.s32.totalorder %v6501_v14, %v7204_v53 }
  0xd8   : > { %vm7883_vm8 = vmpackc.low %vm11921_vm13, %vm11920_vm11  ;;  %5561 = vmatpush1.msk.msra.mxu0 %vm11924_vm4, %v11655_v20  ;;  %5593 = vmatpush1.msk.msra.mxu1 %vm11925_vm3, %v11655_v20  ;;  %v7900_v32 = vrot.slane %v427_v40, %v6476_v3  ;;  %vm11926_vm11 = vcmp.eq.s32.totalorder %v6473_v2, %v7201_v52  ;;  %vm11927_vm13 = vcmp.eq.s32.totalorder %v6817_v35, %v7201_v52  ;;  %v11934_v3 = vmov 0 }
  0xd9   : > { %v11923_v18 = vsel %vm7883_vm8, 4294967295, %v11922_v18  ;;  %vm7908_vm4 = vmpackc.low %vm11927_vm13, %vm11926_vm11  ;;  %vm11930_vm3 = vcmp.eq.s32.totalorder %v6516_v19, %v7155_v47  ;;  %vm11931_vm5 = vcmp.eq.s32.totalorder %v6516_v19, %v7186_v51  ;;  %vm11932_vm11 = vcmp.eq.s32.totalorder %v6473_v2, %v7204_v53 }
  0xda   : > { %v11929_v17 = vsel %vm7908_vm4, 4294967295, %v11928_v17  ;;  %5562 = vmatprep.subr.msk.mxu0 %vm11930_vm3, %v11655_v20  ;;  %5594 = vmatprep.subr.msk.mxu1 %vm11931_vm5, %v11655_v20  ;;  %vm11933_vm13 = vcmp.eq.s32.totalorder %v6817_v35, %v7204_v53  ;;  %vm11936_vm5 = vcmp.eq.s32.totalorder %v6516_v19, %v7201_v52  ;;  %vm11937_vm3 = vcmp.eq.s32.totalorder %v6516_v19, %v7204_v53 }
  0xdb   : > { %vm7930_vm4 = vmpackc.low %vm11933_vm13, %vm11932_vm11  ;;  %5563 = vmatpush1.msk.msra.mxu0 %vm11936_vm5, %v11655_v20  ;;  %5595 = vmatpush1.msk.msra.mxu1 %vm11937_vm3, %v11655_v20  ;;  %vm11938_vm11 = vcmp.eq.s32.totalorder %v6498_v13, %v7825_v44  ;;  %vm11939_vm13 = vcmp.eq.s32.totalorder %v6484_v8, %v7825_v44  ;;  %v11940_v40 = vmov 0  ;;  %vm11943_vm5 = vcmp.eq.s32.totalorder %v6539_v21, %v7155_v47 }
  0xdc   : > { %v11935_v3 = vsel %vm7930_vm4, 4294967295, %v11934_v3  ;;  %vm7952_vm4 = vmpackc.low %vm11939_vm13, %vm11938_vm11  ;;  %5564 = vmatprep.subr.msk.mxu0 %vm11943_vm5, %v11655_v20  ;;  %vm11944_vm3 = vcmp.eq.s32.totalorder %v6539_v21, %v7186_v51  ;;  %vm11945_vm11 = vcmp.eq.s32.totalorder %v6498_v13, %v7850_v50  ;;  %vm11946_vm13 = vcmp.eq.s32.totalorder %v6484_v8, %v7850_v50 }
  0xdd   : > { %v11941_v40 = vsel %vm7952_vm4, 4294967295, %v11940_v40  ;;  %5596 = vmatprep.subr.msk.mxu1 %vm11944_vm3, %v11655_v20  ;;  %vm7974_vm4 = vmpackc.low %vm11946_vm13, %vm11945_vm11  ;;  %vm11950_vm5 = vcmp.eq.s32.totalorder %v6539_v21, %v7201_v52  ;;  %vm11951_vm3 = vcmp.eq.s32.totalorder %v6539_v21, %v7204_v53  ;;  %vm11952_vm11 = vcmp.eq.s32.totalorder %v6498_v13, %v7875_v29 }
  0xde   : > { %11942 = vst [vmem:[#allocation40_spill] sm:$0xff] %v11941_v40  ;;  %v11948_v16 = vsel %vm7974_vm4, 4294967295, %v11947_v16  ;;  %5565 = vmatpush1.msk.msra.mxu0 %vm11950_vm5, %v11655_v20  ;;  %5597 = vmatpush1.msk.msra.mxu1 %vm11951_vm3, %v11655_v20  ;;  %vm11953_vm13 = vcmp.eq.s32.totalorder %v6484_v8, %v7875_v29  ;;  %vm11957_vm5 = vcmp.eq.s32.totalorder %v6582_v22, %v7155_v47  ;;  %v12012_v40 = vmov 0 }
  0xdf   : > { %11949 = vst [vmem:[#allocation41_spill] sm:$0xff] %v11948_v16  ;;  %vm7996_vm4 = vmpackc.low %vm11953_vm13, %vm11952_vm11  ;;  %5566 = vmatprep.subr.msk.mxu0 %vm11957_vm5, %v11655_v20  ;;  %vm11958_vm3 = vcmp.eq.s32.totalorder %v6582_v22, %v7186_v51  ;;  %vm11959_vm11 = vcmp.eq.s32.totalorder %v6498_v13, %v7900_v32  ;;  %vm11960_vm13 = vcmp.eq.s32.totalorder %v6484_v8, %v7900_v32  ;;  %v11987_v16 = vmov 0 }
  0xe0   : > { %v11955_v15 = vsel %vm7996_vm4, 4294967295, %v11954_v15  ;;  %5598 = vmatprep.subr.msk.mxu1 %vm11958_vm3, %v11655_v20  ;;  %vm8018_vm4 = vmpackc.low %vm11960_vm13, %vm11959_vm11  ;;  %vm11964_vm5 = vcmp.eq.s32.totalorder %v6582_v22, %v7201_v52  ;;  %vm11965_vm3 = vcmp.eq.s32.totalorder %v6582_v22, %v7204_v53  ;;  %vm11966_vm11 = vcmp.eq.s32.totalorder %v6516_v19, %v7825_v44 }
  0xe1   : > { %11956 = vst [vmem:[#allocation42_spill] sm:$0xff] %v11955_v15  ;;  %v11961_v15 = vmov 0  ;;  %5567 = vmatpush1.msk.msra.mxu0 %vm11964_vm5, %v11655_v20  ;;  %5599 = vmatpush1.msk.msra.mxu1 %vm11965_vm3, %v11655_v20  ;;  %vm11967_vm13 = vcmp.eq.s32.totalorder %v6501_v14, %v7825_v44  ;;  %vm11971_vm5 = vcmp.eq.s32.totalorder %v6609_v23, %v7155_v47 }
  0xe2   : > { %v11962_v15 = vsel %vm8018_vm4, 4294967295, %v11961_v15  ;;  %vm8040_vm4 = vmpackc.low %vm11967_vm13, %vm11966_vm11  ;;  %5568 = vmatprep.subr.msk.mxu0 %vm11971_vm5, %v11655_v20  ;;  %vm11972_vm3 = vcmp.eq.s32.totalorder %v6609_v23, %v7186_v51  ;;  %vm11973_vm11 = vcmp.eq.s32.totalorder %v6516_v19, %v7850_v50  ;;  %vm11974_vm13 = vcmp.eq.s32.totalorder %v6501_v14, %v7850_v50 }
  0xe3   : > { %11963 = vst [vmem:[#allocation43_spill] sm:$0xff] %v11962_v15  ;;  %v11968_v15 = vmov 0  ;;  %5600 = vmatprep.subr.msk.mxu1 %vm11972_vm3, %v11655_v20  ;;  %vm11978_vm5 = vcmp.eq.s32.totalorder %v6609_v23, %v7201_v52  ;;  %vm11979_vm3 = vcmp.eq.s32.totalorder %v6609_v23, %v7204_v53  ;;  %vm11649_vm9 = vcmp.eq.s32.totalorder %v6501_v14, %v7900_v32 }
  0xe4   : > { %v11969_v15 = vsel %vm8040_vm4, 4294967295, %v11968_v15  ;;  %vm8062_vm4 = vmpackc.low %vm11974_vm13, %vm11973_vm11  ;;  %5569 = vmatpush1.msk.msra.mxu0 %vm11978_vm5, %v11655_v20  ;;  %5601 = vmatpush1.msk.msra.mxu1 %vm11979_vm3, %v11655_v20  ;;  %vm11648_vm8 = vcmp.eq.s32.totalorder %v6516_v19, %v7900_v32  ;;  %vm11980_vm11 = vcmp.eq.s32.totalorder %v6516_v19, %v7875_v29  ;;  %vm11981_vm13 = vcmp.eq.s32.totalorder %v6501_v14, %v7875_v29 }
  0xe5   : > { %11970 = vst [vmem:[#allocation44_spill] sm:$0xff] %v11969_v15  ;;  %v11975_v15 = vmov 0  ;;  %vm11985_vm5 = vcmp.eq.s32.totalorder %v6636_v24, %v7155_v47  ;;  %vm11986_vm3 = vcmp.eq.s32.totalorder %v6636_v24, %v7186_v51 }
  0xe6   : > { %v11976_v15 = vsel %vm8062_vm4, 4294967295, %v11975_v15  ;;  %vm8084_vm4 = vmpackc.low %vm11981_vm13, %vm11980_vm11  ;;  %5570 = vmatprep.subr.msk.mxu0 %vm11985_vm5, %v11655_v20  ;;  %5602 = vmatprep.subr.msk.mxu1 %vm11986_vm3, %v11655_v20  ;;  %vm11990_vm13 = vcmp.eq.s32.totalorder %v6636_v24, %v7201_v52  ;;  %vm11991_vm5 = vcmp.eq.s32.totalorder %v6636_v24, %v7204_v53  ;;  %vm11652_vm3 = vcmp.eq.s32.totalorder %v6539_v21, %v7825_v44 }
  0xe7   : > { %11977 = vst [vmem:[#allocation45_spill] sm:$0xff] %v11976_v15  ;;  %v11982_v15 = vmov 0  ;;  %vm8102_vm11 = vmpackc.low %vm11649_vm9, %vm11648_vm8  ;;  %5571 = vmatpush1.msk.msra.mxu0 %vm11990_vm13, %v11655_v20  ;;  %5603 = vmatpush1.msk.msra.mxu1 %vm11991_vm5, %v11655_v20  ;;  %vm11992_vm8 = vcmp.eq.s32.totalorder %v6663_v25, %v7155_v47  ;;  %vm11993_vm13 = vcmp.eq.s32.totalorder %v6663_v25, %v7186_v51 }
  0xe8   : > { %v11983_v15 = vsel %vm8084_vm4, 4294967295, %v11982_v15  ;;  %v11988_v16 = vsel %vm8102_vm11, 4294967295, %v11987_v16  ;;  %vm11651_vm4 = vcmp.eq.s32.totalorder %v6582_v22, %v7825_v44  ;;  %5572 = vmatprep.subr.msk.mxu0 %vm11992_vm8, %v11655_v20  ;;  %5604 = vmatprep.subr.msk.mxu1 %vm11993_vm13, %v11655_v20  ;;  %vm11997_vm8 = vcmp.eq.s32.totalorder %v6663_v25, %v7201_v52 }
  0xe9   : > { %11984 = vst [vmem:[#allocation46_spill] sm:$0xff] %v11983_v15  ;;  %11989 = vst [vmem:[#allocation47_spill] sm:$0xff] %v11988_v16  ;;  %v11994_v16 = vmov 0  ;;  %5573 = vmatpush1.msk.msra.mxu0 %vm11997_vm8, %v11655_v20  ;;  %vm11998_vm13 = vcmp.eq.s32.totalorder %v6663_v25, %v7204_v53  ;;  %vm11661_vm9 = vcmp.eq.s32.totalorder %v6539_v21, %v7875_v29  ;;  %vm11658_vm5 = vcmp.eq.s32.totalorder %v6582_v22, %v7875_v29 }
  0xea   : > { %vm8136_vm11 = vmpackc.low %vm11652_vm3, %vm11651_vm4  ;;  %5605 = vmatpush1.msk.msra.mxu1 %vm11998_vm13, %v11655_v20  ;;  %vm11999_vm4 = vcmp.eq.s32.totalorder %v6582_v22, %v7850_v50  ;;  %vm12000_vm3 = vcmp.eq.s32.totalorder %v6539_v21, %v7850_v50  ;;  %v12004_v15 = vmov 0.0   ;;  %vm11660_vm13 = vcmp.eq.s32.totalorder %v6582_v22, %v7900_v32 }
  0xeb   : > { %v11995_v16 = vsel %vm8136_vm11, 4294967295, %v11994_v16  ;;  %vm8158_vm11 = vmpackc.low %vm12000_vm3, %vm11999_vm4  ;;  %1533 = vmatprep.mubr.f32.mxu0 %v12004_v15  ;;  %1622 = vmatprep.mubr.f32.mxu1 %v12004_v15  ;;  %v12005_v20 = vmov 0  ;;  %vm12009_vm3 = vcmp.eq.s32.totalorder %v6690_v26, %v7155_v47  ;;  %vm12010_vm8 = vcmp.eq.s32.totalorder %v6690_v26, %v7186_v51 }
  0xec   : > { %11996 = vst [vmem:[#allocation48_spill] sm:$0xff] %v11995_v16  ;;  %v12001_v16 = vmov 0  ;;  %vm8174_vm4 = vmpackc.low %vm11661_vm9, %vm11658_vm5  ;;  %1534 = vmatmul.mubr.f32.gmra.mxu0 %v7262_v56  ;;  %1623 = vmatmul.mubr.f32.gmra.mxu1 %v7262_v56  ;;  %vm12019_vm9 = vcmp.eq.s32.totalorder %v6717_v27, %v7201_v52  ;;  %v12212_v54 = vld [vmem:[#allocation44_spill] sm:$0xff] }
  0xed   : > { %v12002_v16 = vsel %vm8158_vm11, 4294967295, %v12001_v16  ;;  %v12006_v20 = vsel %vm8174_vm4, 4294967295, %v12005_v20  ;;  %vm12011_vm11 = vcmp.eq.s32.totalorder %v6539_v21, %v7900_v32  ;;  %1539 = vmatprep.mubr.f32.mxu0 %v12004_v15  ;;  %1628 = vmatprep.mubr.f32.mxu1 %v12004_v15  ;;  %vm11667_vm4 = vcmp.eq.s32.totalorder %v6636_v24, %v7875_v29 }
  0xee   : > { %12003 = vst [vmem:[#allocation49_spill] sm:$0xff] %v12002_v16  ;;  %12007 = vst [vmem:[#allocation50_spill] sm:$0xff] %v12006_v20  ;;  %v12008_v16 = vmov 1.0   ;;  %v12031_v20 = vmov 0  ;;  %v12214_v55 = vld [vmem:[#allocation45_spill] sm:$0xff] }
  0xef   : > { %5574 = vmatprep.subr.msk.mxu0 %vm12009_vm3, %v12008_v16  ;;  %5606 = vmatprep.subr.msk.mxu1 %vm12010_vm8, %v12008_v16  ;;  %vm8192_vm5 = vmpackc.low %vm12011_vm11, %vm11660_vm13  ;;  %vm12015_vm3 = vcmp.eq.s32.totalorder %v6690_v26, %v7201_v52  ;;  %vm12016_vm8 = vcmp.eq.s32.totalorder %v6690_v26, %v7204_v53  ;;  %vm12017_vm11 = vcmp.eq.s32.totalorder %v6717_v27, %v7155_v47 }
  0xf0   : > { %v12013_v40 = vsel %vm8192_vm5, 4294967295, %v12012_v40  ;;  %5575 = vmatpush1.msk.msra.mxu0 %vm12015_vm3, %v12008_v16  ;;  %5607 = vmatpush1.msk.msra.mxu1 %vm12016_vm8, %v12008_v16  ;;  %vm12018_vm13 = vcmp.eq.s32.totalorder %v6717_v27, %v7186_v51  ;;  %vm12020_vm3 = vcmp.eq.s32.totalorder %v6717_v27, %v7204_v53  ;;  %vm11664_vm8 = vcmp.eq.s32.totalorder %v6609_v23, %v7825_v44  ;;  %v12218_v59 = vld [vmem:[#allocation46_spill] sm:$0xff]  ;;  %v12220_v60 = vld [vmem:[#allocation47_spill] sm:$0xff] }
  0xf1   : > { %12014 = vst [vmem:[#allocation51_spill] sm:$0xff] %v12013_v40  ;;  %5576 = vmatprep.subr.msk.mxu0 %vm12017_vm11, %v12008_v16  ;;  %5608 = vmatprep.subr.msk.mxu1 %vm12018_vm13, %v12008_v16  ;;  %vm11663_vm11 = vcmp.eq.s32.totalorder %v6636_v24, %v7825_v44  ;;  %v12021_v40 = vmov 0  ;;  %vm12024_vm5 = vcmp.eq.s32.totalorder %v6744_v28, %v7155_v47 }
  0xf2   : > { %5577 = vmatpush1.msk.msra.mxu0 %vm12019_vm9, %v12008_v16  ;;  %5609 = vmatpush1.msk.msra.mxu1 %vm12020_vm3, %v12008_v16  ;;  %vm8238_vm3 = vmpackc.low %vm11664_vm8, %vm11663_vm11  ;;  %vm12025_vm13 = vcmp.eq.s32.totalorder %v6744_v28, %v7186_v51  ;;  %vm11669_vm9 = vcmp.eq.s32.totalorder %v6609_v23, %v7875_v29  ;;  %vm12026_vm11 = vcmp.eq.s32.totalorder %v6636_v24, %v7850_v50 }
  0xf3   : > { %v12022_v40 = vsel %vm8238_vm3, 4294967295, %v12021_v40  ;;  %5578 = vmatprep.subr.msk.mxu0 %vm12024_vm5, %v12008_v16  ;;  %5610 = vmatprep.subr.msk.mxu1 %vm12025_vm13, %v12008_v16  ;;  %vm12027_vm8 = vcmp.eq.s32.totalorder %v6609_v23, %v7850_v50  ;;  %vm11670_vm13 = vcmp.eq.s32.totalorder %v6636_v24, %v7900_v32  ;;  %vm12035_vm5 = vcmp.eq.s32.totalorder %v6744_v28, %v7204_v53  ;;  %v12222_v61 = vld [vmem:[#allocation48_spill] sm:$0xff] }
  0xf4   : > { %12023 = vst [vmem:[#allocation52_spill] sm:$0xff] %v12022_v40  ;;  %vm8260_vm3 = vmpackc.low %vm12027_vm8, %vm12026_vm11  ;;  %v12028_v40 = vmov 0  ;;  %1540 = vmatmul.mubr.f32.gmra.mxu0 %v7396_v63  ;;  %1629 = vmatmul.mubr.f32.gmra.mxu1 %v7396_v63  ;;  %vm12034_vm11 = vcmp.eq.s32.totalorder %v6744_v28, %v7201_v52 }
  0xf5   : > { %v12029_v40 = vsel %vm8260_vm3, 4294967295, %v12028_v40  ;;  %vm8276_vm8 = vmpackc.low %vm11669_vm9, %vm11667_vm4  ;;  %5579 = vmatpush1.msk.msra.mxu0 %vm12034_vm11, %v12008_v16  ;;  %5611 = vmatpush1.msk.msra.mxu1 %vm12035_vm5, %v12008_v16  ;;  %vm12036_vm3 = vcmp.eq.s32.totalorder %v6609_v23, %v7900_v32  ;;  %vm12040_vm9 = vcmp.eq.s32.totalorder %v6772_v30, %v7155_v47  ;;  %vm12041_vm11 = vcmp.eq.s32.totalorder %v6772_v30, %v7186_v51  ;;  %v12224_v62 = vld [vmem:[#allocation49_spill] sm:$0xff] }
  0xf6   : > { %12030 = vst [vmem:[#allocation53_spill] sm:$0xff] %v12029_v40  ;;  %v12032_v20 = vsel %vm8276_vm8, 4294967295, %v12031_v20  ;;  %vm8294_vm4 = vmpackc.low %vm12036_vm3, %vm11670_vm13  ;;  %v12037_v40 = vmov 0  ;;  %5580 = vmatprep.subr.msk.mxu0 %vm12040_vm9, %v12008_v16  ;;  %5612 = vmatprep.subr.msk.mxu1 %vm12041_vm11, %v12008_v16  ;;  %vm12042_vm5 = vcmp.eq.s32.totalorder %v6772_v30, %v7201_v52  ;;  %vm12043_vm3 = vcmp.eq.s32.totalorder %v6772_v30, %v7204_v53 }
  0xf7   : > { %12033 = vst [vmem:[#allocation54_spill] sm:$0xff] %v12032_v20  ;;  %v12038_v40 = vsel %vm8294_vm4, 4294967295, %v12037_v40  ;;  %5581 = vmatpush1.msk.msra.mxu0 %vm12042_vm5, %v12008_v16  ;;  %5613 = vmatpush1.msk.msra.mxu1 %vm12043_vm3, %v12008_v16  ;;  %vm11674_vm9 = vcmp.eq.s32.totalorder %v6663_v25, %v7825_v44  ;;  %vm11672_vm11 = vcmp.eq.s32.totalorder %v6690_v26, %v7825_v44  ;;  %v12048_v20 = vmov 0 }
  0xf8   : > { %12039 = vst [vmem:[#allocation55_spill] sm:$0xff] %v12038_v40  ;;  %1545 = vmatprep.mubr.f32.mxu0 %v12004_v15  ;;  %1634 = vmatprep.mubr.f32.mxu1 %v12004_v15  ;;  %vm12044_vm13 = vcmp.eq.s32.totalorder %v6787_v31, %v7155_v47  ;;  %vm12045_vm5 = vcmp.eq.s32.totalorder %v6787_v31, %v7186_v51  ;;  %vm8338_vm8 = vmpackc.low %vm11674_vm9, %vm11672_vm11  ;;  %v12046_v40 = vmov 0  ;;  %v12228_v0 = vld [vmem:[#allocation51_spill] sm:$0xff] }
  0xf9   : > { %5582 = vmatprep.subr.msk.mxu0 %vm12044_vm13, %v12008_v16  ;;  %5614 = vmatprep.subr.msk.mxu1 %vm12045_vm5, %v12008_v16  ;;  %vm11676_vm3 = vcmp.eq.s32.totalorder %v6663_v25, %v7850_v50  ;;  %vm11675_vm4 = vcmp.eq.s32.totalorder %v6690_v26, %v7850_v50  ;;  %v12047_v40 = vsel %vm8338_vm8, 4294967295, %v12046_v40  ;;  %vm12051_vm9 = vcmp.eq.s32.totalorder %v6787_v31, %v7201_v52 }
  0xfa   : > { %1546 = vmatmul.mubr.f32.gmra.mxu0 %v7530_v10  ;;  %1635 = vmatmul.mubr.f32.gmra.mxu1 %v7530_v10  ;;  %vm8354_vm11 = vmpackc.low %vm11676_vm3, %vm11675_vm4  ;;  %vm12052_vm13 = vcmp.eq.s32.totalorder %v6787_v31, %v7204_v53  ;;  %vm12053_vm4 = vcmp.eq.s32.totalorder %v6690_v26, %v7875_v29  ;;  %vm12054_vm3 = vcmp.eq.s32.totalorder %v6663_v25, %v7875_v29 }
  0xfb   : > { %v12049_v20 = vsel %vm8354_vm11, 4294967295, %v12048_v20  ;;  %5583 = vmatpush1.msk.msra.mxu0 %vm12051_vm9, %v12008_v16  ;;  %5615 = vmatpush1.msk.msra.mxu1 %vm12052_vm13, %v12008_v16  ;;  %vm8376_vm11 = vmpackc.low %vm12054_vm3, %vm12053_vm4  ;;  %vm12058_vm9 = vcmp.eq.s32.totalorder %v6817_v35, %v7155_v47  ;;  %vm12059_vm13 = vcmp.eq.s32.totalorder %v6817_v35, %v7186_v51  ;;  %vm12060_vm4 = vcmp.eq.s32.totalorder %v6690_v26, %v7900_v32 }
  0xfc   : > { %12050 = vst [vmem:[#allocation56_spill] sm:$0xff] %v12049_v20  ;;  %v12055_v20 = vmov 0  ;;  %5584 = vmatprep.subr.msk.mxu0 %vm12058_vm9, %v12008_v16  ;;  %5616 = vmatprep.subr.msk.mxu1 %vm12059_vm13, %v12008_v16  ;;  %vm12061_vm3 = vcmp.eq.s32.totalorder %v6663_v25, %v7900_v32  ;;  %vm12065_vm9 = vcmp.eq.s32.totalorder %v6817_v35, %v7201_v52 }
  0xfd   : > { %v12056_v20 = vsel %vm8376_vm11, 4294967295, %v12055_v20  ;;  %vm8398_vm11 = vmpackc.low %vm12061_vm3, %vm12060_vm4  ;;  %5585 = vmatpush1.msk.msra.mxu0 %vm12065_vm9, %v12008_v16  ;;  %vm12066_vm13 = vcmp.eq.s32.totalorder %v6817_v35, %v7204_v53  ;;  %vm12067_vm4 = vcmp.eq.s32.totalorder %v6744_v28, %v7825_v44  ;;  %vm12068_vm3 = vcmp.eq.s32.totalorder %v6717_v27, %v7825_v44  ;;  %1705 = vmatprep.mubr.f32.mxu0 %v12004_v15 }
  0xfe   : > { %12057 = vst [vmem:[#allocation57_spill] sm:$0xff] %v12056_v20  ;;  %v12062_v20 = vmov 0  ;;  %5617 = vmatpush1.msk.msra.mxu1 %vm12066_vm13, %v12008_v16  ;;  %vm12071_vm9 = vcmp.eq.s32.totalorder %v6473_v2, %v7155_v47  ;;  %vm12072_vm13 = vcmp.eq.s32.totalorder %v6473_v2, %v7186_v51  ;;  %vm11680_vm8 = vcmp.eq.s32.totalorder %v6744_v28, %v7875_v29 }
  0xff   : > { %v12063_v20 = vsel %vm8398_vm11, 4294967295, %v12062_v20  ;;  %vm8420_vm11 = vmpackc.low %vm12068_vm3, %vm12067_vm4  ;;  %5586 = vmatprep.subr.msk.mxu0 %vm12071_vm9, %v12008_v16  ;;  %5618 = vmatprep.subr.msk.mxu1 %vm12072_vm13, %v12008_v16  ;;  %vm12073_vm4 = vcmp.eq.s32.totalorder %v6744_v28, %v7850_v50  ;;  %vm12074_vm3 = vcmp.eq.s32.totalorder %v6717_v27, %v7850_v50  ;;  %v12075_v47 = vmov 0 }
 0x100   : > { %12064 = vst [vmem:[#allocation58_spill] sm:$0xff] %v12063_v20  ;;  %v12069_v20 = vmov 0  ;;  %vm12077_vm9 = vcmp.eq.s32.totalorder %v6473_v2, %v7201_v52  ;;  %v12079_v51 = vmov 0  ;;  %1794 = vmatprep.mubr.f32.mxu1 %v12004_v15  ;;  %vm11681_vm5 = vcmp.eq.s32.totalorder %v6787_v31, %v7825_v44 }
 0x101   : > { %v12070_v20 = vsel %vm8420_vm11, 4294967295, %v12069_v20  ;;  %vm8442_vm11 = vmpackc.low %vm12074_vm3, %vm12073_vm4  ;;  %5587 = vmatpush1.msk.msra.mxu0 %vm12077_vm9, %v12008_v16  ;;  %vm12078_vm4 = vcmp.eq.s32.totalorder %v6717_v27, %v7875_v29  ;;  %vm12081_vm9 = vcmp.eq.s32.totalorder %v6473_v2, %v7204_v53  ;;  %v12084_v52 = vmov 0 }
 0x102   : > { %v12076_v47 = vsel %vm8442_vm11, 4294967295, %v12075_v47  ;;  %vm8461_vm3 = vmpackc.low %vm12078_vm4, %vm11680_vm8  ;;  %5619 = vmatpush1.msk.msra.mxu1 %vm12081_vm9, %v12008_v16  ;;  %vm12082_vm11 = vcmp.eq.s32.totalorder %v6744_v28, %v7900_v32  ;;  %vm12083_vm4 = vcmp.eq.s32.totalorder %v6717_v27, %v7900_v32  ;;  %1706 = vmatmul.mubr.f32.vlgmr.msra.gmra.mxu0 %v6950_v45  ;;  %v12087_v53 = vmov 0 }
 0x103   : > { %v12080_v51 = vsel %vm8461_vm3, 4294967295, %v12079_v51  ;;  %vm8480_vm8 = vmpackc.low %vm12083_vm4, %vm12082_vm11  ;;  %1795 = vmatmul.mubr.f32.vlgmr.msra.gmra.mxu1 %v6950_v45  ;;  %vm12086_vm3 = vcmp.eq.s32.totalorder %v6772_v30, %v7825_v44  ;;  %vm12089_vm4 = vcmp.eq.s32.totalorder %v6484_v8, %v7825_v44  ;;  %vm12090_vm9 = vcmp.eq.s32.totalorder %v6484_v8, %v7850_v50  ;;  %1711 = vmatprep.mubr.f32.mxu0 %v12004_v15 }
 0x104   : > { %v12085_v52 = vsel %vm8480_vm8, 4294967295, %v12084_v52  ;;  %vm8496_vm11 = vmpackc.low %vm12086_vm3, %vm11681_vm5  ;;  %5620 = vmatprep.subr.msk.mxu0 %vm12089_vm4, %v12008_v16  ;;  %5652 = vmatprep.subr.msk.mxu1 %vm12090_vm9, %v12008_v16  ;;  %vm12091_vm3 = vcmp.eq.s32.totalorder %v6787_v31, %v7850_v50  ;;  %vm12092_vm5 = vcmp.eq.s32.totalorder %v6772_v30, %v7850_v50  ;;  %v12093_v45 = vmov 0 }
 0x105   : > { %v12088_v53 = vsel %vm8496_vm11, 4294967295, %v12087_v53  ;;  %vm8518_vm11 = vmpackc.low %vm12092_vm5, %vm12091_vm3  ;;  %vm12096_vm9 = vcmp.eq.s32.totalorder %v6484_v8, %v7875_v29  ;;  %vm12097_vm4 = vcmp.eq.s32.totalorder %v6484_v8, %v7900_v32  ;;  %vm12098_vm5 = vcmp.eq.s32.totalorder %v6787_v31, %v7875_v29  ;;  %1800 = vmatprep.mubr.f32.mxu1 %v12004_v15 }
 0x106   : > { %v12094_v45 = vsel %vm8518_vm11, 4294967295, %v12093_v45  ;;  %5621 = vmatpush1.msk.msra.mxu0 %vm12096_vm9, %v12008_v16  ;;  %5653 = vmatpush1.msk.msra.mxu1 %vm12097_vm4, %v12008_v16  ;;  %vm12099_vm3 = vcmp.eq.s32.totalorder %v6772_v30, %v7875_v29  ;;  %vm12103_vm9 = vcmp.eq.s32.totalorder %v6498_v13, %v7825_v44  ;;  %vm12104_vm4 = vcmp.eq.s32.totalorder %v6498_v13, %v7850_v50 }
 0x107   : > { %12095 = vst [vmem:[#allocation59_spill] sm:$0xff] %v12094_v45  ;;  %vm8540_vm11 = vmpackc.low %vm12099_vm3, %vm12098_vm5  ;;  %v12100_v45 = vmov 0  ;;  %5622 = vmatprep.subr.msk.mxu0 %vm12103_vm9, %v12008_v16  ;;  %5654 = vmatprep.subr.msk.mxu1 %vm12104_vm4, %v12008_v16  ;;  %vm11687_vm13 = vcmp.eq.s32.totalorder %v6817_v35, %v7825_v44  ;;  %vm11686_vm8 = vcmp.eq.s32.totalorder %v6473_v2, %v7825_v44  ;;  %v12107_v8 = vmov 0 }
 0x108   : > { %v12101_v45 = vsel %vm8540_vm11, 4294967295, %v12100_v45  ;;  %vm12105_vm5 = vcmp.eq.s32.totalorder %v6787_v31, %v7900_v32  ;;  %vm12106_vm3 = vcmp.eq.s32.totalorder %v6772_v30, %v7900_v32  ;;  %vm12113_vm9 = vcmp.eq.s32.totalorder %v6498_v13, %v7900_v32  ;;  %1712 = vmatmul.mubr.f32.gmra.mxu0 %v7262_v56  ;;  %1801 = vmatmul.mubr.f32.gmra.mxu1 %v7262_v56 }
 0x109   : > { %12102 = vst [vmem:[#allocation60_spill] sm:$0xff] %v12101_v45  ;;  %vm8562_vm11 = vmpackc.low %vm12106_vm3, %vm12105_vm5  ;;  %v12109_v45 = vmov 0  ;;  %vm12112_vm3 = vcmp.eq.s32.totalorder %v6498_v13, %v7875_v29  ;;  %5655 = vmatpush1.msk.msra.mxu1 %vm12113_vm9, %v12008_v16  ;;  %vm11693_vm4 = vcmp.eq.s32.totalorder %v6817_v35, %v7875_v29  ;;  %vm12122_vm9 = vcmp.eq.s32.totalorder %v6501_v14, %v7850_v50  ;;  %v6032_v13 = vld [vmem:[%s11485_s2 + $0x30] sm:$0xff]  }
 0x10a   : > { %v12108_v8 = vsel %vm8562_vm11, 4294967295, %v12107_v8  ;;  %vm8578_vm5 = vmpackc.low %vm11687_vm13, %vm11686_vm8  ;;  %5623 = vmatpush1.msk.msra.mxu0 %vm12112_vm3, %v12008_v16  ;;  %vm11691_vm11 = vcmp.eq.s32.totalorder %v6473_v2, %v7875_v29  ;;  %vm12114_vm8 = vcmp.eq.s32.totalorder %v6473_v2, %v7850_v50  ;;  %vm12115_vm13 = vcmp.eq.s32.totalorder %v6817_v35, %v7850_v50  ;;  %5656 = vmatprep.subr.msk.mxu1 %vm12122_vm9, %v12008_v16 }
 0x10b   : > { %v12110_v45 = vsel %vm8578_vm5, 4294967295, %v12109_v45  ;;  %vm8600_vm5 = vmpackc.low %vm12115_vm13, %vm12114_vm8  ;;  %vm11694_vm3 = vcmp.eq.s32.totalorder %v6473_v2, %v7900_v32  ;;  %vm12121_vm13 = vcmp.eq.s32.totalorder %v6501_v14, %v7825_v44  ;;  %vm12128_vm9 = vcmp.eq.s32.totalorder %v6516_v19, %v7825_v44  ;;  %1717 = vmatprep.mubr.f32.mxu0 %v12004_v15  ;;  %1806 = vmatprep.mubr.f32.mxu1 %v12004_v15 }
 0x10c   : > { %12111 = vst [vmem:[#allocation61_spill] sm:$0xff] %v12110_v45  ;;  %v12116_v45 = vmov 0  ;;  %vm8616_vm8 = vmpackc.low %vm11693_vm4, %vm11691_vm11  ;;  %5624 = vmatprep.subr.msk.mxu0 %vm12121_vm13, %v12008_v16  ;;  %vm12126_vm4 = vcmp.eq.s32.totalorder %v6501_v14, %v7875_v29  ;;  %vm12127_vm13 = vcmp.eq.s32.totalorder %v6501_v14, %v7900_v32  ;;  %1718 = vmatmul.mubr.f32.gmra.mxu0 %v7396_v63  ;;  %v6239_v14 = vmov 1.0|1.0  }
 0x10d   : > { %v12117_v45 = vsel %vm8600_vm5, 4294967295, %v12116_v45  ;;  %vm12123_vm5 = vcmp.eq.s32.totalorder %v6817_v35, %v7900_v32  ;;  %5625 = vmatpush1.msk.msra.mxu0 %vm12126_vm4, %v12008_v16  ;;  %5657 = vmatpush1.msk.msra.mxu1 %vm12127_vm13, %v12008_v16  ;;  %vm12130_vm4 = vcmp.eq.s32.totalorder %v6516_v19, %v7875_v29  ;;  %vm12131_vm13 = vcmp.eq.s32.totalorder %v6516_v19, %v7900_v32 }
 0x10e   : > { %12118 = vst [vmem:[#allocation62_spill] sm:$0xff] %v12117_v45  ;;  %vm8634_vm11 = vmpackc.low %vm12123_vm5, %vm11694_vm3  ;;  %5626 = vmatprep.subr.msk.mxu0 %vm12128_vm9, %v12008_v16  ;;  %vm12129_vm5 = vcmp.eq.s32.totalorder %v6516_v19, %v7850_v50  ;;  %1807 = vmatmul.mubr.f32.gmra.mxu1 %v7396_v63  ;;  %vm12132_vm9 = vcmp.eq.s32.totalorder %v6539_v21, %v7825_v44 }
 0x10f   : > { %5658 = vmatprep.subr.msk.mxu1 %vm12129_vm5, %v12008_v16  ;;  %5627 = vmatpush1.msk.msra.mxu0 %vm12130_vm4, %v12008_v16  ;;  %vm12133_vm5 = vcmp.eq.s32.totalorder %v6539_v21, %v7850_v50  ;;  %vm12134_vm4 = vcmp.eq.s32.totalorder %v6539_v21, %v7875_v29  ;;  %vm12136_vm3 = vcmp.eq.s32.totalorder %v6582_v22, %v7825_v44 }
 0x110   : > { %5659 = vmatpush1.msk.msra.mxu1 %vm12131_vm13, %v12008_v16  ;;  %5628 = vmatprep.subr.msk.mxu0 %vm12132_vm9, %v12008_v16  ;;  %vm12135_vm13 = vcmp.eq.s32.totalorder %v6539_v21, %v7900_v32  ;;  %vm12137_vm9 = vcmp.eq.s32.totalorder %v6582_v22, %v7850_v50 }
 0x111   : > { %5660 = vmatprep.subr.msk.mxu1 %vm12133_vm5, %v12008_v16  ;;  %5629 = vmatpush1.msk.msra.mxu0 %vm12134_vm4, %v12008_v16  ;;  %vm12138_vm5 = vcmp.eq.s32.totalorder %v6582_v22, %v7875_v29  ;;  %vm12139_vm4 = vcmp.eq.s32.totalorder %v6582_v22, %v7900_v32 }
 0x112   : > { %5661 = vmatpush1.msk.msra.mxu1 %vm12135_vm13, %v12008_v16  ;;  %5630 = vmatprep.subr.msk.mxu0 %vm12136_vm3, %v12008_v16  ;;  %vm12140_vm3 = vcmp.eq.s32.totalorder %v6609_v23, %v7825_v44  ;;  %vm12141_vm13 = vcmp.eq.s32.totalorder %v6609_v23, %v7850_v50 }
 0x113   : > { %5662 = vmatprep.subr.msk.mxu1 %vm12137_vm9, %v12008_v16  ;;  %1723 = vmatprep.mubr.f32.mxu0 %v12004_v15  ;;  %vm12142_vm9 = vcmp.eq.s32.totalorder %v6609_v23, %v7875_v29 }
 0x114   : > { %1812 = vmatprep.mubr.f32.mxu1 %v12004_v15  ;;  %5631 = vmatpush1.msk.msra.mxu0 %vm12138_vm5, %v12008_v16  ;;  %vm12143_vm5 = vcmp.eq.s32.totalorder %v6609_v23, %v7900_v32 }
 0x115   : > { %5663 = vmatpush1.msk.msra.mxu1 %vm12139_vm4, %v12008_v16  ;;  %1724 = vmatmul.mubr.f32.gmra.mxu0 %v7530_v10  ;;  %vm12144_vm4 = vcmp.eq.s32.totalorder %v6636_v24, %v7825_v44 }
 0x116   : > { %1813 = vmatmul.mubr.f32.gmra.mxu1 %v7530_v10  ;;  %5632 = vmatprep.subr.msk.mxu0 %vm12140_vm3, %v12008_v16  ;;  %vm12145_vm3 = vcmp.eq.s32.totalorder %v6636_v24, %v7850_v50 }
 0x117   : > { %5664 = vmatprep.subr.msk.mxu1 %vm12141_vm13, %v12008_v16  ;;  %5633 = vmatpush1.msk.msra.mxu0 %vm12142_vm9, %v12008_v16  ;;  %vm12146_vm13 = vcmp.eq.s32.totalorder %v6636_v24, %v7875_v29  ;;  %vm12147_vm9 = vcmp.eq.s32.totalorder %v6636_v24, %v7900_v32 }
 0x118   : > { %5665 = vmatpush1.msk.msra.mxu1 %vm12143_vm5, %v12008_v16  ;;  %5634 = vmatprep.subr.msk.mxu0 %vm12144_vm4, %v12008_v16  ;;  %vm12148_vm5 = vcmp.eq.s32.totalorder %v6663_v25, %v7825_v44  ;;  %vm12149_vm4 = vcmp.eq.s32.totalorder %v6663_v25, %v7850_v50 }
 0x119   : > { %5666 = vmatprep.subr.msk.mxu1 %vm12145_vm3, %v12008_v16  ;;  %5635 = vmatpush1.msk.msra.mxu0 %vm12146_vm13, %v12008_v16  ;;  %vm12150_vm3 = vcmp.eq.s32.totalorder %v6663_v25, %v7875_v29  ;;  %vm12151_vm13 = vcmp.eq.s32.totalorder %v6663_v25, %v7900_v32 }
 0x11a   : > { %5667 = vmatpush1.msk.msra.mxu1 %vm12147_vm9, %v12008_v16  ;;  %5636 = vmatprep.subr.msk.mxu0 %vm12148_vm5, %v12008_v16  ;;  %vm12152_vm9 = vcmp.eq.s32.totalorder %v6690_v26, %v7825_v44  ;;  %vm12153_vm5 = vcmp.eq.s32.totalorder %v6690_v26, %v7850_v50 }
 0x11b   : > { %5668 = vmatprep.subr.msk.mxu1 %vm12149_vm4, %v12008_v16  ;;  %5637 = vmatpush1.msk.msra.mxu0 %vm12150_vm3, %v12008_v16  ;;  %vm12154_vm4 = vcmp.eq.s32.totalorder %v6690_v26, %v7875_v29  ;;  %vm12155_vm3 = vcmp.eq.s32.totalorder %v6690_v26, %v7900_v32 }
 0x11c   : > { %5669 = vmatpush1.msk.msra.mxu1 %vm12151_vm13, %v12008_v16  ;;  %5638 = vmatprep.subr.msk.mxu0 %vm12152_vm9, %v12008_v16  ;;  %vm12156_vm13 = vcmp.eq.s32.totalorder %v6717_v27, %v7825_v44  ;;  %vm12157_vm9 = vcmp.eq.s32.totalorder %v6717_v27, %v7850_v50 }
 0x11d   : > { %5670 = vmatprep.subr.msk.mxu1 %vm12153_vm5, %v12008_v16  ;;  %5639 = vmatpush1.msk.msra.mxu0 %vm12154_vm4, %v12008_v16  ;;  %vm12158_vm5 = vcmp.eq.s32.totalorder %v6717_v27, %v7875_v29  ;;  %vm12159_vm4 = vcmp.eq.s32.totalorder %v6717_v27, %v7900_v32 }
 0x11e   : > { %5671 = vmatpush1.msk.msra.mxu1 %vm12155_vm3, %v12008_v16  ;;  %5640 = vmatprep.subr.msk.mxu0 %vm12156_vm13, %v12008_v16  ;;  %vm12160_vm3 = vcmp.eq.s32.totalorder %v6744_v28, %v7825_v44  ;;  %vm12161_vm13 = vcmp.eq.s32.totalorder %v6744_v28, %v7850_v50 }
 0x11f   : > { %5672 = vmatprep.subr.msk.mxu1 %vm12157_vm9, %v12008_v16  ;;  %5641 = vmatpush1.msk.msra.mxu0 %vm12158_vm5, %v12008_v16  ;;  %vm12162_vm9 = vcmp.eq.s32.totalorder %v6744_v28, %v7875_v29  ;;  %vm12163_vm5 = vcmp.eq.s32.totalorder %v6744_v28, %v7900_v32 }
 0x120   : > { %5673 = vmatpush1.msk.msra.mxu1 %vm12159_vm4, %v12008_v16  ;;  %5642 = vmatprep.subr.msk.mxu0 %vm12160_vm3, %v12008_v16  ;;  %vm12164_vm4 = vcmp.eq.s32.totalorder %v6772_v30, %v7825_v44  ;;  %vm12165_vm3 = vcmp.eq.s32.totalorder %v6772_v30, %v7850_v50 }
 0x121   : > { %5674 = vmatprep.subr.msk.mxu1 %vm12161_vm13, %v12008_v16  ;;  %5643 = vmatpush1.msk.msra.mxu0 %vm12162_vm9, %v12008_v16  ;;  %vm12166_vm13 = vcmp.eq.s32.totalorder %v6772_v30, %v7875_v29  ;;  %vm12167_vm9 = vcmp.eq.s32.totalorder %v6772_v30, %v7900_v32 }
 0x122   : > { %5675 = vmatpush1.msk.msra.mxu1 %vm12163_vm5, %v12008_v16  ;;  %5644 = vmatprep.subr.msk.mxu0 %vm12164_vm4, %v12008_v16  ;;  %vm12168_vm5 = vcmp.eq.s32.totalorder %v6787_v31, %v7825_v44  ;;  %vm12169_vm4 = vcmp.eq.s32.totalorder %v6787_v31, %v7850_v50 }
 0x123   : > { %5676 = vmatprep.subr.msk.mxu1 %vm12165_vm3, %v12008_v16  ;;  %5645 = vmatpush1.msk.msra.mxu0 %vm12166_vm13, %v12008_v16  ;;  %vm12170_vm3 = vcmp.eq.s32.totalorder %v6787_v31, %v7875_v29  ;;  %vm12171_vm13 = vcmp.eq.s32.totalorder %v6787_v31, %v7900_v32 }
 0x124   : > { %5677 = vmatpush1.msk.msra.mxu1 %vm12167_vm9, %v12008_v16  ;;  %5646 = vmatprep.subr.msk.mxu0 %vm12168_vm5, %v12008_v16  ;;  %vm12172_vm9 = vcmp.eq.s32.totalorder %v6817_v35, %v7825_v44  ;;  %vm12173_vm5 = vcmp.eq.s32.totalorder %v6817_v35, %v7850_v50 }
 0x125   : > { %5678 = vmatprep.subr.msk.mxu1 %vm12169_vm4, %v12008_v16  ;;  %5647 = vmatpush1.msk.msra.mxu0 %vm12170_vm3, %v12008_v16  ;;  %vm12174_vm4 = vcmp.eq.s32.totalorder %v6817_v35, %v7875_v29  ;;  %vm12175_vm3 = vcmp.eq.s32.totalorder %v6817_v35, %v7900_v32 }
 0x126   : > { %5679 = vmatpush1.msk.msra.mxu1 %vm12171_vm13, %v12008_v16  ;;  %5648 = vmatprep.subr.msk.mxu0 %vm12172_vm9, %v12008_v16  ;;  %vm12176_vm13 = vcmp.eq.s32.totalorder %v6473_v2, %v7825_v44  ;;  %vm12177_vm9 = vcmp.eq.s32.totalorder %v6473_v2, %v7850_v50  ;;  %v6034_v44 = vld [vmem:[#allocation7] sm:$0xff] }
 0x127   : > { %5680 = vmatprep.subr.msk.mxu1 %vm12173_vm5, %v12008_v16  ;;  %5649 = vmatpush1.msk.msra.mxu0 %vm12174_vm4, %v12008_v16  ;;  %vm12178_vm5 = vcmp.eq.s32.totalorder %v6473_v2, %v7875_v29  ;;  %vm12179_vm4 = vcmp.eq.s32.totalorder %v6473_v2, %v7900_v32 }
 0x128   : > { %5681 = vmatpush1.msk.msra.mxu1 %vm12175_vm3, %v12008_v16  ;;  %5650 = vmatprep.subr.msk.mxu0 %vm12176_vm13, %v12008_v16  ;;  %vm12189_vm3 = vnez %v11862_v38  ;;  %vm12190_vm13 = vnez %v11868_v39  ;;  %v12253_v38 = vld [vmem:[#allocation60_spill] sm:$0xff]  ;;  %v12256_v39 = vld [vmem:[#allocation61_spill] sm:$0xff] }
 0x129   : > { %5682 = vmatprep.subr.msk.mxu1 %vm12177_vm9, %v12008_v16  ;;  %5651 = vmatpush1.msk.msra.mxu0 %vm12178_vm5, %v12008_v16  ;;  %vm12191_vm9 = vnez %v11874_v46  ;;  %vm12192_vm5 = vnez %v11880_v48  ;;  %v12258_v46 = vld [vmem:[#allocation62_spill] sm:$0xff] }
 0x12a   : > { %1883 = vmatprep.mubr.f32.mxu0 %v12004_v15  ;;  %5683 = vmatpush1.msk.msra.mxu1 %vm12179_vm4, %v12008_v16  ;;  %v6240_v16 = vmov 0   ;;  %vm12193_vm4 = vnez %v11884_v49  ;;  %v6030_v48 = vld [vmem:[%s11485_s2 + $0x20] sm:$0xff]  }
 0x12b   : > { %1972 = vmatprep.mubr.f32.mxu1 %v12004_v15  ;;  %1884 = vmatmul.mubr.f32.vlgmr.msra.gmra.mxu0 %v6034_v44 }
 0x12c   : > { %1973 = vmatmul.mubr.f32.vlgmr.msra.gmra.mxu1 %v6034_v44  ;;  %5693 = vmatprep.subr.msk.bf16.mxu0 %vm7212_vm0, %v6239_v14  ;;  %vm12180_vm0 = vnez %v11818_v4  ;;  %v9052_v4 = vld [vmem:[%s11488_s5] sm:$0xff] }
 0x12d   : > { %5725 = vmatprep.subr.msk.bf16.mxu1 %vm7250_vm2, %v6239_v14  ;;  %5695 = vmatpush1.bf16.msk.msra.mxu0 %vm7276_vm12, %v6239_v14  ;;  %vm12185_vm12 = vnez %v11844_v11  ;;  %vm12187_vm2 = vnez %v11853_v36  ;;  %v12240_v11 = vld [vmem:[#allocation56_spill] sm:$0xff]  ;;  %v12244_v36 = vld [vmem:[#allocation58_spill] sm:$0xff] }
 0x12e   : > { %5727 = vmatpush1.bf16.msk.msra.mxu1 %vm7294_vm14, %v6239_v14  ;;  %1889 = vmatprep.mubr.f32.mxu0 %v12004_v15  ;;  %vm12186_vm14 = vnez %v11847_v12  ;;  %v12242_v12 = vld [vmem:[#allocation57_spill] sm:$0xff] }
 0x12f   : > { %1978 = vmatprep.mubr.f32.mxu1 %v12004_v15  ;;  %1890 = vmatmul.mubr.f32.gmra.mxu0 %v7262_v56 }
 0x130   : > { %1979 = vmatmul.mubr.f32.gmra.mxu1 %v7262_v56  ;;  %5697 = vmatprep.subr.msk.bf16.mxu0 %vm7318_vm10, %v6239_v14  ;;  %vm12184_vm10 = vnez %v11839_v9  ;;  %v9012_v56 = vld [vmem:[%s11485_s2 + $0x8] sm:$0xff]   ;;  %v12235_v9 = vld [vmem:[#allocation54_spill] sm:$0xff] }
 0x131   : > { %5729 = vmatprep.subr.msk.bf16.mxu1 %vm7336_vm1, %v6239_v14  ;;  %5699 = vmatpush1.bf16.msk.msra.mxu0 %vm7360_vm7, %v6239_v14  ;;  %vm12181_vm1 = vnez %v11824_v5  ;;  %vm12183_vm7 = vnez %v11833_v7  ;;  %v12231_v5 = vld [vmem:[#allocation52_spill] sm:$0xff] }
 0x132   : > { %5731 = vmatpush1.bf16.msk.msra.mxu1 %vm7384_vm6, %v6239_v14  ;;  %1895 = vmatprep.mubr.f32.mxu0 %v12004_v15  ;;  %vm12182_vm6 = vnez %v11827_v6  ;;  %v12233_v6 = vld [vmem:[#allocation53_spill] sm:$0xff]  ;;  %v9063_v7 = vld [vmem:[%s11485_s2 + $0x10] sm:$0xff]  }
 0x133   : > { %1984 = vmatprep.mubr.f32.mxu1 %v12004_v15  ;;  %1896 = vmatmul.mubr.f32.gmra.mxu0 %v7396_v63 }
 0x134   : > { %1985 = vmatmul.mubr.f32.gmra.mxu1 %v7396_v63  ;;  %5701 = vmatprep.subr.msk.bf16.mxu0 %vm7410_vm15, %v6239_v14  ;;  %vm12188_vm15 = vnez %v11856_v37  ;;  %v12226_v63 = vld [vmem:[#allocation50_spill] sm:$0xff]  ;;  %v9098_v37 = vld [vmem:[%s11485_s2 + $0x18] sm:$0xff]  }
 0x135   : > { %5733 = vmatprep.subr.msk.bf16.mxu1 %vm12180_vm0, %v6239_v14  ;;  %5703 = vmatpush1.bf16.msk.msra.mxu0 %vm12181_vm1, %v6239_v14  ;;  %vm12194_vm0 = vnez %v11889_v34  ;;  %vm12195_vm1 = vnez %v11892_v1  ;;  %v6241_v1 = vmov 1   ;;  %v8972_v34 = vld [vmem:[%s11485_s2] sm:$0xff]  }
 0x136   : > { %5735 = vmatpush1.bf16.msk.msra.mxu1 %vm12182_vm6, %v6239_v14  ;;  %1901 = vmatprep.mubr.f32.mxu0 %v12004_v15  ;;  %vm12196_vm6 = vnez %v11898_v41  ;;  %v12203_v41 = vld [vmem:[#allocation40_spill] sm:$0xff] }
 0x137   : > { %1990 = vmatprep.mubr.f32.mxu1 %v12004_v15  ;;  %1902 = vmatmul.mubr.f32.gmra.mxu0 %v7530_v10 }
 0x138   : > { %1991 = vmatmul.mubr.f32.gmra.mxu1 %v7530_v10  ;;  %5705 = vmatprep.subr.msk.bf16.mxu0 %vm12183_vm7, %v6239_v14  ;;  %vm12197_vm7 = vnez %v11905_v43  ;;  %v12210_v43 = vld [vmem:[#allocation43_spill] sm:$0xff] }
 0x139   : > { %5737 = vmatprep.subr.msk.bf16.mxu1 %vm12184_vm10, %v6239_v14  ;;  %5707 = vmatpush1.bf16.msk.msra.mxu0 %vm12185_vm12, %v6239_v14  ;;  %vm12198_vm10 = vnez %v11911_v33  ;;  %vm12199_vm12 = vnez %v11917_v42  ;;  %v8989_v42 = vld [vmem:[%s11488_s5 + $0x18] sm:$0xff]  ;;  %12230 = vst [vmem:[#allocation43_spill] sm:$0xff] %v9052_v4  ;;  %v12237_v10 = vld [vmem:[#allocation55_spill] sm:$0xff] }
 0x13a   : > { %5739 = vmatpush1.bf16.msk.msra.mxu1 %vm12186_vm14, %v6239_v14  ;;  %5709 = vmatprep.subr.msk.bf16.mxu0 %vm12187_vm2, %v6239_v14  ;;  %vm12200_vm14 = vnez %v11923_v18  ;;  %vm12201_vm2 = vnez %v11929_v17  ;;  %v12205_v18 = vld [vmem:[#allocation41_spill] sm:$0xff]  ;;  %12207 = vst [vmem:[#allocation40_spill] sm:$0xff] %v8989_v42  ;;  %v12208_v17 = vld [vmem:[#allocation42_spill] sm:$0xff] }
 0x13b   : > { %5741 = vmatprep.subr.msk.bf16.mxu1 %vm12188_vm15, %v6239_v14  ;;  %2189 = vmatprep.mubr.bf16.mxu0 %v6240_v16  ;;  %vm12202_vm15 = vnez %v11935_v3  ;;  %12216 = vst [vmem:[#allocation41_spill] sm:$0xff] %v9018_v57  ;;  %12217 = vst [vmem:[#allocation42_spill] sm:$0xff] %v9023_v58 }
 0x13c   : > { %2302 = vmatprep.mubr.bf16.mxu1 %v6240_v16  ;;  %6014 = vset.pattern.permute.xlu0 %v6240_v16 }
 0x13d   : > { %5711 = vmatpush1.bf16.msk.msra.mxu0 %vm12189_vm3, %v6239_v14  ;;  %6015 = vset.pattern.permute.xlu1 %v6241_v1  ;;  %vm12204_vm3 = vnez %v12203_v41 }
 0x13e   : > { %5743 = vmatpush1.bf16.msk.msra.mxu1 %vm12190_vm13, %v6239_v14  ;;  %5713 = vmatprep.subr.msk.bf16.mxu0 %vm12191_vm9, %v6239_v14  ;;  %vm12206_vm13 = vnez %v12205_v18  ;;  %vm12209_vm9 = vnez %v12208_v17 }
 0x13f   : > { %5745 = vmatprep.subr.msk.bf16.mxu1 %vm12192_vm5, %v6239_v14  ;;  %2978 = vperm.xlu1 %6015, %v8989_v42   ;;  %vm12211_vm5 = vnez %v12210_v43 }
 0x140   : > { %2930 = vperm.xlu0 %6014, %v8989_v42  }
 0x141   : > { %5715 = vmatpush1.bf16.msk.msra.mxu0 %vm12193_vm4, %v6239_v14  ;;  %vm12213_vm4 = vnez %v12212_v54 }
 0x142   : > { %5747 = vmatpush1.bf16.msk.msra.mxu1 %vm12194_vm0, %v6239_v14  ;;  %5717 = vmatprep.subr.msk.bf16.mxu0 %vm12195_vm1, %v6239_v14  ;;  %vm12215_vm0 = vnez %v12214_v55  ;;  %vm12219_vm1 = vnez %v12218_v59 }
 0x143   : > { %5749 = vmatprep.subr.msk.bf16.mxu1 %vm12196_vm6, %v6239_v14  ;;  %6016 = vset.pattern.permute.xlu1 %v6240_v16  ;;  %vm12221_vm6 = vnez %v12220_v60 }
 0x144   : > { %2925 = vperm.xlu0 %6014, %v9018_v57   ;;  %2920 = vperm.xlu1 %6016, %v9023_v58  }
 0x145   : > { %5719 = vmatpush1.bf16.msk.msra.mxu0 %vm12197_vm7, %v6239_v14  ;;  %vm12223_vm7 = vnez %v12222_v61 }
 0x146   : > { %5751 = vmatpush1.bf16.msk.msra.mxu1 %vm12198_vm10, %v6239_v14  ;;  %5721 = vmatprep.subr.msk.bf16.mxu0 %vm12199_vm12, %v6239_v14  ;;  %vm12225_vm10 = vnez %v12224_v62  ;;  %vm12227_vm12 = vnez %v12226_v63 }
 0x147   : > { %5753 = vmatprep.subr.msk.bf16.mxu1 %vm12200_vm14, %v6239_v14  ;;  %vm12229_vm14 = vnez %v12228_v0 }
 0x148   : > { %6017 = vset.pattern.permute.xlu0 %v6241_v1  ;;  %2915 = vperm.xlu1 %6016, %v9052_v4  }
 0x149   : > { %5723 = vmatpush1.bf16.msk.msra.mxu0 %vm12201_vm2, %v6239_v14  ;;  %vm12232_vm2 = vnez %v12231_v5  ;;  %2974 = vperm.xlu0 %6017, %v9018_v57  }
 0x14a   : > { %5755 = vmatpush1.bf16.msk.msra.mxu1 %vm12202_vm15, %v6239_v14  ;;  %5757 = vmatprep.subr.msk.bf16.mxu0 %vm12204_vm3, %v6239_v14  ;;  %vm12234_vm15 = vnez %v12233_v6  ;;  %vm12236_vm3 = vnez %v12235_v9 }
 0x14b   : > { %5789 = vmatprep.subr.msk.bf16.mxu1 %vm12206_vm13, %v6239_v14  ;;  %vm12238_vm13 = vnez %v12237_v10 }
 0x14c   : > { %2190 = vmatmul.mubr.bf16.vlgmr.msra.gmra.mxu0 %v8972_v34  ;;  %6018 = vset.pattern.permute.xlu1 %v6241_v1 }
 0x14d   : > { %2303 = vmatmul.mubr.bf16.vlgmr.msra.gmra.mxu1 %v8972_v34  ;;  %2199 = vmatprep.mubr.bf16.mxu0 %v6240_v16 }
 0x14e   : > { %2312 = vmatprep.mubr.bf16.mxu1 %v6240_v16  ;;  %5759 = vmatpush1.bf16.msk.msra.mxu0 %vm12209_vm9, %v6239_v14  ;;  %vm12239_vm9 = vnez %v12047_v40 }
 0x14f   : > { %5791 = vmatpush1.bf16.msk.msra.mxu1 %vm12211_vm5, %v6239_v14  ;;  %5761 = vmatprep.subr.msk.bf16.mxu0 %vm12213_vm4, %v6239_v14  ;;  %vm12241_vm5 = vnez %v12240_v11  ;;  %vm12243_vm4 = vnez %v12242_v12 }
 0x150   : > { %5793 = vmatprep.subr.msk.bf16.mxu1 %vm12215_vm0, %v6239_v14  ;;  %vm12245_vm0 = vnez %v12244_v36  ;;  %2966 = vperm.xlu0 %6017, %v9052_v4  }
 0x151   : > { %2970 = vperm.xlu1 %6018, %v9023_v58  }
 0x152   : > { %5763 = vmatpush1.bf16.msk.msra.mxu0 %vm12219_vm1, %v6239_v14  ;;  %vm12246_vm1 = vnez %v12070_v20  ;;  %v12251_v20 = vld [vmem:[#allocation59_spill] sm:$0xff] }
 0x153   : > { %5795 = vmatpush1.bf16.msk.msra.mxu1 %vm12221_vm6, %v6239_v14  ;;  %5765 = vmatprep.subr.msk.bf16.mxu0 %vm12223_vm7, %v6239_v14  ;;  %vm12247_vm6 = vnez %v12076_v47  ;;  %vm12248_vm7 = vnez %v12080_v51 }
 0x154   : > { %5797 = vmatprep.subr.msk.bf16.mxu1 %vm12225_vm10, %v6239_v14  ;;  %2200 = vmatmul.mubr.bf16.gmra.mxu0 %v9012_v56  ;;  %vm12249_vm10 = vnez %v12085_v52 }
 0x155   : > { %2313 = vmatmul.mubr.bf16.gmra.mxu1 %v9012_v56  ;;  %2209 = vmatprep.mubr.bf16.mxu0 %v6240_v16 }
 0x156   : > { %2322 = vmatprep.mubr.bf16.mxu1 %v6240_v16  ;;  %5767 = vmatpush1.bf16.msk.msra.mxu0 %vm12227_vm12, %v6239_v14  ;;  %vm12250_vm12 = vnez %v12088_v53 }
 0x157   : > { %5799 = vmatpush1.bf16.msk.msra.mxu1 %vm12229_vm14, %v6239_v14  ;;  %5769 = vmatprep.subr.msk.bf16.mxu0 %vm12232_vm2, %v6239_v14  ;;  %vm12252_vm14 = vnez %v12251_v20  ;;  %vm12254_vm2 = vnez %v12253_v38 }
 0x158   : > { %5801 = vmatprep.subr.msk.bf16.mxu1 %vm12234_vm15, %v6239_v14  ;;  %vm12255_vm15 = vnez %v12108_v8  ;;  %v6031_v8 = vld [vmem:[%s11485_s2 + $0x28] sm:$0xff]  }
 0x15a   : > { %5771 = vmatpush1.bf16.msk.msra.mxu0 %vm12236_vm3, %v6239_v14  ;;  %vm12257_vm3 = vnez %v12256_v39 }
 0x15b   : > { %5803 = vmatpush1.bf16.msk.msra.mxu1 %vm12238_vm13, %v6239_v14  ;;  %5773 = vmatprep.subr.msk.bf16.mxu0 %vm12239_vm9, %v6239_v14  ;;  %vm12259_vm13 = vnez %v12258_v46 }
 0x15c   : > { %5805 = vmatprep.subr.msk.bf16.mxu1 %vm12241_vm5, %v6239_v14  ;;  %2210 = vmatmul.mubr.bf16.gmra.mxu0 %v9063_v7 }
 0x15d   : > { %2323 = vmatmul.mubr.bf16.gmra.mxu1 %v9063_v7  ;;  %2219 = vmatprep.mubr.bf16.mxu0 %v6240_v16 }
 0x15e   : > { %2332 = vmatprep.mubr.bf16.mxu1 %v6240_v16  ;;  %5775 = vmatpush1.bf16.msk.msra.mxu0 %vm12243_vm4, %v6239_v14 }
 0x15f   : > { %5807 = vmatpush1.bf16.msk.msra.mxu1 %vm12245_vm0, %v6239_v14  ;;  %5777 = vmatprep.subr.msk.bf16.mxu0 %vm12246_vm1, %v6239_v14 }
 0x160   : > { %5809 = vmatprep.subr.msk.bf16.mxu1 %vm12247_vm6, %v6239_v14 }
 0x162   : > { %5779 = vmatpush1.bf16.msk.msra.mxu0 %vm12248_vm7, %v6239_v14 }
 0x163   : > { %5811 = vmatpush1.bf16.msk.msra.mxu1 %vm12249_vm10, %v6239_v14  ;;  %5781 = vmatprep.subr.msk.bf16.mxu0 %vm12250_vm12, %v6239_v14 }
 0x164   : > { %5813 = vmatprep.subr.msk.bf16.mxu1 %vm12252_vm14, %v6239_v14  ;;  %2220 = vmatmul.mubr.bf16.gmra.mxu0 %v9098_v37 }
 0x165   : > { %2333 = vmatmul.mubr.bf16.gmra.mxu1 %v9098_v37  ;;  %2229 = vmatprep.mubr.bf16.mxu0 %v6240_v16  ;;  %v9160_v49 = vpop.f32.mrf.mxu0  ;;  %v9162_v33 = vpop.f32.mrf.mxu1 }
 0x166   : > { %2342 = vmatprep.mubr.bf16.mxu1 %v6240_v16  ;;  %5783 = vmatpush1.bf16.msk.msra.mxu0 %vm12254_vm2, %v6239_v14 }
 0x167   : > { %5815 = vmatpush1.bf16.msk.msra.mxu1 %vm12255_vm15, %v6239_v14  ;;  %5785 = vmatprep.subr.msk.bf16.mxu0 %vm12257_vm3, %v6239_v14  ;;  %v9168_v50 = vpop.f32.mrf.mxu0  ;;  %v9170_v29 = vpop.f32.mrf.mxu1 }
 0x168   : > { %5817 = vmatprep.subr.msk.bf16.mxu1 %vm12259_vm13, %v6239_v14 }
 0x16a   : > { %5787 = vmatpush1.bf16.msk.msra.mxu0 %vm8616_vm8, %v6239_v14 }
 0x16b   : > { %5819 = vmatpush1.bf16.msk.msra.mxu1 %vm8634_vm11, %v6239_v14  ;;  %v9154_v14 = vld [vmem:[%s11485_s2 + $0x38] sm:$0xff]  }
 0x16c   : > { %2230 = vmatmul.mubr.bf16.gmra.mxu0 %v6030_v48 }
 0x16d   : > { %2343 = vmatmul.mubr.bf16.gmra.mxu1 %v6030_v48  ;;  %2239 = vmatprep.mubr.bf16.mxu0 %v6240_v16 }
 0x16e   : > { %2352 = vmatprep.mubr.bf16.mxu1 %v6240_v16 }
 0x174   : > { %2240 = vmatmul.mubr.bf16.gmra.mxu0 %v6031_v8 }
 0x175   : > { %2353 = vmatmul.mubr.bf16.gmra.mxu1 %v6031_v8  ;;  %2249 = vmatprep.mubr.bf16.mxu0 %v6240_v16 }
 0x176   : > { %2362 = vmatprep.mubr.bf16.mxu1 %v6240_v16 }
 0x17a   : > { %v9172_v32 = vpop.f32.mrf.mxu0  ;;  %v9174_v3 = vpop.f32.mrf.mxu1 }
 0x17c   : > { %2250 = vmatmul.mubr.bf16.gmra.mxu0 %v6032_v13  ;;  %v9180_v40 = vpop.f32.mrf.mxu0  ;;  %v9182_v47 = vpop.f32.mrf.mxu1 }
 0x17d   : > { %2363 = vmatmul.mubr.bf16.gmra.mxu1 %v6032_v13  ;;  %2259 = vmatprep.mubr.bf16.mxu0 %v6240_v16 }
 0x17e   : > { %2372 = vmatprep.mubr.bf16.mxu1 %v6240_v16 }
 0x180   : > { %v9184_v51 = vpop.f32.mrf.mxu0  ;;  %v9186_v52 = vpop.f32.mrf.mxu1 }
 0x182   : > { %v1365_v53 = vpop.f32.mrf.mxu0  ;;  %v1454_v45 = vpop.f32.mrf.mxu1 }
 0x184   : > { %2260 = vmatmul.mubr.bf16.gmra.mxu0 %v9154_v14 }
 0x185   : > { %2373 = vmatmul.mubr.bf16.gmra.mxu1 %v9154_v14  ;;  %2415 = vmatprep.mubr.bf16.mxu0 %v6240_v16 }
 0x186   : > { %2528 = vmatprep.mubr.bf16.mxu1 %v6240_v16  ;;  %v1369_v44 = vpop.f32.mrf.mxu0  ;;  %v1458_v1 = vpop.f32.mrf.mxu1 }
 0x188   : > { %v1460_v41 = vpop.f32.mrf.mxu1 }
 0x18c   : > { %2416 = vmatmul.mubr.bf16.vlgmr.msra.gmra.mxu0 %v8972_v34 }
 0x18d   : > { %2529 = vmatmul.mubr.bf16.vlgmr.msra.gmra.mxu1 %v8972_v34  ;;  %2425 = vmatprep.mubr.bf16.mxu0 %v6240_v16  ;;  %v1371_v34 = vpop.f32.mrf.mxu0 }
 0x18e   : > { %2538 = vmatprep.mubr.bf16.mxu1 %v6240_v16 }
 0x18f   : > { %v9196_v18 = vpop.f32.mrf.mxu0  ;;  %v9198_v17 = vpop.f32.mrf.mxu1 }
 0x190   : > { %12260 = vst [vmem:[#allocation44_spill] sm:$0xff] %v9196_v18  ;;  %12261 = vst [vmem:[#allocation45_spill] sm:$0xff] %v9198_v17 }
 0x191   : > { %v9202_v43 = vpop.f32.mrf.mxu0  ;;  %v9204_v54 = vpop.f32.mrf.mxu1 }
 0x192   : > { %12262 = vst [vmem:[#allocation46_spill] sm:$0xff] %v9202_v43  ;;  %12263 = vst [vmem:[#allocation47_spill] sm:$0xff] %v9204_v54 }
 0x194   : > { %2426 = vmatmul.mubr.bf16.gmra.mxu0 %v9012_v56 }
 0x195   : > { %2539 = vmatmul.mubr.bf16.gmra.mxu1 %v9012_v56  ;;  %2435 = vmatprep.mubr.bf16.mxu0 %v6240_v16 }
 0x196   : > { %2548 = vmatprep.mubr.bf16.mxu1 %v6240_v16 }
 0x19c   : > { %2436 = vmatmul.mubr.bf16.gmra.mxu0 %v9063_v7 }
 0x19d   : > { %2549 = vmatmul.mubr.bf16.gmra.mxu1 %v9063_v7  ;;  %2445 = vmatprep.mubr.bf16.mxu0 %v6240_v16 }
 0x19e   : > { %2558 = vmatprep.mubr.bf16.mxu1 %v6240_v16 }
 0x1a4   : > { %2446 = vmatmul.mubr.bf16.gmra.mxu0 %v9098_v37 }
 0x1a5   : > { %2559 = vmatmul.mubr.bf16.gmra.mxu1 %v9098_v37  ;;  %2455 = vmatprep.mubr.bf16.mxu0 %v6240_v16 }
 0x1a6   : > { %2568 = vmatprep.mubr.bf16.mxu1 %v6240_v16 }
 0x1ac   : > { %2456 = vmatmul.mubr.bf16.gmra.mxu0 %v6030_v48  ;;  %v9206_v55 = vpop.f32.mrf.mxu0  ;;  %v9208_v56 = vpop.f32.mrf.mxu1 }
 0x1ad   : > { %2569 = vmatmul.mubr.bf16.gmra.mxu1 %v6030_v48  ;;  %2465 = vmatprep.mubr.bf16.mxu0 %v6240_v16 }
 0x1ae   : > { %2578 = vmatprep.mubr.bf16.mxu1 %v6240_v16  ;;  %v9210_v59 = vpop.f32.mrf.mxu0  ;;  %v9212_v60 = vpop.f32.mrf.mxu1 }
 0x1af   : > { %12264 = vst [vmem:[#allocation48_spill] sm:$0xff] %v9210_v59  ;;  %12265 = vst [vmem:[#allocation49_spill] sm:$0xff] %v9212_v60 }
 0x1b4   : > { %2466 = vmatmul.mubr.bf16.gmra.mxu0 %v6031_v8  ;;  %v9216_v61 = vpop.f32.mrf.mxu0  ;;  %v9218_v62 = vpop.f32.mrf.mxu1 }
 0x1b5   : > { %2579 = vmatmul.mubr.bf16.gmra.mxu1 %v6031_v8  ;;  %2475 = vmatprep.mubr.bf16.mxu0 %v6240_v16 }
 0x1b6   : > { %2588 = vmatprep.mubr.bf16.mxu1 %v6240_v16  ;;  %v9220_v63 = vpop.f32.mrf.mxu0  ;;  %v9222_v0 = vpop.f32.mrf.mxu1 }
 0x1b7   : > { %12266 = vst [vmem:[#allocation50_spill] sm:$0xff] %v9220_v63  ;;  %12267 = vst [vmem:[#allocation51_spill] sm:$0xff] %v9222_v0 }
 0x1ba   : > { %v9224_v5 = vpop.f32.mrf.mxu0  ;;  %v9226_v6 = vpop.f32.mrf.mxu1 }
 0x1bc   : > { %2476 = vmatmul.mubr.bf16.gmra.mxu0 %v6032_v13  ;;  %v9230_v7 = vpop.f32.mrf.mxu0  ;;  %v9232_v9 = vpop.f32.mrf.mxu1 }
 0x1bd   : > { %2589 = vmatmul.mubr.bf16.gmra.mxu1 %v6032_v13  ;;  %2485 = vmatprep.mubr.bf16.mxu0 %v6240_v16  ;;  %12268 = vst [vmem:[#allocation52_spill] sm:$0xff] %v9230_v7  ;;  %12269 = vst [vmem:[#allocation53_spill] sm:$0xff] %v9232_v9 }
 0x1be   : > { %2598 = vmatprep.mubr.bf16.mxu1 %v6240_v16 }
 0x1c2   : > { %v1707_v10 = vpop.f32.mrf.mxu0 }
 0x1c3   : > { %v1796_v11 = vpop.f32.mrf.mxu1 }
 0x1c4   : > { %2486 = vmatmul.mubr.bf16.gmra.mxu0 %v9154_v14  ;;  %v1709_v12 = vpop.f32.mrf.mxu0 }
 0x1c5   : > { %2599 = vmatmul.mubr.bf16.gmra.mxu1 %v9154_v14  ;;  %v1798_v36 = vpop.f32.mrf.mxu1  ;;  %3178 = vmatprep.mubr.f32.mxu0 %v12004_v15 }
 0x1c6   : > { %3291 = vmatprep.mubr.f32.mxu1 %v12004_v15 }
 0x1c8   : > { %v1713_v37 = vpop.f32.mrf.mxu0  ;;  %v1802_v20 = vpop.f32.mrf.mxu1 }
 0x1ca   : > { %v1715_v38 = vpop.f32.mrf.mxu0  ;;  %v1804_v16 = vpop.f32.mrf.mxu1 }
 0x1cb   : > { %v2006_v18 = vmul.f32 %v1715_v38, %v9180_v40  ;;  %v2008_v4 = vmul.f32 %v1804_v16, %v9182_v47  ;;  %v1999_v40 = vmul.f32 %v1796_v11, %v9162_v33 }
 0x1cc   : > { %v1719_v39 = vpop.f32.mrf.mxu0 }
 0x1cd   : > { %v2013_v17 = vmul.f32 %v1719_v39, %v9184_v51  ;;  %v2000_v51 = vmul.f32 %v1798_v36, %v9170_v29  ;;  %v12286_v39 = vld [vmem:[#allocation18_spill] sm:$0xff] }
 0x1ce   : > { %v1808_v46 = vpop.f32.mrf.mxu1  ;;  %v1721_v48 = vpop.f32.mrf.mxu0 }
 0x1cf   : > { %v2014_v54 = vmul.f32 %v1721_v48, %v1365_v53  ;;  %v2015_v58 = vmul.f32 %v1808_v46, %v9186_v52  ;;  %v1998_v53 = vmul.f32 %v1709_v12, %v9168_v50  ;;  %v1997_v52 = vmul.f32 %v1707_v10, %v9160_v49  ;;  %v12287_v46 = vld [vmem:[#allocation21_spill] sm:$0xff] }
 0x1d0   : > { %v1810_v8 = vpop.f32.mrf.mxu1  ;;  %vm12288_vm11 = vcmp.eq.s32.totalorder %v12286_v39, %v12287_v46  ;;  %vm12297_vm4 = vcmp.eq.s32.totalorder %v6473_v2, %v12287_v46  ;;  %vm12301_vm7 = vcmp.eq.s32.totalorder %v6817_v35, %v12287_v46  ;;  %vm12305_vm2 = vcmp.eq.s32.totalorder %v6787_v31, %v12287_v46 }
 0x1d1   : > { %v2016_v43 = vmul.f32 %v1810_v8, %v1454_v45  ;;  %v9318_v48 = vsel %vm12288_vm11, 1.0, %v12004_v15  ;;  %v12290_v8 = vld [vmem:[#allocation22_spill] sm:$0xff]  ;;  %vm12309_vm11 = vcmp.eq.s32.totalorder %v6772_v30, %v12287_v46 }
 0x1d2   : > { %12289 = vst [vmem:[#allocation21_spill] sm:$0xff] %v9318_v48  ;;  %vm12291_vm8 = vcmp.eq.s32.totalorder %v12286_v39, %v12290_v8  ;;  %vm12298_vm0 = vcmp.eq.s32.totalorder %v6473_v2, %v12290_v8  ;;  %vm12302_vm10 = vcmp.eq.s32.totalorder %v6817_v35, %v12290_v8  ;;  %vm12306_vm15 = vcmp.eq.s32.totalorder %v6787_v31, %v12290_v8 }
 0x1d5   : > { %v1725_v13 = vpop.f32.mrf.mxu0 }
 0x1d6   : > { %v1814_v9 = vpop.f32.mrf.mxu1  ;;  %v2021_v60 = vmul.f32 %v1725_v13, %v1369_v44  ;;  %v2007_v44 = vmul.f32 %v1802_v20, %v9174_v3  ;;  %v9324_v13 = vsel %vm12291_vm8, 1.0, %v12004_v15  ;;  %vm12310_vm8 = vcmp.eq.s32.totalorder %v6772_v30, %v12290_v8 }
 0x1d7   : > { %v1727_v7 = vpop.f32.mrf.mxu0  ;;  %v2023_v59 = vmul.f32 %v1814_v9, %v1458_v1  ;;  %12292 = vst [vmem:[#allocation22_spill] sm:$0xff] %v9324_v13 }
 0x1d8   : > { %v1816_v0 = vpop.f32.mrf.mxu1  ;;  %v2022_v63 = vmul.f32 %v1727_v7, %v1371_v34  ;;  %v2005_v34 = vmul.f32 %v1713_v37, %v9172_v32 }
 0x1d9   : > { %v2024_v14 = vmul.f32 %v1816_v0, %v1460_v41 }
 0x1da   : > { %3130 = vmatprep.subr.mxu0 %v2022_v63 }
 0x1db   : > { %3243 = vmatprep.subr.mxu1 %v2024_v14  ;;  %3131 = vmatpush1.msra.mxu0 %v2021_v60  ;;  %v12293_v14 = vld [vmem:[#allocation23_spill] sm:$0xff] }
 0x1dc   : > { %3244 = vmatpush1.msra.mxu1 %v2023_v59  ;;  %3132 = vmatprep.subr.mxu0 %v2014_v54  ;;  %vm12294_vm9 = vcmp.eq.s32.totalorder %v6473_v2, %v12293_v14  ;;  %vm12299_vm1 = vcmp.eq.s32.totalorder %v6817_v35, %v12293_v14  ;;  %vm12303_vm12 = vcmp.eq.s32.totalorder %v6787_v31, %v12293_v14 }
 0x1dd   : > { %3245 = vmatprep.subr.mxu1 %v2016_v43  ;;  %3133 = vmatpush1.msra.mxu0 %v2013_v17  ;;  %vm12307_vm3 = vcmp.eq.s32.totalorder %v6772_v30, %v12293_v14 }
 0x1de   : > { %3246 = vmatpush1.msra.mxu1 %v2015_v58  ;;  %3134 = vmatprep.subr.mxu0 %v2006_v18 }
 0x1df   : > { %3247 = vmatprep.subr.mxu1 %v2008_v4  ;;  %3135 = vmatpush1.msra.mxu0 %v2005_v34  ;;  %v9330_v34 = vsel %vm12294_vm9, 1.0, %v12004_v15  ;;  %vm12311_vm9 = vcmp.eq.s32.totalorder %v6744_v28, %v12293_v14 }
 0x1e0   : > { %3248 = vmatpush1.msra.mxu1 %v2007_v44  ;;  %3136 = vmatprep.subr.mxu0 %v1998_v53  ;;  %v12295_v44 = vld [vmem:[#allocation24_spill] sm:$0xff] }
 0x1e1   : > { %3249 = vmatprep.subr.mxu1 %v2000_v51  ;;  %3137 = vmatpush1.msra.mxu0 %v1997_v52  ;;  %vm12296_vm5 = vcmp.eq.s32.totalorder %v6473_v2, %v12295_v44  ;;  %v9342_v51 = vsel %vm12297_vm4, 1.0, %v12004_v15  ;;  %v9348_v52 = vsel %vm12298_vm0, 1.0, %v12004_v15  ;;  %vm12300_vm6 = vcmp.eq.s32.totalorder %v6817_v35, %v12295_v44 }
 0x1e2   : > { %3250 = vmatpush1.msra.mxu1 %v1999_v40  ;;  %v9336_v53 = vsel %vm12296_vm5, 1.0, %v12004_v15  ;;  %vm12304_vm14 = vcmp.eq.s32.totalorder %v6787_v31, %v12295_v44  ;;  %vm12308_vm13 = vcmp.eq.s32.totalorder %v6772_v30, %v12295_v44  ;;  %vm12312_vm5 = vcmp.eq.s32.totalorder %v6744_v28, %v12295_v44 }
 0x1e3   : > { %vm12313_vm4 = vcmp.eq.s32.totalorder %v6744_v28, %v12287_v46  ;;  %vm12314_vm0 = vcmp.eq.s32.totalorder %v6744_v28, %v12290_v8 }
 0x1eb   : > { %v9248_v32 = vpop.f32.mrf.mxu0 }
 0x1ec   : > { %12270 = vst [vmem:[#allocation54_spill] sm:$0xff] %v9248_v32  ;;  %v9250_v3 = vpop.f32.mrf.mxu1 }
 0x1ed   : > { %12271 = vst [vmem:[#allocation55_spill] sm:$0xff] %v9250_v3  ;;  %v9252_v58 = vpop.f32.mrf.mxu0 }
 0x1ee   : > { %12272 = vst [vmem:[#allocation56_spill] sm:$0xff] %v9252_v58  ;;  %v9254_v50 = vpop.f32.mrf.mxu1  ;;  %v9454_v58 = vsel %vm12314_vm0, 1.0, %v12004_v15  ;;  %vm12342_vm0 = vcmp.eq.s32.totalorder %v6636_v24, %v12290_v8 }
 0x1ef   : > { %12273 = vst [vmem:[#allocation57_spill] sm:$0xff] %v9254_v50  ;;  %v1891_v29 = vpop.f32.mrf.mxu0 }
 0x1f0   : > { %v1980_v4 = vpop.f32.mrf.mxu1  ;;  %v9257_v49 = vmul.f32 %v1891_v29, %v9206_v55 }
 0x1f1   : > { %v9260_v33 = vmul.f32 %v1980_v4, %v9208_v56  ;;  %v9262_v47 = vpop.f32.mrf.mxu0  ;;  %v9358_v4 = vsel %vm12299_vm1, 1.0, %v12004_v15  ;;  %vm12315_vm1 = vcmp.eq.s32.totalorder %v6717_v27, %v12293_v14 }
 0x1f2   : > { %12274 = vst [vmem:[#allocation58_spill] sm:$0xff] %v9257_v49  ;;  %12276 = vst [vmem:[#allocation60_spill] sm:$0xff] %v9262_v47  ;;  %v9264_v45 = vpop.f32.mrf.mxu1  ;;  %v9394_v49 = vsel %vm12305_vm2, 1.0, %v12004_v15  ;;  %v9446_v47 = vsel %vm12313_vm4, 1.0, %v12004_v15  ;;  %v9462_v32 = vsel %vm12315_vm1, 1.0, %v12004_v15  ;;  %vm12324_vm2 = vcmp.eq.s32.totalorder %v6690_v26, %v12287_v46 }
 0x1f3   : > { %12275 = vst [vmem:[#allocation59_spill] sm:$0xff] %v9260_v33  ;;  %12277 = vst [vmem:[#allocation61_spill] sm:$0xff] %v9264_v45  ;;  %v1897_v1 = vpop.f32.mrf.mxu0  ;;  %v9388_v33 = vsel %vm12304_vm14, 1.0, %v12004_v15  ;;  %v9440_v45 = vsel %vm12312_vm5, 1.0, %v12004_v15  ;;  %vm12322_vm14 = vcmp.eq.s32.totalorder %v6690_v26, %v12295_v44  ;;  %vm12338_vm5 = vcmp.eq.s32.totalorder %v6636_v24, %v12295_v44 }
 0x1f4   : > { %v1986_v41 = vpop.f32.mrf.mxu1  ;;  %v9267_v18 = vmul.f32 %v1897_v1, %v9216_v61  ;;  %v9364_v1 = vsel %vm12300_vm6, 1.0, %v12004_v15  ;;  %vm12316_vm6 = vcmp.eq.s32.totalorder %v6717_v27, %v12295_v44  ;;  %v9496_v31 = vsel %vm12322_vm14, 1.0, %v12004_v15 }
 0x1f5   : > { %v9270_v17 = vmul.f32 %v1986_v41, %v9218_v62  ;;  %v9272_v43 = vpop.f32.mrf.mxu0  ;;  %v9370_v41 = vsel %vm12301_vm7, 1.0, %v12004_v15  ;;  %v9468_v42 = vsel %vm12316_vm6, 1.0, %v12004_v15  ;;  %vm12317_vm7 = vcmp.eq.s32.totalorder %v6717_v27, %v12287_v46  ;;  %12323 = vst [vmem:[#allocation70_spill] sm:$0xff] %v9496_v31 }
 0x1f6   : > { %12278 = vst [vmem:[#allocation62_spill] sm:$0xff] %v9267_v18  ;;  %12280 = vst [vmem:[#allocation64_spill] sm:$0xff] %v9272_v43  ;;  %v9274_v54 = vpop.f32.mrf.mxu1  ;;  %v9434_v43 = vsel %vm12311_vm9, 1.0, %v12004_v15  ;;  %v9474_v28 = vsel %vm12317_vm7, 1.0, %v12004_v15  ;;  %vm12336_vm9 = vcmp.eq.s32.totalorder %v6636_v24, %v12293_v14  ;;  %vm12340_vm4 = vcmp.eq.s32.totalorder %v6636_v24, %v12287_v46 }
 0x1f7   : > { %12279 = vst [vmem:[#allocation63_spill] sm:$0xff] %v9270_v17  ;;  %12281 = vst [vmem:[#allocation65_spill] sm:$0xff] %v9274_v54  ;;  %v1903_v55 = vpop.f32.mrf.mxu0  ;;  %v9400_v17 = vsel %vm12306_vm15, 1.0, %v12004_v15  ;;  %v9428_v54 = vsel %vm12310_vm8, 1.0, %v12004_v15  ;;  %vm12326_vm15 = vcmp.eq.s32.totalorder %v6690_v26, %v12290_v8  ;;  %vm12334_vm8 = vcmp.eq.s32.totalorder %v6663_v25, %v12290_v8 }
 0x1f8   : > { %v1992_v59 = vpop.f32.mrf.mxu1  ;;  %v9277_v56 = vmul.f32 %v1903_v55, %v9224_v5  ;;  %v9376_v55 = vsel %vm12302_vm10, 1.0, %v12004_v15  ;;  %vm12318_vm10 = vcmp.eq.s32.totalorder %v6717_v27, %v12290_v8  ;;  %v9502_v27 = vsel %vm12324_vm2, 1.0, %v12004_v15 }
 0x1f9   : > { %v9280_v60 = vmul.f32 %v1992_v59, %v9226_v6  ;;  %v9282_v63 = vpop.f32.mrf.mxu0  ;;  %v9382_v59 = vsel %vm12303_vm12, 1.0, %v12004_v15  ;;  %v9480_v57 = vsel %vm12318_vm10, 1.0, %v12004_v15  ;;  %vm12320_vm12 = vcmp.eq.s32.totalorder %v6690_v26, %v12293_v14  ;;  %12325 = vst [vmem:[#allocation71_spill] sm:$0xff] %v9502_v27 }
 0x1fa   : > { %12282 = vst [vmem:[#allocation66_spill] sm:$0xff] %v9277_v56  ;;  %12284 = vst [vmem:[#allocation68_spill] sm:$0xff] %v9282_v63  ;;  %v9284_v0 = vpop.f32.mrf.mxu1  ;;  %v9410_v56 = vsel %vm12307_vm3, 1.0, %v12004_v15  ;;  %v9422_v63 = vsel %vm12309_vm11, 1.0, %v12004_v15  ;;  %v9490_v30 = vsel %vm12320_vm12, 1.0, %v12004_v15  ;;  %vm12328_vm3 = vcmp.eq.s32.totalorder %v6663_v25, %v12293_v14 }
 0x1fb   : > { %12283 = vst [vmem:[#allocation67_spill] sm:$0xff] %v9280_v60  ;;  %12285 = vst [vmem:[#allocation69_spill] sm:$0xff] %v9284_v0  ;;  %v9416_v0 = vsel %vm12308_vm13, 1.0, %v12004_v15  ;;  %vm12330_vm13 = vcmp.eq.s32.totalorder %v6663_v25, %v12295_v44  ;;  %vm12332_vm11 = vcmp.eq.s32.totalorder %v6663_v25, %v12287_v46  ;;  %v9532_v26 = vsel %vm12334_vm8, 1.0, %v12004_v15 }
 0x1fc   : > { %12319 = vst [vmem:[#allocation23_spill] sm:$0xff] %v9480_v57  ;;  %12321 = vst [vmem:[#allocation24_spill] sm:$0xff] %v9490_v30  ;;  %v9508_v57 = vsel %vm12326_vm15, 1.0, %v12004_v15  ;;  %v9514_v30 = vsel %vm12328_vm3, 1.0, %v12004_v15  ;;  %v9520_v31 = vsel %vm12330_vm13, 1.0, %v12004_v15  ;;  %v9526_v27 = vsel %vm12332_vm11, 1.0, %v12004_v15 }
 0x1fd   : > { %12327 = vst [vmem:[#allocation72_spill] sm:$0xff] %v9508_v57  ;;  %12329 = vst [vmem:[#allocation73_spill] sm:$0xff] %v9514_v30  ;;  %v9554_v25 = vsel %vm12340_vm4, 1.0, %v12004_v15  ;;  %vm12344_vm1 = vcmp.eq.s32.totalorder %v6609_v23, %v12293_v14  ;;  %vm12346_vm6 = vcmp.eq.s32.totalorder %v6609_v23, %v12295_v44  ;;  %vm12348_vm7 = vcmp.eq.s32.totalorder %v6609_v23, %v12287_v46 }
 0x1fe   : > { %12331 = vst [vmem:[#allocation74_spill] sm:$0xff] %v9520_v31  ;;  %12333 = vst [vmem:[#allocation75_spill] sm:$0xff] %v9526_v27  ;;  %v9542_v31 = vsel %vm12336_vm9, 1.0, %v12004_v15  ;;  %v9548_v27 = vsel %vm12338_vm5, 1.0, %v12004_v15  ;;  %vm12350_vm10 = vcmp.eq.s32.totalorder %v6609_v23, %v12290_v8  ;;  %vm12352_vm12 = vcmp.eq.s32.totalorder %v6582_v22, %v12293_v14 }
 0x1ff   : > { %12335 = vst [vmem:[#allocation76_spill] sm:$0xff] %v9532_v26  ;;  %12337 = vst [vmem:[#allocation77_spill] sm:$0xff] %v9542_v31  ;;  %v9560_v26 = vsel %vm12342_vm0, 1.0, %v12004_v15  ;;  %v9566_v31 = vsel %vm12344_vm1, 1.0, %v12004_v15  ;;  %v9584_v24 = vsel %vm12350_vm10, 1.0, %v12004_v15  ;;  %vm12354_vm14 = vcmp.eq.s32.totalorder %v6582_v22, %v12295_v44 }
 0x200   : > { %12339 = vst [vmem:[#allocation78_spill] sm:$0xff] %v9548_v27  ;;  %12341 = vst [vmem:[#allocation79_spill] sm:$0xff] %v9554_v25  ;;  %v9572_v27 = vsel %vm12346_vm6, 1.0, %v12004_v15  ;;  %v9578_v25 = vsel %vm12348_vm7, 1.0, %v12004_v15  ;;  %vm12356_vm2 = vcmp.eq.s32.totalorder %v6582_v22, %v12287_v46  ;;  %vm12358_vm15 = vcmp.eq.s32.totalorder %v6582_v22, %v12290_v8 }
 0x201   : > { %12343 = vst [vmem:[#allocation80_spill] sm:$0xff] %v9560_v26  ;;  %12345 = vst [vmem:[#allocation81_spill] sm:$0xff] %v9566_v31  ;;  %v9606_v23 = vsel %vm12356_vm2, 1.0, %v12004_v15  ;;  %vm12360_vm3 = vcmp.eq.s32.totalorder %v6539_v21, %v12293_v14  ;;  %vm12362_vm13 = vcmp.eq.s32.totalorder %v6539_v21, %v12295_v44  ;;  %vm12364_vm11 = vcmp.eq.s32.totalorder %v6539_v21, %v12287_v46 }
 0x202   : > { %12347 = vst [vmem:[#allocation82_spill] sm:$0xff] %v9572_v27  ;;  %12349 = vst [vmem:[#allocation83_spill] sm:$0xff] %v9578_v25  ;;  %v9594_v27 = vsel %vm12352_vm12, 1.0, %v12004_v15  ;;  %v9600_v25 = vsel %vm12354_vm14, 1.0, %v12004_v15  ;;  %vm12366_vm8 = vcmp.eq.s32.totalorder %v6539_v21, %v12290_v8  ;;  %vm12370_vm9 = vcmp.eq.s32.totalorder %v6516_v19, %v12293_v14 }
 0x203   : > { %12351 = vst [vmem:[#allocation84_spill] sm:$0xff] %v9584_v24  ;;  %12353 = vst [vmem:[#allocation85_spill] sm:$0xff] %v9594_v27  ;;  %v9612_v24 = vsel %vm12358_vm15, 1.0, %v12004_v15  ;;  %v9618_v27 = vsel %vm12360_vm3, 1.0, %v12004_v15  ;;  %v9636_v22 = vsel %vm12366_vm8, 1.0, %v12004_v15  ;;  %vm12372_vm5 = vcmp.eq.s32.totalorder %v6516_v19, %v12295_v44 }
 0x204   : > { %12355 = vst [vmem:[#allocation86_spill] sm:$0xff] %v9600_v25  ;;  %12357 = vst [vmem:[#allocation87_spill] sm:$0xff] %v9606_v23  ;;  %v9624_v25 = vsel %vm12362_vm13, 1.0, %v12004_v15  ;;  %v9630_v23 = vsel %vm12364_vm11, 1.0, %v12004_v15  ;;  %vm12374_vm4 = vcmp.eq.s32.totalorder %v6516_v19, %v12287_v46  ;;  %vm12376_vm0 = vcmp.eq.s32.totalorder %v6516_v19, %v12290_v8 }
 0x205   : > { %12359 = vst [vmem:[#allocation88_spill] sm:$0xff] %v9612_v24  ;;  %12361 = vst [vmem:[#allocation89_spill] sm:$0xff] %v9618_v27  ;;  %v9658_v21 = vsel %vm12374_vm4, 1.0, %v12004_v15  ;;  %vm12396_vm3 = vcmp.eq.s32.totalorder %v12286_v39, %v12293_v14  ;;  %vm12398_vm13 = vcmp.eq.s32.totalorder %v12286_v39, %v12295_v44  ;;  %v12406_v39 = vld [vmem:[#allocation36_spill] sm:$0xff] }
 0x206   : > { %12363 = vst [vmem:[#allocation90_spill] sm:$0xff] %v9624_v25  ;;  %12365 = vst [vmem:[#allocation91_spill] sm:$0xff] %v9630_v23  ;;  %v9646_v25 = vsel %vm12370_vm9, 1.0, %v12004_v15  ;;  %v9652_v23 = vsel %vm12372_vm5, 1.0, %v12004_v15  ;;  %vm12407_vm9 = vcmp.eq.s32.totalorder %v6473_v2, %v12406_v39 }
 0x207   : > { %12367 = vst [vmem:[#allocation92_spill] sm:$0xff] %v9636_v22  ;;  %12371 = vst [vmem:[#allocation95_spill] sm:$0xff] %v9646_v25  ;;  %v9664_v22 = vsel %vm12376_vm0, 1.0, %v12004_v15  ;;  %v12378_v25 = vld [vmem:[#allocation20_spill] sm:$0xff] }
 0x208   : > { %12373 = vst [vmem:[#allocation96_spill] sm:$0xff] %v9652_v23  ;;  %12375 = vst [vmem:[#allocation97_spill] sm:$0xff] %v9658_v21  ;;  %vm12379_vm1 = vcmp.eq.s32.totalorder %v12378_v25, %v12293_v14  ;;  %vm12381_vm6 = vcmp.eq.s32.totalorder %v12378_v25, %v12295_v44  ;;  %vm12383_vm7 = vcmp.eq.s32.totalorder %v12378_v25, %v12287_v46 }
 0x209   : > { %12377 = vst [vmem:[#allocation98_spill] sm:$0xff] %v9664_v22  ;;  %v9676_v23 = vsel %vm12381_vm6, 1.0, %v12004_v15  ;;  %v9682_v21 = vsel %vm12383_vm7, 1.0, %v12004_v15  ;;  %vm12385_vm10 = vcmp.eq.s32.totalorder %v12378_v25, %v12290_v8 }
 0x20a   : > { %12382 = vst [vmem:[#allocation100_spill] sm:$0xff] %v9676_v23  ;;  %12384 = vst [vmem:[#allocation101_spill] sm:$0xff] %v9682_v21  ;;  %v9688_v19 = vsel %vm12385_vm10, 1.0, %v12004_v15 }
 0x20b   : > { %12386 = vst [vmem:[#allocation102_spill] sm:$0xff] %v9688_v19 }
 0x20c   : > { %v9286_v61 = vpop.f32.mrf.mxu0 }
 0x20d   : > { %v9288_v62 = vpop.f32.mrf.mxu1 }
 0x20e   : > { %v9290_v7 = vpop.f32.mrf.mxu0 }
 0x20f   : > { %v9292_v9 = vpop.f32.mrf.mxu1 }
 0x210   : > { %v9294_v10 = vpop.f32.mrf.mxu0 }
 0x211   : > { %v9296_v11 = vpop.f32.mrf.mxu1 }
 0x212   : > { %v9298_v5 = vpop.f32.mrf.mxu0 }
 0x213   : > { %v9300_v6 = vpop.f32.mrf.mxu1 }
 0x214   : > { %v9302_v12 = vpop.f32.mrf.mxu0 }
 0x215   : > { %v9304_v36 = vpop.f32.mrf.mxu1 }
 0x216   : > { %v9306_v37 = vpop.f32.mrf.mxu0 }
 0x217   : > { %v9308_v20 = vpop.f32.mrf.mxu1 }
 0x218   : > { %v9310_v38 = vpop.f32.mrf.mxu0 }
 0x219   : > { %v9312_v16 = vpop.f32.mrf.mxu1 }
 0x21a   : > { %v9350_v40 = vpop.f32.mrf.mxu0 }
 0x21b   : > { %v9352_v29 = vpop.f32.mrf.mxu1 }
 0x21c   : > { %v9402_v18 = vpop.f32.mrf.mxu0 }
 0x21d   : > { %v9404_v60 = vpop.f32.mrf.mxu1 }
 0x21e   : > { %v9448_v50 = vpop.f32.mrf.mxu0 }
 0x21f   : > { %v9456_v3 = vpop.f32.mrf.mxu1 }
 0x220   : > { %v9482_v13 = vpop.f32.mrf.mxu0 }
 0x221   : > { %v9484_v48 = vpop.f32.mrf.mxu1 }
 0x222   : > { %v9534_v57 = vpop.f32.mrf.mxu0 }
 0x223   : > { %v9536_v30 = vpop.f32.mrf.mxu1 }
 0x224   : > { %v9586_v26 = vpop.f32.mrf.mxu0 }
 0x225   : > { %v9588_v31 = vpop.f32.mrf.mxu1 }
 0x226   : > { %v9638_v24 = vpop.f32.mrf.mxu0 }
 0x227   : > { %12368 = vst [vmem:[#allocation93_spill] sm:$0xff] %v9638_v24  ;;  %v9640_v27 = vpop.f32.mrf.mxu1  ;;  %v12387_v24 = vld [vmem:[#allocation19_spill] sm:$0xff] }
 0x228   : > { %12369 = vst [vmem:[#allocation94_spill] sm:$0xff] %v9640_v27  ;;  %v9670_v27 = vsel %vm12379_vm1, 1.0, %v12004_v15  ;;  %v9690_v22 = vpop.f32.mrf.mxu0  ;;  %vm12388_vm12 = vcmp.eq.s32.totalorder %v12387_v24, %v12293_v14  ;;  %vm12390_vm14 = vcmp.eq.s32.totalorder %v12387_v24, %v12295_v44  ;;  %vm12392_vm2 = vcmp.eq.s32.totalorder %v12387_v24, %v12287_v46  ;;  %v12400_v46 = vld [vmem:[#allocation38_spill] sm:$0xff] }
 0x229   : > { %12380 = vst [vmem:[#allocation99_spill] sm:$0xff] %v9670_v27  ;;  %v9692_v27 = vpop.f32.mrf.mxu1  ;;  %v9698_v23 = vsel %vm12388_vm12, 1.0, %v12004_v15  ;;  %v9704_v21 = vsel %vm12390_vm14, 1.0, %v12004_v15  ;;  %v9710_v25 = vsel %vm12392_vm2, 1.0, %v12004_v15  ;;  %vm12394_vm15 = vcmp.eq.s32.totalorder %v12387_v24, %v12290_v8  ;;  %v12403_v8 = vld [vmem:[#allocation39_spill] sm:$0xff] }
 0x22a   : > { %12389 = vst [vmem:[#allocation103_spill] sm:$0xff] %v9698_v23  ;;  %12391 = vst [vmem:[#allocation104_spill] sm:$0xff] %v9704_v21  ;;  %v9716_v19 = vsel %vm12394_vm15, 1.0, %v12004_v15  ;;  %v9722_v23 = vsel %vm12396_vm3, 1.0, %v12004_v15  ;;  %v9728_v21 = vsel %vm12398_vm13, 1.0, %v12004_v15  ;;  %vm12401_vm11 = vcmp.eq.s32.totalorder %v6473_v2, %v12400_v46 }
 0x22b   : > { %12393 = vst [vmem:[#allocation105_spill] sm:$0xff] %v9710_v25  ;;  %12395 = vst [vmem:[#allocation106_spill] sm:$0xff] %v9716_v19  ;;  %v9734_v25 = vsel %vm12401_vm11, 1.0, %v12004_v15  ;;  %vm12404_vm8 = vcmp.eq.s32.totalorder %v6473_v2, %v12403_v8  ;;  %v2617_v14 = vmul.f32 %v9358_v4, %v9294_v10  ;;  %v9746_v44 = vpop.f32.mrf.mxu1  ;;  %vm12412_vm4 = vcmp.eq.s32.totalorder %v6817_v35, %v12400_v46 }
 0x22c   : > { %12397 = vst [vmem:[#allocation107_spill] sm:$0xff] %v9722_v23  ;;  %12399 = vst [vmem:[#allocation108_spill] sm:$0xff] %v9728_v21  ;;  %v9740_v24 = vsel %vm12404_vm8, 1.0, %v12004_v15  ;;  %v9744_v23 = vpop.f32.mrf.mxu0  ;;  %v9752_v21 = vsel %vm12407_vm9, 1.0, %v12004_v15  ;;  %v9764_v10 = vsel %vm12412_vm4, 1.0, %v12004_v15  ;;  %v2619_v4 = vmul.f32 %v9364_v1, %v9296_v11 }
 0x22d   : > { %12402 = vst [vmem:[#allocation109_spill] sm:$0xff] %v9734_v25  ;;  %12405 = vst [vmem:[#allocation110_spill] sm:$0xff] %v9740_v24  ;;  %v12409_v25 = vld [vmem:[#allocation37_spill] sm:$0xff]  ;;  %v2618_v24 = vmul.f32 %v9370_v41, %v9298_v5  ;;  %vm12413_vm0 = vcmp.eq.s32.totalorder %v6817_v35, %v12403_v8  ;;  %vm12415_vm1 = vcmp.eq.s32.totalorder %v6817_v35, %v12406_v39  ;;  %v9790_v41 = vpop.f32.mrf.mxu1 }
 0x22e   : > { %12408 = vst [vmem:[#allocation36_spill] sm:$0xff] %v9752_v21  ;;  %vm12410_vm5 = vcmp.eq.s32.totalorder %v6473_v2, %v12409_v25  ;;  %v9774_v21 = vsel %vm12413_vm0, 1.0, %v12004_v15  ;;  %v9780_v2 = vsel %vm12415_vm1, 1.0, %v12004_v15  ;;  %v2620_v11 = vmul.f32 %v9376_v55, %v9300_v6  ;;  %v9788_v1 = vpop.f32.mrf.mxu0 }
 0x22f   : > { %v9758_v19 = vsel %vm12410_vm5, 1.0, %v12004_v15  ;;  %12414 = vst [vmem:[#allocation111_spill] sm:$0xff] %v9774_v21  ;;  %12416 = vst [vmem:[#allocation112_spill] sm:$0xff] %v9780_v2  ;;  %v2625_v5 = vmul.f32 %v9382_v59, %v9302_v12  ;;  %vm12417_vm6 = vcmp.eq.s32.totalorder %v6817_v35, %v12409_v25  ;;  %v2611_v2 = vmul.f32 %v9336_v53, %v9288_v62  ;;  %v2346_v53 = vpop.f32.mrf.mxu1 }
 0x230   : > { %12411 = vst [vmem:[#allocation37_spill] sm:$0xff] %v9758_v19  ;;  %v2609_v19 = vmul.f32 %v9330_v34, %v9286_v61  ;;  %v9796_v21 = vsel %vm12417_vm6, 1.0, %v12004_v15  ;;  %v2610_v61 = vmul.f32 %v9342_v51, %v9290_v7  ;;  %v2627_v6 = vmul.f32 %v9388_v33, %v9304_v36  ;;  %v2233_v62 = vpop.f32.mrf.mxu0 }
 0x231   : > { %12418 = vst [vmem:[#allocation113_spill] sm:$0xff] %v9796_v21  ;;  %v2626_v12 = vmul.f32 %v9394_v49, %v9306_v37  ;;  %v2612_v34 = vmul.f32 %v9348_v52, %v9292_v9  ;;  %v2628_v35 = vmul.f32 %v9400_v17, %v9308_v20  ;;  %v2633_v59 = vmul.f32 %v9410_v56, %v9310_v38  ;;  %v2348_v56 = vpop.f32.mrf.mxu1 }
 0x232   : > { %v2737_v55 = vadd.f32 %v2617_v14, %v2609_v19  ;;  %v2779_v21 = vadd.f32 %v2619_v4, %v2611_v2  ;;  %v2758_v7 = vadd.f32 %v2618_v24, %v2610_v61  ;;  %v2635_v33 = vmul.f32 %v9416_v0, %v9312_v16  ;;  %v2235_v9 = vpop.f32.mrf.mxu0  ;;  %v12421_v2 = vld [vmem:[#allocation70_spill] sm:$0xff] }
 0x233   : > { %v2634_v49 = vmul.f32 %v9422_v63, %v9350_v40  ;;  %v2800_v36 = vadd.f32 %v2620_v11, %v2612_v34  ;;  %v2636_v19 = vmul.f32 %v9428_v54, %v9352_v29  ;;  %v2641_v17 = vmul.f32 %v9434_v43, %v9402_v18  ;;  %v2350_v18 = vpop.f32.mrf.mxu1 }
 0x234   : > { %v2738_v37 = vadd.f32 %v2737_v55, %v2625_v5  ;;  %v2780_v20 = vadd.f32 %v2779_v21, %v2627_v6  ;;  %v2759_v38 = vadd.f32 %v2758_v7, %v2626_v12  ;;  %v2643_v24 = vmul.f32 %v9440_v45, %v9404_v60  ;;  %v2237_v52 = vpop.f32.mrf.mxu0  ;;  %v12422_v5 = vld [vmem:[#allocation93_spill] sm:$0xff]  ;;  %v12425_v6 = vld [vmem:[#allocation72_spill] sm:$0xff]  ;;  %v12427_v7 = vld [vmem:[#allocation74_spill] sm:$0xff] }
 0x235   : > { %v2642_v0 = vmul.f32 %v9446_v47, %v9448_v50  ;;  %v2801_v16 = vadd.f32 %v2800_v36, %v2628_v35  ;;  %v2644_v51 = vmul.f32 %v9454_v58, %v9456_v3  ;;  %v2649_v54 = vmul.f32 %v9462_v32, %v9482_v13  ;;  %v12419_v47 = vld [vmem:[#allocation23_spill] sm:$0xff]  ;;  %v12420_v3 = vld [vmem:[#allocation24_spill] sm:$0xff]  ;;  %v2354_v32 = vpop.f32.mrf.mxu1 }
 0x236   : > { %v2739_v63 = vadd.f32 %v2738_v37, %v2633_v59  ;;  %v2781_v43 = vadd.f32 %v2780_v20, %v2635_v33  ;;  %v2760_v40 = vadd.f32 %v2759_v38, %v2634_v49  ;;  %v2651_v21 = vmul.f32 %v9468_v42, %v9484_v48  ;;  %v2241_v14 = vpop.f32.mrf.mxu0  ;;  %v12423_v42 = vld [vmem:[#allocation71_spill] sm:$0xff] }
 0x237   : > { %v2650_v45 = vmul.f32 %v9474_v28, %v9534_v57  ;;  %v2802_v60 = vadd.f32 %v2801_v16, %v2636_v19  ;;  %v2652_v29 = vmul.f32 %v12419_v47, %v9536_v30  ;;  %v2657_v58 = vmul.f32 %v12420_v3, %v9586_v26  ;;  %v12424_v57 = vld [vmem:[#allocation94_spill] sm:$0xff]  ;;  %v12426_v30 = vld [vmem:[#allocation73_spill] sm:$0xff]  ;;  %v2356_v26 = vpop.f32.mrf.mxu1  ;;  %v12429_v19 = vld [vmem:[#allocation76_spill] sm:$0xff] }
 0x238   : > { %v2740_v50 = vadd.f32 %v2739_v63, %v2641_v17  ;;  %v2782_v13 = vadd.f32 %v2781_v43, %v2643_v24  ;;  %v2761_v4 = vadd.f32 %v2760_v40, %v2642_v0  ;;  %v2659_v11 = vmul.f32 %v12421_v2, %v9588_v31  ;;  %v2243_v55 = vpop.f32.mrf.mxu0  ;;  %v12428_v31 = vld [vmem:[#allocation75_spill] sm:$0xff]  ;;  %v12436_v3 = vld [vmem:[#allocation81_spill] sm:$0xff] }
 0x239   : > { %v2658_v48 = vmul.f32 %v12423_v42, %v12422_v5  ;;  %v2803_v61 = vadd.f32 %v2802_v60, %v2644_v51  ;;  %v2660_v12 = vmul.f32 %v12425_v6, %v12424_v57  ;;  %v2665_v34 = vmul.f32 %v12426_v30, %v9690_v22  ;;  %v2358_v38 = vpop.f32.mrf.mxu1  ;;  %v12430_v24 = vld [vmem:[#allocation35_spill] sm:$0xff]  ;;  %v12439_v5 = vld [vmem:[#allocation84_spill] sm:$0xff] }
 0x23a   : > { %v2741_v28 = vadd.f32 %v2740_v50, %v2649_v54  ;;  %v2783_v35 = vadd.f32 %v2782_v13, %v2651_v21  ;;  %v2762_v59 = vadd.f32 %v2761_v4, %v2650_v45  ;;  %v2667_v33 = vmul.f32 %v12427_v7, %v9692_v27  ;;  %v2245_v20 = vpop.f32.mrf.mxu0  ;;  %v12432_v27 = vld [vmem:[#allocation77_spill] sm:$0xff]  ;;  %v12434_v40 = vld [vmem:[#allocation79_spill] sm:$0xff]  ;;  %v12435_v21 = vld [vmem:[#allocation80_spill] sm:$0xff] }
 0x23b   : > { %v2666_v49 = vmul.f32 %v12428_v31, %v9744_v23  ;;  %v2804_v36 = vadd.f32 %v2803_v61, %v2652_v29  ;;  %v2668_v17 = vmul.f32 %v12429_v19, %v9746_v44  ;;  %vm12431_vm7 = vcmp.eq.s32.totalorder %v12430_v24, %v12400_v46  ;;  %v12433_v23 = vld [vmem:[#allocation78_spill] sm:$0xff]  ;;  %v2360_v50 = vpop.f32.mrf.mxu1 }
 0x23c   : > { %v2742_v37 = vadd.f32 %v2741_v28, %v2657_v58  ;;  %v9854_v22 = vsel %vm12431_vm7, 1.0, %v12004_v15  ;;  %v2784_v0 = vadd.f32 %v2783_v35, %v2659_v11  ;;  %v2763_v16 = vadd.f32 %v2762_v59, %v2658_v48  ;;  %v2247_v60 = vpop.f32.mrf.mxu0  ;;  %v12437_v13 = vld [vmem:[#allocation82_spill] sm:$0xff]  ;;  %v12438_v11 = vld [vmem:[#allocation83_spill] sm:$0xff] }
 0x23d   : > { %v2673_v63 = vmul.f32 %v12432_v27, %v9788_v1  ;;  %v2675_v51 = vmul.f32 %v12433_v23, %v9790_v41  ;;  %v2805_v54 = vadd.f32 %v2804_v36, %v2660_v12  ;;  %v2674_v44 = vmul.f32 %v12434_v40, %v2233_v62  ;;  %v2364_v48 = vpop.f32.mrf.mxu1  ;;  %v12440_v62 = vld [vmem:[#allocation85_spill] sm:$0xff] }
 0x23e   : > { %v2743_v43 = vadd.f32 %v2742_v37, %v2665_v34  ;;  %v2676_v45 = vmul.f32 %v12435_v21, %v2346_v53  ;;  %v2785_v47 = vadd.f32 %v2784_v0, %v2667_v33  ;;  %v2764_v29 = vadd.f32 %v2763_v16, %v2666_v49  ;;  %v2251_v41 = vpop.f32.mrf.mxu0  ;;  %v12441_v53 = vld [vmem:[#allocation86_spill] sm:$0xff]  ;;  %v12447_v0 = vld [vmem:[#allocation92_spill] sm:$0xff] }
 0x23f   : > { %v2681_v58 = vmul.f32 %v12436_v3, %v2235_v9  ;;  %v2683_v4 = vmul.f32 %v12437_v13, %v2348_v56  ;;  %v2806_v2 = vadd.f32 %v2805_v54, %v2668_v17  ;;  %v2682_v1 = vmul.f32 %v12438_v11, %v2237_v52  ;;  %v12442_v9 = vld [vmem:[#allocation87_spill] sm:$0xff]  ;;  %v12443_v56 = vld [vmem:[#allocation88_spill] sm:$0xff]  ;;  %v2366_v52 = vpop.f32.mrf.mxu1 }
 0x240   : > { %v2684_v42 = vmul.f32 %v12439_v5, %v2350_v18  ;;  %v2744_v61 = vadd.f32 %v2743_v43, %v2673_v63  ;;  %v2786_v28 = vadd.f32 %v2785_v47, %v2675_v51  ;;  %v2689_v57 = vmul.f32 %v12440_v62, %v2241_v14  ;;  %v2253_v7 = vpop.f32.mrf.mxu0  ;;  %v2912_v18 = vld [vmem:[%s11488_s5 + $0x38] sm:$0xff]  ;;  %v12446_v17 = vld [vmem:[#allocation91_spill] sm:$0xff]  ;;  %v12449_v43 = vld [vmem:[#allocation96_spill] sm:$0xff] }
 0x241   : > { %v2691_v6 = vmul.f32 %v12441_v53, %v2354_v32  ;;  %v6242_v12 = vmov 2   ;;  %v2765_v30 = vadd.f32 %v2764_v29, %v2674_v44  ;;  %v2807_v34 = vadd.f32 %v2806_v2, %v2676_v45  ;;  %v12444_v14 = vld [vmem:[#allocation89_spill] sm:$0xff]  ;;  %v12445_v32 = vld [vmem:[#allocation90_spill] sm:$0xff]  ;;  %v2368_v27 = vpop.f32.mrf.mxu1  ;;  %v12448_v51 = vld [vmem:[#allocation95_spill] sm:$0xff] }
 0x242   : > { %6019 = vset.pattern.permute.xlu1 %v6242_v12  ;;  %v2690_v35 = vmul.f32 %v12442_v9, %v2243_v55  ;;  %v2692_v59 = vmul.f32 %v12443_v56, %v2356_v26  ;;  %6020 = vset.pattern.permute.xlu0 %v6242_v12  ;;  %v2745_v33 = vadd.f32 %v2744_v61, %v2681_v58  ;;  %v2255_v16 = vpop.f32.mrf.mxu0  ;;  %v12452_v13 = vld [vmem:[#allocation99_spill] sm:$0xff]  ;;  %v12453_v2 = vld [vmem:[#allocation100_spill] sm:$0xff] }
 0x243   : > { %v2787_v31 = vadd.f32 %v2786_v28, %v2683_v4  ;;  %v2697_v49 = vmul.f32 %v12444_v14, %v2245_v20  ;;  %v2699_v36 = vmul.f32 %v12445_v32, %v2358_v38  ;;  %3086 = vperm.xlu1 %6019, %v2912_v18   ;;  %v2766_v37 = vadd.f32 %v2765_v30, %v2682_v1  ;;  %v12450_v20 = vld [vmem:[#allocation97_spill] sm:$0xff]  ;;  %v12451_v38 = vld [vmem:[#allocation98_spill] sm:$0xff]  ;;  %v2370_v3 = vpop.f32.mrf.mxu1  ;;  %v12457_v30 = vld [vmem:[#allocation104_spill] sm:$0xff] }
 0x244   : > { %v2808_v19 = vadd.f32 %v2807_v34, %v2684_v42  ;;  %v2698_v55 = vmul.f32 %v12446_v17, %v2247_v60  ;;  %v2700_v26 = vmul.f32 %v12447_v0, %v2360_v50  ;;  %v2746_v63 = vadd.f32 %v2745_v33, %v2689_v57  ;;  %v2257_v29 = vpop.f32.mrf.mxu0  ;;  %v2910_v60 = vld [vmem:[%s11488_s5 + $0x28] sm:$0xff]  ;;  %v12454_v42 = vld [vmem:[#allocation101_spill] sm:$0xff]  ;;  %v2909_v18 = vld [vmem:[%s11488_s5 + $0x20] sm:$0xff] }
 0x245   : > { %v2788_v23 = vadd.f32 %v2787_v31, %v2691_v6  ;;  %v2705_v54 = vmul.f32 %v12448_v51, %v2251_v41  ;;  %v2707_v40 = vmul.f32 %v12449_v43, %v2364_v48  ;;  %v2767_v44 = vadd.f32 %v2766_v37, %v2690_v35  ;;  %v12455_v48 = vld [vmem:[#allocation102_spill] sm:$0xff]  ;;  %v2374_v62 = vpop.f32.mrf.mxu1  ;;  %v12456_v6 = vld [vmem:[#allocation103_spill] sm:$0xff]  ;;  %v2911_v33 = vld [vmem:[%s11488_s5 + $0x30] sm:$0xff] }
 0x246   : > { %v2809_v21 = vadd.f32 %v2808_v19, %v2692_v59  ;;  %v2706_v45 = vmul.f32 %v12450_v20, %v2253_v7  ;;  %v2708_v47 = vmul.f32 %v12451_v38, %v2366_v52  ;;  %v2747_v50 = vadd.f32 %v2746_v63, %v2697_v49  ;;  %v2261_v28 = vpop.f32.mrf.mxu0  ;;  %v12460_v49 = vld [vmem:[#allocation105_spill] sm:$0xff]  ;;  %3081 = vperm.xlu0 %6020, %v2911_v33   ;;  %v12465_v51 = vld [vmem:[#allocation107_spill] sm:$0xff]  ;;  %v12466_v43 = vld [vmem:[#allocation108_spill] sm:$0xff] }
 0x247   : > { %v2789_v58 = vadd.f32 %v2788_v23, %v2699_v36  ;;  %v2713_v4 = vmul.f32 %v12452_v13, %v2255_v16  ;;  %v2715_v11 = vmul.f32 %v12453_v2, %v2368_v27  ;;  %3076 = vperm.xlu1 %6019, %v2910_v60   ;;  %v2768_v1 = vadd.f32 %v2767_v44, %v2698_v55  ;;  %v2376_v59 = vpop.f32.mrf.mxu1  ;;  %v12461_v36 = vld [vmem:[#allocation106_spill] sm:$0xff]  ;;  %v12471_v13 = vld [vmem:[#allocation41_spill] sm:$0xff] }
 0x248   : > { %v2810_v5 = vadd.f32 %v2809_v21, %v2700_v26  ;;  %v2714_v41 = vmul.f32 %v12454_v42, %v2257_v29  ;;  %v2716_v61 = vmul.f32 %v12455_v48, %v2370_v3  ;;  %v2748_v57 = vadd.f32 %v2747_v50, %v2705_v54  ;;  %v2263_v56 = vpop.f32.mrf.mxu0  ;;  %v12463_v16 = vld [vmem:[#allocation34_spill] sm:$0xff]  ;;  %v12469_v3 = vld [vmem:[#allocation21_spill] sm:$0xff]  ;;  %v12477_v48 = vld [vmem:[#allocation40_spill] sm:$0xff] }
 0x249   : > { %v2790_v53 = vadd.f32 %v2789_v58, %v2707_v40  ;;  %v2721_v12 = vmul.f32 %v12456_v6, %v2261_v28  ;;  %v2723_v34 = vmul.f32 %v12457_v30, %v2374_v62  ;;  %v2769_v9 = vadd.f32 %v2768_v1, %v2706_v45  ;;  %v2378_v0 = vpop.f32.mrf.mxu1  ;;  %v12470_v50 = vld [vmem:[#allocation22_spill] sm:$0xff]  ;;  %v12473_v1 = vld [vmem:[#allocation33_spill] sm:$0xff]  ;;  %v12479_v30 = vld [vmem:[#allocation32_spill] sm:$0xff] }
 0x24a   : > { %v2811_v35 = vadd.f32 %v2810_v5, %v2708_v47  ;;  %vm12458_vm10 = vcmp.eq.s32.totalorder %v12430_v24, %v12403_v8  ;;  %vm12459_vm12 = vcmp.eq.s32.totalorder %v12430_v24, %v12406_v39  ;;  %v2749_v31 = vadd.f32 %v2748_v57, %v2713_v4  ;;  %v2265_v55 = vpop.f32.mrf.mxu0  ;;  %3066 = vperm.xlu0 %6020, %v12477_v48  }
 0x24b   : > { %v9894_v7 = vsel %vm12458_vm10, 1.0, %v12004_v15  ;;  %v9900_v52 = vsel %vm12459_vm12, 1.0, %v12004_v15  ;;  %v2791_v14 = vadd.f32 %v2790_v53, %v2715_v11  ;;  %v2722_v32 = vmul.f32 %v12460_v49, %v2263_v56  ;;  %3071 = vperm.xlu1 %6019, %v2909_v18   ;;  %v2380_v45 = vpop.f32.mrf.mxu1  ;;  %v12485_v49 = vld [vmem:[#allocation54_spill] sm:$0xff] }
 0x24c   : > { %v2724_v37 = vmul.f32 %v12461_v36, %v2376_v59  ;;  %v2770_v19 = vadd.f32 %v2769_v9, %v2714_v41  ;;  %v2812_v17 = vadd.f32 %v2811_v35, %v2716_v61  ;;  %vm12462_vm14 = vcmp.eq.s32.totalorder %v12430_v24, %v12409_v25  ;;  %v2267_v20 = vpop.f32.mrf.mxu0 }
 0x24d   : > { %v9914_v26 = vsel %vm12462_vm14, 1.0, %v12004_v15  ;;  %vm12464_vm2 = vcmp.eq.s32.totalorder %v12463_v16, %v12400_v46  ;;  %v2750_v63 = vadd.f32 %v2749_v31, %v2721_v12  ;;  %v2792_v23 = vadd.f32 %v2791_v14, %v2723_v34  ;;  %v9941_v2 = vpop.f32.mrf.mxu1  ;;  %v12483_v31 = vld [vmem:[#allocation43_spill] sm:$0xff]  ;;  %v12484_v14 = vld [vmem:[#allocation44_spill] sm:$0xff] }
 0x24e   : > { %v9920_v27 = vsel %vm12464_vm2, 1.0, %v12004_v15  ;;  %v2729_v54 = vmul.f32 %v12465_v51, %v2265_v55  ;;  %v2731_v40 = vmul.f32 %v12466_v43, %v2378_v0  ;;  %v2771_v44 = vadd.f32 %v2770_v19, %v2722_v32  ;;  %v9939_v4 = vpop.f32.mrf.mxu0  ;;  %v12493_v43 = vld [vmem:[#allocation45_spill] sm:$0xff] }
 0x24f   : > { %v2813_v21 = vadd.f32 %v2812_v17, %v2724_v37  ;;  %vm12467_vm15 = vcmp.eq.s32.totalorder %v12463_v16, %v12403_v8  ;;  %vm12468_vm3 = vcmp.eq.s32.totalorder %v12463_v16, %v12406_v39  ;;  %v2730_v60 = vmul.f32 %v12469_v3, %v2267_v20  ;;  %3062 = vperm.xlu1 %6019, %v12471_v13   ;;  %v9970_v6 = vpop.f32.mrf.mxu1  ;;  %v12488_v17 = vld [vmem:[#allocation31_spill] sm:$0xff]  ;;  %v12497_v20 = vld [vmem:[#allocation56_spill] sm:$0xff] }
 0x250   : > { %v9928_v24 = vsel %vm12467_vm15, 1.0, %v12004_v15  ;;  %v9934_v38 = vsel %vm12468_vm3, 1.0, %v12004_v15  ;;  %v2751_v47 = vadd.f32 %v2750_v63, %v2729_v54  ;;  %v2793_v29 = vadd.f32 %v2792_v23, %v2731_v40  ;;  %v9968_v53 = vpop.f32.mrf.mxu0  ;;  %v12494_v40 = vld [vmem:[#allocation55_spill] sm:$0xff] }
 0x251   : > { %v2732_v58 = vmul.f32 %v12470_v50, %v2380_v45  ;;  %vm12472_vm13 = vcmp.eq.s32.totalorder %v12463_v16, %v12409_v25  ;;  %vm12474_vm11 = vcmp.eq.s32.totalorder %v12473_v1, %v12400_v46  ;;  %vm12475_vm8 = vcmp.eq.s32.totalorder %v12473_v1, %v12403_v8  ;;  %v10003_v37 = vpop.f32.mrf.mxu1  ;;  %v12492_v16 = vld [vmem:[#allocation42_spill] sm:$0xff]  ;;  %v10048_v50 = vld [vmem:[#allocation8 + $0x10] sm:$0xff] }
 0x252   : > { %v9947_v11 = vsel %vm12472_vm13, 1.0, %v12004_v15  ;;  %v9953_v5 = vsel %vm12474_vm11, 1.0, %v12004_v15  ;;  %v9959_v42 = vsel %vm12475_vm8, 1.0, %v12004_v15  ;;  %vm12476_vm9 = vcmp.eq.s32.totalorder %v12473_v1, %v12406_v39  ;;  %v10001_v36 = vpop.f32.mrf.mxu0  ;;  %3058 = vperm.xlu0 %6020, %v12492_v16   ;;  %12503 = vst [vmem:[#allocation72_spill] sm:$0xff] %v10048_v50 }
 0x253   : > { %v9965_v41 = vsel %vm12476_vm9, 1.0, %v12004_v15  ;;  %v2752_v61 = vrot.slane %v2751_v47, 4  ;;  %v2794_v28 = vrot.slane %v2793_v29, 4  ;;  %v2772_v62 = vadd.f32 %v2771_v44, %v2730_v60  ;;  %3054 = vperm.xlu1 %6019, %v12483_v31  }
 0x254   : > { %v2814_v57 = vadd.f32 %v2813_v21, %v2732_v58  ;;  %vm12478_vm5 = vcmp.eq.s32.totalorder %v12473_v1, %v12409_v25  ;;  %vm12480_vm4 = vcmp.eq.s32.totalorder %v12479_v30, %v12400_v46  ;;  %vm12481_vm0 = vcmp.eq.s32.totalorder %v12479_v30, %v12403_v8  ;;  %v12496_v21 = vld [vmem:[#allocation46_spill] sm:$0xff] }
 0x255   : > { %v9976_v12 = vsel %vm12478_vm5, 1.0, %v12004_v15  ;;  %v9982_v34 = vsel %vm12480_vm4, 1.0, %v12004_v15  ;;  %v9988_v9 = vsel %vm12481_vm0, 1.0, %v12004_v15  ;;  %vm12482_vm1 = vcmp.eq.s32.totalorder %v12479_v30, %v12406_v39 }
 0x256   : > { %v9994_v35 = vsel %vm12482_vm1, 1.0, %v12004_v15  ;;  %v2753_v56 = vadd.f32 %v2752_v61, %v2751_v47  ;;  %v2795_v59 = vadd.f32 %v2794_v28, %v2793_v29  ;;  %v2773_v18 = vrot.slane %v2772_v62, 4  ;;  %v10032_v47 = vpop.f32.mrf.mxu0  ;;  %v10034_v29 = vpop.f32.mrf.mxu1  ;;  %v10050_v61 = vld [vmem:[#allocation8] sm:$0xff]  ;;  %v12505_v28 = vld [vmem:[#allocation47_spill] sm:$0xff] }
 0x257   : > { %v2815_v33 = vrot.slane %v2814_v57, 4  ;;  %v9999_v32 = vmul.f32 %v12485_v49, %v12484_v14  ;;  %vm12487_vm6 = vcmp.eq.s32.totalorder %v12479_v30, %v12409_v25  ;;  %vm12489_vm7 = vcmp.eq.s32.totalorder %v12488_v17, %v12400_v46  ;;  %12504 = vst [vmem:[#allocation73_spill] sm:$0xff] %v10050_v61  ;;  %3664 = vrot.lane.b32.xlu1 %v10048_v50, %s6243_s13  ;;  %v12508_v30 = vld [vmem:[#allocation48_spill] sm:$0xff] }
 0x258   : > { %v10009_v19 = vsel %vm12487_vm6, 1.0, %v12004_v15  ;;  %v10015_v55 = vsel %vm12489_vm7, 1.0, %v12004_v15  ;;  %vm12490_vm10 = vcmp.eq.s32.totalorder %v12488_v17, %v12403_v8  ;;  %v2754_v63 = vrot.slane %v2753_v56, 2  ;;  %v10062_v31 = vpop.f32.mrf.mxu0  ;;  %3662 = vrot.lane.b32.xlu0 %v10050_v61, %s6243_s13 }
 0x259   : > { %12486 = vst [vmem:[#allocation23_spill] sm:$0xff] %v9999_v32  ;;  %v10021_v0 = vsel %vm12490_vm10, 1.0, %v12004_v15  ;;  %v2796_v23 = vrot.slane %v2795_v59, 2  ;;  %v2774_v51 = vadd.f32 %v2773_v18, %v2772_v62  ;;  %v2816_v54 = vadd.f32 %v2815_v33, %v2814_v57  ;;  %v12506_v62 = vld [vmem:[#allocation57_spill] sm:$0xff]  ;;  %v12509_v18 = vld [vmem:[#allocation60_spill] sm:$0xff] }
 0x25a   : > { %12491 = vst [vmem:[#allocation24_spill] sm:$0xff] %v10021_v0  ;;  %v10026_v44 = vmul.f32 %v12494_v40, %v12493_v43  ;;  %v10030_v45 = vmul.f32 %v12497_v20, %v12496_v21  ;;  %vm12499_vm12 = vcmp.eq.s32.totalorder %v12488_v17, %v12406_v39  ;;  %vm12501_vm14 = vcmp.eq.s32.totalorder %v12488_v17, %v12409_v25  ;;  %v10080_v43 = vpop.permute.xlu1 %2978  ;;  %v10082_v40 = vpop.permute.xlu0 %2930  ;;  %v12518_v21 = vld [vmem:[#allocation49_spill] sm:$0xff]  ;;  %v12570_v0 = vld [vmem:[#allocation112_spill] sm:$0xff] }
 0x25b   : > { %v10040_v3 = vsel %vm12499_vm12, 1.0, %v12004_v15  ;;  %v10046_v60 = vsel %vm12501_vm14, 1.0, %v12004_v15  ;;  %v2755_v58 = vadd.f32 %v2754_v63, %v2753_v56  ;;  %v2797_v13 = vadd.f32 %v2796_v23, %v2795_v59  ;;  %v10064_v56 = vpop.f32.mrf.mxu1  ;;  %v12511_v59 = vld [vmem:[#allocation30_spill] sm:$0xff]  ;;  %12516 = vst [vmem:[#allocation77_spill] sm:$0xff] %v10080_v43  ;;  %12517 = vst [vmem:[#allocation78_spill] sm:$0xff] %v10082_v40  ;;  %v12519_v20 = vld [vmem:[#allocation61_spill] sm:$0xff] }
 0x25c   : > { %12495 = vst [vmem:[#allocation70_spill] sm:$0xff] %v10026_v44  ;;  %12498 = vst [vmem:[#allocation93_spill] sm:$0xff] %v10030_v45  ;;  %v2775_v1 = vrot.slane %v2774_v51, 2  ;;  %v2817_v48 = vrot.slane %v2816_v54, 2  ;;  %v10056_v57 = vmul.f32 %v12506_v62, %v12505_v28  ;;  %v10060_v33 = vmul.f32 %v12509_v18, %v12508_v30  ;;  %v12521_v62 = vld [vmem:[#allocation50_spill] sm:$0xff]  ;;  %v12522_v30 = vld [vmem:[#allocation64_spill] sm:$0xff]  ;;  %v10092_v44 = vpop.f32.mrf.mxu0 }
 0x25d   : > { %12500 = vst [vmem:[#allocation71_spill] sm:$0xff] %v10040_v3  ;;  %12502 = vst [vmem:[#allocation94_spill] sm:$0xff] %v10046_v60  ;;  %vm12512_vm2 = vcmp.eq.s32.totalorder %v12511_v59, %v12400_v46  ;;  %vm12514_vm15 = vcmp.eq.s32.totalorder %v12511_v59, %v12403_v8  ;;  %v2756_v17 = vrot.slane %v2755_v58, 1  ;;  %v2798_v16 = vrot.slane %v2797_v13, 1  ;;  %v10094_v32 = vpop.f32.mrf.mxu1  ;;  %v12531_v45 = vld [vmem:[#allocation65_spill] sm:$0xff] }
 0x25e   : > { %12507 = vst [vmem:[#allocation74_spill] sm:$0xff] %v10056_v57  ;;  %12510 = vst [vmem:[#allocation75_spill] sm:$0xff] %v10060_v33  ;;  %v10070_v14 = vsel %vm12512_vm2, 1.0, %v12004_v15  ;;  %v10076_v49 = vsel %vm12514_vm15, 1.0, %v12004_v15  ;;  %v2776_v63 = vadd.f32 %v2775_v1, %v2774_v51  ;;  %v2818_v23 = vadd.f32 %v2817_v48, %v2816_v54  ;;  %v10108_v1 = vld [vmem:[#allocation8 + $0x30] sm:$0xff]  ;;  %v12530_v57 = vld [vmem:[#allocation51_spill] sm:$0xff] }
 0x25f   : > { %12513 = vst [vmem:[#allocation76_spill] sm:$0xff] %v10070_v14  ;;  %12515 = vst [vmem:[#allocation35_spill] sm:$0xff] %v10076_v49  ;;  %v10086_v28 = vmul.f32 %v12519_v20, %v12518_v21  ;;  %v10090_v18 = vmul.f32 %v12522_v30, %v12521_v62  ;;  %vm12524_vm3 = vcmp.eq.s32.totalorder %v12511_v59, %v12406_v39  ;;  %v10114_v30 = vld [vmem:[#allocation8 + $0x20] sm:$0xff]  ;;  %3668 = vrot.lane.b32.xlu1 %v10108_v1, %s6243_s13  ;;  %v12534_v33 = vld [vmem:[#allocation68_spill] sm:$0xff]  ;;  %v10186_v49 = vpop.permute.xlu1 %2920  ;;  %vm3089_vm12 = vcmask 523264  }
 0x260   : > { %v10100_v51 = vsel %vm12524_vm3, 1.0, %v12004_v15  ;;  %vm12526_vm13 = vcmp.eq.s32.totalorder %v12511_v59, %v12409_v25  ;;  %12528 = vst [vmem:[#allocation83_spill] sm:$0xff] %v10108_v1  ;;  %v10110_v48 = vadd.f32 %v2756_v17, %v2755_v58  ;;  %v10112_v21 = vadd.f32 %v2798_v16, %v2797_v13  ;;  %12529 = vst [vmem:[#allocation84_spill] sm:$0xff] %v10114_v30  ;;  %v12533_v59 = vld [vmem:[#allocation52_spill] sm:$0xff]  ;;  %v10128_v58 = vpop.f32.mrf.mxu1  ;;  %v12536_v13 = vld [vmem:[#allocation29_spill] sm:$0xff] }
 0x261   : > { %12520 = vst [vmem:[#allocation79_spill] sm:$0xff] %v10086_v28  ;;  %12523 = vst [vmem:[#allocation80_spill] sm:$0xff] %v10090_v18  ;;  %v10106_v54 = vsel %vm12526_vm13, 1.0, %v12004_v15  ;;  %v2777_v20 = vrot.slane %v2776_v63, 1  ;;  %v2819_v62 = vrot.slane %v2818_v23, 1  ;;  %v10120_v28 = vmul.f32 %v12531_v45, %v12530_v57  ;;  %v10126_v18 = vpop.f32.mrf.mxu0  ;;  %3666 = vrot.lane.b32.xlu0 %v10114_v30, %s6243_s13  ;;  %v12541_v57 = vld [vmem:[#allocation53_spill] sm:$0xff] }
 0x262   : > { %12525 = vst [vmem:[#allocation81_spill] sm:$0xff] %v10100_v51  ;;  %12527 = vst [vmem:[#allocation82_spill] sm:$0xff] %v10106_v54  ;;  %v10124_v50 = vmul.f32 %v12534_v33, %v12533_v59  ;;  %vm12537_vm11 = vcmp.eq.s32.totalorder %v12536_v13, %v12400_v46  ;;  %vm12539_vm8 = vcmp.eq.s32.totalorder %v12536_v13, %v12403_v8  ;;  %v12542_v33 = vld [vmem:[#allocation69_spill] sm:$0xff]  ;;  %v10184_v51 = vpop.permute.xlu0 %2925 }
 0x263   : > { %12532 = vst [vmem:[#allocation85_spill] sm:$0xff] %v10120_v28  ;;  %v10134_v17 = vsel %vm12537_vm11, 1.0, %v12004_v15  ;;  %v10140_v45 = vsel %vm12539_vm8, 1.0, %v12004_v15  ;;  %v10146_v16 = vmul.f32 %v12542_v33, %v12541_v57  ;;  %v10148_v59 = vadd.f32 %v2777_v20, %v2776_v63  ;;  %v10158_v28 = vpop.f32.mrf.mxu0 }
 0x264   : > { %12535 = vst [vmem:[#allocation86_spill] sm:$0xff] %v10124_v50  ;;  %12538 = vst [vmem:[#allocation87_spill] sm:$0xff] %v10134_v17  ;;  %v10150_v1 = vadd.f32 %v2819_v62, %v2818_v23  ;;  %vm12544_vm9 = vcmp.eq.s32.totalorder %v12536_v13, %v12406_v39  ;;  %v2957_v30 = vmul.f32 %v10082_v40, %v10110_v48  ;;  %v12548_v23 = vld [vmem:[#allocation28_spill] sm:$0xff] }
 0x265   : > { %12540 = vst [vmem:[#allocation88_spill] sm:$0xff] %v10140_v45  ;;  %12543 = vst [vmem:[#allocation89_spill] sm:$0xff] %v10146_v16  ;;  %v10156_v17 = vsel %vm12544_vm9, 1.0, %v12004_v15  ;;  %v10160_v45 = vpop.f32.mrf.mxu1  ;;  %v2959_v57 = vmul.f32 %v10082_v40, %v10112_v21  ;;  %vm12546_vm5 = vcmp.eq.s32.totalorder %v12536_v13, %v12409_v25  ;;  %vm12549_vm4 = vcmp.eq.s32.totalorder %v12548_v23, %v12400_v46  ;;  %v10178_v62 = vld [vmem:[#allocation8 + $0x50] sm:$0xff]  ;;  %v12563_v16 = vld [vmem:[#allocation109_spill] sm:$0xff] }
 0x266   : > { %12545 = vst [vmem:[#allocation90_spill] sm:$0xff] %v10156_v17  ;;  %v10170_v63 = vsel %vm12546_vm5, 1.0, %v12004_v15  ;;  %v10176_v20 = vsel %vm12549_vm4, 1.0, %v12004_v15  ;;  %12551 = vst [vmem:[#allocation95_spill] sm:$0xff] %v10178_v62  ;;  %v2621_v33 = vmul.f32 %v9764_v10, %v10001_v36  ;;  %v12552_v17 = vld [vmem:[#allocation111_spill] sm:$0xff]  ;;  %vm12553_vm0 = vcmp.eq.s32.totalorder %v12548_v23, %v12403_v8  ;;  %v10200_v10 = vld [vmem:[#allocation8 + $0x40] sm:$0xff]  ;;  %3672 = vrot.lane.b32.xlu1 %v10178_v62, %s6243_s13  ;;  %v10204_v36 = vpop.f32.mrf.mxu0 }
 0x267   : > { %12547 = vst [vmem:[#allocation91_spill] sm:$0xff] %v10170_v63  ;;  %12550 = vst [vmem:[#allocation92_spill] sm:$0xff] %v10176_v20  ;;  %v2623_v54 = vmul.f32 %v12552_v17, %v10003_v37  ;;  %v10192_v13 = vsel %vm12553_vm0, 1.0, %v12004_v15  ;;  %vm12555_vm1 = vcmp.eq.s32.totalorder %v12548_v23, %v12406_v39  ;;  %v10206_v37 = vpop.f32.mrf.mxu1  ;;  %v2958_v17 = vmul.f32 %v10082_v40, %v10148_v59  ;;  %v12560_v63 = vld [vmem:[#allocation27_spill] sm:$0xff] }
 0x268   : > { %12554 = vst [vmem:[#allocation96_spill] sm:$0xff] %v10192_v13  ;;  %v10198_v20 = vsel %vm12555_vm1, 1.0, %v12004_v15  ;;  %12557 = vst [vmem:[#allocation98_spill] sm:$0xff] %v10200_v10  ;;  %v2960_v13 = vmul.f32 %v10082_v40, %v10150_v1  ;;  %vm12558_vm6 = vcmp.eq.s32.totalorder %v12548_v23, %v12409_v25  ;;  %vm12561_vm7 = vcmp.eq.s32.totalorder %v12560_v63, %v12400_v46  ;;  %v12564_v40 = vld [vmem:[#allocation110_spill] sm:$0xff]  ;;  %v10239_v61 = vpop.f32.mrf.mxu0 }
 0x269   : > { %12556 = vst [vmem:[#allocation97_spill] sm:$0xff] %v10198_v20  ;;  %v10216_v20 = vsel %vm12558_vm6, 1.0, %v12004_v15  ;;  %v10222_v62 = vsel %vm12561_vm7, 1.0, %v12004_v15  ;;  %3670 = vrot.lane.b32.xlu0 %v10200_v10, %s6243_s13  ;;  %v2613_v50 = vmul.f32 %v12563_v16, %v9939_v4  ;;  %v2615_v14 = vmul.f32 %v12564_v40, %v9941_v2  ;;  %v10241_v10 = vpop.f32.mrf.mxu1  ;;  %v10246_v40 = vld [vmem:[#allocation8 + $0x70] sm:$0xff] }
 0x26a   : > { %12559 = vst [vmem:[#allocation99_spill] sm:$0xff] %v10216_v20  ;;  %12562 = vst [vmem:[#allocation100_spill] sm:$0xff] %v10222_v62  ;;  %v3005_v60 = vadd.f32 %v10080_v43, %v2957_v30  ;;  %vm12565_vm10 = vcmp.eq.s32.totalorder %v12560_v63, %v12403_v8  ;;  %v12567_v20 = vld [vmem:[#allocation36_spill] sm:$0xff]  ;;  %v3006_v4 = vadd.f32 %v10080_v43, %v2958_v17  ;;  %v12569_v30 = vld [vmem:[#allocation37_spill] sm:$0xff]  ;;  %3676 = vrot.lane.b32.xlu1 %v10246_v40, %s6243_s13  ;;  %v10256_v17 = vpop.f32.mrf.mxu0 }
 0x26b   : > { %v10235_v23 = vsel %vm12565_vm10, 1.0, %v12004_v15  ;;  %v2614_v62 = vmul.f32 %v12567_v20, %v9968_v53  ;;  %v3008_v16 = vadd.f32 %v10080_v43, %v2960_v13  ;;  %v3007_v2 = vadd.f32 %v10080_v43, %v2959_v57  ;;  %12568 = vst [vmem:[#allocation102_spill] sm:$0xff] %v10246_v40  ;;  %v10252_v20 = vld [vmem:[#allocation8 + $0x60] sm:$0xff]  ;;  %v10258_v13 = vpop.f32.mrf.mxu1 }
 0x26c   : > { %12566 = vst [vmem:[#allocation101_spill] sm:$0xff] %v10235_v23  ;;  %v2616_v8 = vmul.f32 %v12569_v30, %v9970_v6  ;;  %v2821_v3 = vadd.f32 %v2621_v33, %v2613_v50  ;;  %v2863_v23 = vadd.f32 %v2623_v54, %v2615_v14  ;;  %v2622_v53 = vmul.f32 %v12570_v0, %v10032_v47  ;;  %v12571_v0 = vld [vmem:[#allocation113_spill] sm:$0xff]  ;;  %v10272_v54 = vpop.permute.xlu0 %2974  ;;  %v10274_v33 = vpop.permute.xlu1 %2915 }
 0x26d   : > { %v3038_v57 = vmax.f32 %v3006_v4, 0.0  ;;  %v3040_v43 = vmax.f32 %v3008_v16, 0.0  ;;  %v2950_v46 = vmul.f32 %v10184_v51, %v10148_v59  ;;  %v2952_v6 = vmul.f32 %v10184_v51, %v10150_v1  ;;  %3674 = vrot.lane.b32.xlu0 %v10252_v20, %s6243_s13  ;;  %v10276_v16 = vpop.f32.mrf.mxu0  ;;  %v10278_v30 = vpop.f32.mrf.mxu1 }
 0x26e   : > { %v2624_v47 = vmul.f32 %v12571_v0, %v10034_v29  ;;  %v2629_v50 = vmul.f32 %v9854_v22, %v10062_v31  ;;  %v2631_v14 = vmul.f32 %v9894_v7, %v10064_v56  ;;  %v3037_v4 = vmax.f32 %v3005_v60, 0.0 }
 0x26f   : > { %3138 = vmatprep.subr.mxu0 %v3038_v57  ;;  %3251 = vmatprep.subr.mxu1 %v3040_v43  ;;  %v3039_v40 = vmax.f32 %v3007_v2, 0.0  ;;  %v2998_v29 = vadd.f32 %v10272_v54, %v2950_v46  ;;  %v3000_v0 = vadd.f32 %v10272_v54, %v2952_v6  ;;  %v2949_v22 = vmul.f32 %v10184_v51, %v10110_v48  ;;  %v10292_v2 = vpop.f32.mrf.mxu0  ;;  %v10294_v57 = vpop.f32.mrf.mxu1 }
 0x270   : > { %v2630_v7 = vmul.f32 %v9900_v52, %v10092_v44  ;;  %v2632_v60 = vmul.f32 %v9914_v26, %v10094_v32  ;;  %v2637_v31 = vmul.f32 %v9920_v27, %v10126_v18  ;;  %v2639_v56 = vmul.f32 %v9928_v24, %v10128_v58  ;;  %3139 = vmatpush1.msra.mxu0 %v3037_v4 }
 0x271   : > { %3252 = vmatpush1.msra.mxu1 %v3039_v40  ;;  %v3030_v46 = vmax.f32 %v2998_v29, 0.0  ;;  %v3032_v43 = vmax.f32 %v3000_v0, 0.0  ;;  %v2997_v6 = vadd.f32 %v10272_v54, %v2949_v22  ;;  %v2951_v52 = vmul.f32 %v10184_v51, %v10112_v21  ;;  %v10304_v4 = vpop.f32.mrf.mxu0  ;;  %v10306_v29 = vpop.f32.mrf.mxu1 }
 0x272   : > { %v2842_v26 = vadd.f32 %v2622_v53, %v2614_v62  ;;  %v2884_v32 = vadd.f32 %v2624_v47, %v2616_v8  ;;  %v2822_v44 = vadd.f32 %v2821_v3, %v2629_v50  ;;  %v2864_v27 = vadd.f32 %v2863_v23, %v2631_v14  ;;  %v10308_v23 = vpop.permute.xlu1 %2970 }
 0x273   : > { %3140 = vmatprep.subr.mxu0 %v3030_v46  ;;  %3253 = vmatprep.subr.mxu1 %v3032_v43  ;;  %v3029_v24 = vmax.f32 %v2997_v6, 0.0  ;;  %v2999_v18 = vadd.f32 %v10272_v54, %v2951_v52  ;;  %v2942_v58 = vmul.f32 %v10186_v49, %v10148_v59  ;;  %v2944_v40 = vmul.f32 %v10186_v49, %v10150_v1  ;;  %v10314_v22 = vpop.f32.mrf.mxu0  ;;  %v10316_v46 = vpop.f32.mrf.mxu1 }
 0x274   : > { %v2843_v0 = vadd.f32 %v2842_v26, %v2630_v7  ;;  %v2885_v62 = vadd.f32 %v2884_v32, %v2632_v60  ;;  %v2823_v8 = vadd.f32 %v2822_v44, %v2637_v31  ;;  %v2865_v3 = vadd.f32 %v2864_v27, %v2639_v56  ;;  %v10318_v7 = vpop.permute.xlu0 %2966 }
 0x275   : > { %3141 = vmatpush1.msra.mxu0 %v3029_v24  ;;  %v3031_v53 = vmax.f32 %v2999_v18, 0.0  ;;  %v2990_v47 = vadd.f32 %v10308_v23, %v2942_v58  ;;  %v2992_v50 = vadd.f32 %v10308_v23, %v2944_v40  ;;  %v2941_v14 = vmul.f32 %v10186_v49, %v10110_v48  ;;  %v10331_v44 = vpop.f32.mrf.mxu0 }
 0x276   : > { %v2638_v60 = vmul.f32 %v9934_v38, %v10158_v28  ;;  %v2640_v31 = vmul.f32 %v9947_v11, %v10160_v45  ;;  %v2943_v56 = vmul.f32 %v10186_v49, %v10112_v21  ;;  %v2934_v43 = vmul.f32 %v10274_v33, %v10148_v59  ;;  %v10333_v38 = vpop.f32.mrf.mxu1 }
 0x277   : > { %3254 = vmatpush1.msra.mxu1 %v3031_v53  ;;  %v3022_v6 = vmax.f32 %v2990_v47, 0.0  ;;  %v3024_v52 = vmax.f32 %v2992_v50, 0.0  ;;  %v2989_v26 = vadd.f32 %v10308_v23, %v2941_v14  ;;  %v2936_v32 = vmul.f32 %v10274_v33, %v10150_v1  ;;  %v2457_v58 = vpop.f32.mrf.mxu0 }
 0x278   : > { %v2645_v11 = vmul.f32 %v9953_v5, %v10204_v36  ;;  %v2647_v28 = vmul.f32 %v9959_v42, %v10206_v37  ;;  %v2991_v45 = vadd.f32 %v10308_v23, %v2943_v56  ;;  %v2982_v59 = vadd.f32 %v10318_v7, %v2934_v43  ;;  %v10346_v5 = vpop.f32.mrf.mxu1 }
 0x279   : > { %3142 = vmatprep.subr.mxu0 %v3022_v6  ;;  %3255 = vmatprep.subr.mxu1 %v3024_v52  ;;  %v3021_v27 = vmax.f32 %v2989_v26, 0.0  ;;  %v2984_v24 = vadd.f32 %v10318_v7, %v2936_v32  ;;  %v2933_v1 = vmul.f32 %v10274_v33, %v10110_v48  ;;  %v2935_v18 = vmul.f32 %v10274_v33, %v10112_v21  ;;  %v10356_v50 = vpop.f32.mrf.mxu0  ;;  %v12574_v52 = vld [vmem:[#allocation26_spill] sm:$0xff]  ;;  %v12577_v26 = vld [vmem:[#allocation24_spill] sm:$0xff] }
 0x27a   : > { %v2646_v42 = vmul.f32 %v9965_v41, %v10239_v61  ;;  %v2648_v36 = vmul.f32 %v9976_v12, %v10241_v10  ;;  %v3023_v37 = vmax.f32 %v2991_v45, 0.0  ;;  %v3014_v40 = vmax.f32 %v2982_v59, 0.0  ;;  %v10358_v14 = vpop.f32.mrf.mxu1 }
 0x27b   : > { %v2653_v53 = vmul.f32 %v9982_v34, %v10256_v17  ;;  %3143 = vmatpush1.msra.mxu0 %v3021_v27  ;;  %v3016_v47 = vmax.f32 %v2984_v24, 0.0  ;;  %v2981_v48 = vadd.f32 %v10318_v7, %v2933_v1  ;;  %v2983_v21 = vadd.f32 %v10318_v7, %v2935_v18  ;;  %v12582_v27 = vld [vmem:[#allocation94_spill] sm:$0xff]  ;;  %v12585_v18 = vld [vmem:[#allocation89_spill] sm:$0xff] }
 0x27c   : > { %v2844_v56 = vadd.f32 %v2843_v0, %v2638_v60  ;;  %v2886_v41 = vadd.f32 %v2885_v62, %v2640_v31  ;;  %v2655_v12 = vmul.f32 %v9988_v9, %v10258_v13  ;;  %3256 = vmatpush1.msra.mxu1 %v3023_v37  ;;  %3144 = vmatprep.subr.mxu0 %v3014_v40  ;;  %v10370_v0 = vpop.f32.mrf.mxu0  ;;  %v10372_v62 = vpop.f32.mrf.mxu1 }
 0x27d   : > { %vm12572_vm14 = vcmp.eq.s32.totalorder %v12560_v63, %v12406_v39  ;;  %v2824_v61 = vadd.f32 %v2823_v8, %v2645_v11  ;;  %v2654_v10 = vmul.f32 %v9994_v35, %v10276_v16  ;;  %3257 = vmatprep.subr.mxu1 %v3016_v47  ;;  %v3013_v17 = vmax.f32 %v2981_v48, 0.0  ;;  %v12578_v11 = vld [vmem:[#allocation71_spill] sm:$0xff] }
 0x27e   : > { %v10366_v34 = vsel %vm12572_vm14, 1.0, %v12004_v15  ;;  %v3015_v43 = vmax.f32 %v2983_v21, 0.0  ;;  %v2866_v9 = vadd.f32 %v2865_v3, %v2647_v28  ;;  %v2845_v13 = vadd.f32 %v2844_v56, %v2646_v42  ;;  %v10384_v6 = vpop.f32.mrf.mxu0  ;;  %v10386_v3 = vpop.f32.mrf.mxu1  ;;  %v12590_v21 = vld [vmem:[#allocation67_spill] sm:$0xff] }
 0x27f   : > { %v2656_v60 = vmul.f32 %v10009_v19, %v10278_v30  ;;  %vm12573_vm2 = vcmp.eq.s32.totalorder %v12560_v63, %v12409_v25  ;;  %v2887_v31 = vadd.f32 %v2886_v41, %v2648_v36  ;;  %v2825_v35 = vadd.f32 %v2824_v61, %v2653_v53  ;;  %3145 = vmatpush1.msra.mxu0 %v3013_v17  ;;  %v12575_v19 = vld [vmem:[#allocation38_spill] sm:$0xff]  ;;  %v12587_v53 = vld [vmem:[#allocation35_spill] sm:$0xff] }
 0x280   : > { %v10380_v8 = vsel %vm12573_vm2, 1.0, %v12004_v15  ;;  %v2661_v16 = vmul.f32 %v10015_v55, %v10292_v2  ;;  %3258 = vmatpush1.msra.mxu1 %v3015_v43  ;;  %vm12576_vm15 = vcmp.eq.s32.totalorder %v12574_v52, %v12575_v19  ;;  %v2867_v63 = vadd.f32 %v2866_v9, %v2655_v12  ;;  %v12579_v55 = vld [vmem:[#allocation73_spill] sm:$0xff]  ;;  %v12580_v2 = vld [vmem:[#allocation39_spill] sm:$0xff]  ;;  %v2467_v42 = vpop.f32.mrf.mxu0  ;;  %v2580_v36 = vpop.f32.mrf.mxu1  ;;  %v12592_v12 = vld [vmem:[#allocation82_spill] sm:$0xff] }
 0x281   : > { %v10392_v30 = vsel %vm12576_vm15, 1.0, %v12004_v15  ;;  %v2663_v32 = vmul.f32 %v12577_v26, %v10294_v57  ;;  %v2662_v28 = vmul.f32 %v12578_v11, %v10304_v4  ;;  %5820 = vmatmul.mubr.msk.f32.vlgmr.msra.gmra.mxu0 %vm3089_vm12, %v12579_v55  ;;  %5828 = vmatmul.mubr.msk.f32.vlgmr.msra.gmra.mxu1 %vm3089_vm12, %v12579_v55  ;;  %vm12581_vm3 = vcmp.eq.s32.totalorder %v12574_v52, %v12580_v2  ;;  %v12583_v57 = vld [vmem:[#allocation76_spill] sm:$0xff]  ;;  %v12584_v4 = vld [vmem:[#allocation86_spill] sm:$0xff]  ;;  %v12595_v17 = vld [vmem:[#allocation87_spill] sm:$0xff] }
 0x282   : > { %v10406_v45 = vsel %vm12581_vm3, 1.0, %v12004_v15  ;;  %v2846_v59 = vadd.f32 %v2845_v13, %v2654_v10  ;;  %v2664_v24 = vmul.f32 %v12582_v27, %v10306_v29  ;;  %v2669_v1 = vmul.f32 %v12583_v57, %v10314_v22  ;;  %3356 = vmatprep.subr.mxu0 %v12584_v4  ;;  %3469 = vmatprep.subr.mxu1 %v12585_v18  ;;  %v12588_v29 = vld [vmem:[#allocation81_spill] sm:$0xff]  ;;  %v12589_v22 = vld [vmem:[#allocation66_spill] sm:$0xff]  ;;  %v12593_v10 = vld [vmem:[#allocation80_spill] sm:$0xff]  ;;  %v2469_v43 = vpop.f32.mrf.mxu0  ;;  %v2582_v9 = vpop.f32.mrf.mxu1 }
 0x283   : > { %vm12586_vm13 = vcmp.eq.s32.totalorder %v12574_v52, %v12406_v39  ;;  %v2888_v40 = vadd.f32 %v2887_v31, %v2656_v60  ;;  %v2671_v47 = vmul.f32 %v12587_v53, %v10316_v46  ;;  %v2670_v48 = vmul.f32 %v12588_v29, %v10331_v44  ;;  %3357 = vmatpush1.msra.mxu0 %v12589_v22  ;;  %v12594_v46 = vld [vmem:[#allocation85_spill] sm:$0xff]  ;;  %v12600_v11 = vld [vmem:[#allocation62_spill] sm:$0xff]  ;;  %v12601_v27 = vld [vmem:[#allocation63_spill] sm:$0xff] }
 0x284   : > { %v10418_v37 = vsel %vm12586_vm13, 1.0, %v12004_v15  ;;  %3470 = vmatpush1.msra.mxu1 %v12590_v21  ;;  %vm12591_vm11 = vcmp.eq.s32.totalorder %v12574_v52, %v12409_v25  ;;  %v2826_v41 = vadd.f32 %v2825_v35, %v2661_v16  ;;  %v2672_v61 = vmul.f32 %v12592_v12, %v10333_v38  ;;  %3358 = vmatprep.subr.mxu0 %v12593_v10  ;;  %v12596_v13 = vld [vmem:[#allocation25_spill] sm:$0xff]  ;;  %v12598_v35 = vld [vmem:[#allocation88_spill] sm:$0xff]  ;;  %v12607_v29 = vld [vmem:[#allocation75_spill] sm:$0xff] }
 0x285   : > { %v10430_v56 = vsel %vm12591_vm11, 1.0, %v12004_v15  ;;  %3471 = vmatprep.subr.mxu1 %v12594_v46  ;;  %v2677_v44 = vmul.f32 %v12595_v17, %v2457_v58  ;;  %vm12597_vm8 = vcmp.eq.s32.totalorder %v12596_v13, %v12575_v19  ;;  %v2868_v31 = vadd.f32 %v2867_v63, %v2663_v32  ;;  %3184 = vmatprep.mubr.f32.mxu0 %v12004_v15  ;;  %v12602_v63 = vld [vmem:[#allocation90_spill] sm:$0xff]  ;;  %v12604_v18 = vld [vmem:[#allocation72_spill] sm:$0xff]  ;;  %v12613_v17 = vld [vmem:[#allocation59_spill] sm:$0xff] }
 0x286   : > { %v10441_v60 = vsel %vm12597_vm8, 1.0, %v12004_v15  ;;  %v2847_v52 = vadd.f32 %v2846_v59, %v2662_v28  ;;  %v2679_v16 = vmul.f32 %v12598_v35, %v10346_v5  ;;  %3297 = vmatprep.mubr.f32.mxu1 %v12004_v15  ;;  %vm12599_vm9 = vcmp.eq.s32.totalorder %v12596_v13, %v12580_v2  ;;  %3359 = vmatpush1.msra.mxu0 %v12600_v11  ;;  %v2471_v5 = vpop.f32.mrf.mxu0  ;;  %v2584_v28 = vpop.f32.mrf.mxu1  ;;  %v12610_v12 = vld [vmem:[#allocation20_spill] sm:$0xff]  ;;  %v12612_v46 = vld [vmem:[#allocation58_spill] sm:$0xff]  ;;  %v12617_v35 = vld [vmem:[#allocation93_spill] sm:$0xff] }
 0x287   : > { %v10451_v38 = vsel %vm12599_vm9, 1.0, %v12004_v15  ;;  %v2889_v58 = vadd.f32 %v2888_v40, %v2664_v24  ;;  %v2827_v26 = vadd.f32 %v2826_v41, %v2669_v1  ;;  %3472 = vmatpush1.msra.mxu1 %v12601_v27  ;;  %v2678_v32 = vmul.f32 %v12602_v63, %v10356_v50  ;;  %5821 = vmatmul.mubr.msk.f32.gmra.mxu0 %vm3089_vm12, %v12604_v18  ;;  %v12605_v24 = vld [vmem:[#allocation91_spill] sm:$0xff]  ;;  %v12620_v11 = vld [vmem:[#allocation100_spill] sm:$0xff] }
 0x288   : > { %vm12603_vm5 = vcmp.eq.s32.totalorder %v12596_v13, %v12406_v39  ;;  %v2869_v57 = vadd.f32 %v2868_v31, %v2671_v47  ;;  %v2848_v4 = vadd.f32 %v2847_v52, %v2670_v48  ;;  %5829 = vmatmul.mubr.msk.f32.gmra.mxu1 %vm3089_vm12, %v12604_v18  ;;  %v2680_v1 = vmul.f32 %v12605_v24, %v10358_v14  ;;  %v12608_v47 = vld [vmem:[#allocation79_spill] sm:$0xff]  ;;  %v12609_v48 = vld [vmem:[#allocation92_spill] sm:$0xff]  ;;  %v2473_v21 = vpop.f32.mrf.mxu0  ;;  %v2586_v41 = vpop.f32.mrf.mxu1 }
 0x289   : > { %v10461_v59 = vsel %vm12603_vm5, 1.0, %v12004_v15  ;;  %vm12606_vm4 = vcmp.eq.s32.totalorder %v12596_v13, %v12409_v25  ;;  %v2890_v40 = vadd.f32 %v2889_v58, %v2672_v61  ;;  %v2828_v53 = vadd.f32 %v2827_v26, %v2677_v44  ;;  %3360 = vmatprep.subr.mxu0 %v12607_v29  ;;  %3473 = vmatprep.subr.mxu1 %v12608_v47  ;;  %v12614_v61 = vld [vmem:[#allocation96_spill] sm:$0xff]  ;;  %v12615_v13 = vld [vmem:[#allocation97_spill] sm:$0xff]  ;;  %v12618_v58 = vld [vmem:[#allocation74_spill] sm:$0xff] }
 0x28a   : > { %v10473_v50 = vsel %vm12606_vm4, 1.0, %v12004_v15  ;;  %v2685_v22 = vmul.f32 %v12609_v48, %v10370_v0  ;;  %vm12611_vm0 = vcmp.eq.s32.totalorder %v12610_v12, %v12575_v19  ;;  %v2870_v10 = vadd.f32 %v2869_v57, %v2679_v16  ;;  %3361 = vmatpush1.msra.mxu0 %v12612_v46  ;;  %3474 = vmatpush1.msra.mxu1 %v12613_v17  ;;  %v12619_v16 = vld [vmem:[#allocation99_spill] sm:$0xff]  ;;  %v2477_v63 = vpop.f32.mrf.mxu0  ;;  %v12625_v47 = vld [vmem:[#allocation70_spill] sm:$0xff]  ;;  %v12628_v17 = vld [vmem:[#allocation84_spill] sm:$0xff] }
 0x28b   : > { %v5384_v14 = vsel %vm12611_vm0, 1.0, %v12004_v15  ;;  %v2687_v44 = vmul.f32 %v12614_v61, %v10372_v62  ;;  %v2686_v31 = vmul.f32 %v12615_v13, %v10384_v6  ;;  %vm12616_vm1 = vcmp.eq.s32.totalorder %v12610_v12, %v12580_v2  ;;  %3362 = vmatprep.subr.mxu0 %v12617_v35  ;;  %3475 = vmatprep.subr.mxu1 %v12618_v58  ;;  %v2590_v62 = vpop.f32.mrf.mxu1  ;;  %v12624_v29 = vld [vmem:[#allocation23_spill] sm:$0xff] }
 0x28c   : > { %v5386_v0 = vsel %vm12616_vm1, 1.0, %v12004_v15  ;;  %v2849_v52 = vadd.f32 %v2848_v4, %v2678_v32  ;;  %v2688_v26 = vmul.f32 %v12619_v16, %v10386_v3  ;;  %v2693_v27 = vmul.f32 %v12620_v11, %v2467_v42  ;;  %3190 = vmatprep.mubr.f32.mxu0 %v12004_v15  ;;  %3303 = vmatprep.mubr.f32.mxu1 %v12004_v15  ;;  %v12622_v32 = vld [vmem:[#allocation101_spill] sm:$0xff]  ;;  %v2479_v48 = vpop.f32.mrf.mxu0  ;;  %v12631_v16 = vld [vmem:[#allocation83_spill] sm:$0xff] }
 0x28d   : > { %vm12621_vm6 = vcmp.eq.s32.totalorder %v12610_v12, %v12406_v39  ;;  %v2891_v57 = vadd.f32 %v2890_v40, %v2680_v1  ;;  %v2695_v4 = vmul.f32 %v12622_v32, %v2580_v36  ;;  %v2694_v24 = vmul.f32 %v10366_v34, %v2469_v43  ;;  %3363 = vmatpush1.msra.mxu0 %v12624_v29  ;;  %v2592_v46 = vpop.f32.mrf.mxu1  ;;  %v12626_v36 = vld [vmem:[#allocation19_spill] sm:$0xff] }
 0x28e   : > { %v5385_v6 = vsel %vm12621_vm6, 1.0, %v12004_v15  ;;  %vm12623_vm7 = vcmp.eq.s32.totalorder %v12610_v12, %v12409_v25  ;;  %v2829_v42 = vadd.f32 %v2828_v53, %v2685_v22  ;;  %3476 = vmatpush1.msra.mxu1 %v12625_v47  ;;  %v2696_v1 = vmul.f32 %v10380_v8, %v2582_v9  ;;  %5822 = vmatmul.mubr.msk.f32.gmra.mxu0 %vm3089_vm12, %v12628_v17  ;;  %v2481_v12 = vpop.f32.mrf.mxu0 }
 0x28f   : > { %v5387_v3 = vsel %vm12623_vm7, 1.0, %v12004_v15  ;;  %v2701_v40 = vmul.f32 %v10392_v30, %v2471_v5  ;;  %vm12627_vm10 = vcmp.eq.s32.totalorder %v12626_v36, %v12575_v19  ;;  %v2871_v43 = vadd.f32 %v2870_v10, %v2687_v44  ;;  %5830 = vmatmul.mubr.msk.f32.gmra.mxu1 %vm3089_vm12, %v12628_v17  ;;  %3196 = vmatprep.mubr.f32.mxu0 %v12004_v15  ;;  %v2594_v10 = vpop.f32.mrf.mxu1 }
 0x290   : > { %v5400_v34 = vsel %vm12627_vm10, 1.0, %v12004_v15  ;;  %v2850_v53 = vadd.f32 %v2849_v52, %v2686_v31  ;;  %v2703_v22 = vmul.f32 %v10406_v45, %v2584_v28  ;;  %vm12629_vm14 = vcmp.eq.s32.totalorder %v12626_v36, %v12580_v2  ;;  %3309 = vmatprep.mubr.f32.mxu1 %v12004_v15 }
 0x291   : > { %v5402_v8 = vsel %vm12629_vm14, 1.0, %v12004_v15  ;;  %v2892_v30 = vadd.f32 %v2891_v57, %v2688_v26  ;;  %v2830_v9 = vadd.f32 %v2829_v42, %v2693_v27  ;;  %v2702_v5 = vmul.f32 %v10418_v37, %v2473_v21  ;;  %v2483_v37 = vpop.f32.mrf.mxu0  ;;  %v2596_v21 = vpop.f32.mrf.mxu1 }
 0x292   : > { %vm12630_vm2 = vcmp.eq.s32.totalorder %v12626_v36, %v12406_v39  ;;  %v2872_v28 = vadd.f32 %v2871_v43, %v2695_v4  ;;  %v2851_v61 = vadd.f32 %v2850_v53, %v2694_v24  ;;  %v2709_v44 = vmul.f32 %v10441_v60, %v2477_v63  ;;  %5823 = vmatmul.mubr.msk.f32.gmra.mxu0 %vm3089_vm12, %v12631_v16 }
 0x293   : > { %v5401_v45 = vsel %vm12630_vm2, 1.0, %v12004_v15  ;;  %v2711_v13 = vmul.f32 %v10451_v38, %v2590_v62  ;;  %v2893_v31 = vadd.f32 %v2892_v30, %v2696_v1  ;;  %v2831_v52 = vadd.f32 %v2830_v9, %v2701_v40  ;;  %5831 = vmatmul.mubr.msk.f32.gmra.mxu1 %vm3089_vm12, %v12631_v16  ;;  %3202 = vmatprep.mubr.f32.mxu0 %v12004_v15  ;;  %v2600_v63 = vpop.f32.mrf.mxu1  ;;  %v12633_v62 = vld [vmem:[#allocation18_spill] sm:$0xff] }
 0x294   : > { %v2704_v35 = vmul.f32 %v10430_v56, %v2586_v41  ;;  %v2710_v58 = vmul.f32 %v10461_v59, %v2479_v48  ;;  %v2873_v26 = vadd.f32 %v2872_v28, %v2703_v22  ;;  %v2717_v11 = vmul.f32 %v5384_v14, %v2481_v12  ;;  %3315 = vmatprep.mubr.f32.mxu1 %v12004_v15  ;;  %v2487_v41 = vpop.f32.mrf.mxu0 }
 0x295   : > { %v2719_v27 = vmul.f32 %v5386_v0, %v2594_v10  ;;  %vm12632_vm15 = vcmp.eq.s32.totalorder %v12626_v36, %v12409_v25  ;;  %v2852_v56 = vadd.f32 %v2851_v61, %v2702_v5  ;;  %v2712_v38 = vmul.f32 %v10473_v50, %v2592_v46  ;;  %v2602_v1 = vpop.f32.mrf.mxu1 }
 0x296   : > { %v5403_v60 = vsel %vm12632_vm15, 1.0, %v12004_v15  ;;  %v2718_v59 = vmul.f32 %v5385_v6, %v2483_v37  ;;  %vm12634_vm3 = vcmp.eq.s32.totalorder %v12633_v62, %v12575_v19  ;;  %v2832_v0 = vadd.f32 %v2831_v52, %v2709_v44  ;;  %v2489_v47 = vpop.f32.mrf.mxu0  ;;  %v12636_v6 = vld [vmem:[#allocation98_spill] sm:$0xff] }
 0x297   : > { %v5416_v14 = vsel %vm12634_vm3, 1.0, %v12004_v15  ;;  %v2874_v57 = vadd.f32 %v2873_v26, %v2711_v13  ;;  %v2725_v32 = vmul.f32 %v5400_v34, %v2487_v41  ;;  %v2727_v4 = vmul.f32 %v5402_v8, %v2600_v63  ;;  %5824 = vmatmul.mubr.msk.f32.gmra.mxu0 %vm3089_vm12, %v12636_v6  ;;  %5832 = vmatmul.mubr.msk.f32.gmra.mxu1 %vm3089_vm12, %v12636_v6  ;;  %v2604_v43 = vpop.f32.mrf.mxu1 }
 0x298   : > { %v2894_v24 = vadd.f32 %v2893_v31, %v2704_v35  ;;  %v2853_v42 = vadd.f32 %v2852_v56, %v2710_v58  ;;  %v2720_v29 = vmul.f32 %v5387_v3, %v2596_v21  ;;  %vm12635_vm13 = vcmp.eq.s32.totalorder %v12633_v62, %v12580_v2  ;;  %3208 = vmatprep.mubr.f32.mxu0 %v12004_v15  ;;  %v2491_v34 = vpop.f32.mrf.mxu0 }
 0x299   : > { %v5418_v50 = vsel %vm12635_vm13, 1.0, %v12004_v15  ;;  %v2833_v19 = vadd.f32 %v2832_v0, %v2717_v11  ;;  %v2875_v40 = vadd.f32 %v2874_v57, %v2719_v27  ;;  %v2726_v48 = vmul.f32 %v5401_v45, %v2489_v47  ;;  %3321 = vmatprep.mubr.f32.mxu1 %v12004_v15  ;;  %v2606_v10 = vpop.f32.mrf.mxu1  ;;  %v12639_v45 = vld [vmem:[#allocation95_spill] sm:$0xff] }
 0x29a   : > { %vm12637_vm11 = vcmp.eq.s32.totalorder %v12633_v62, %v12406_v39  ;;  %v2895_v2 = vadd.f32 %v2894_v24, %v2712_v38  ;;  %v2854_v46 = vadd.f32 %v2853_v42, %v2718_v59  ;;  %v2728_v36 = vmul.f32 %v5403_v60, %v2602_v1  ;;  %v2493_v12 = vpop.f32.mrf.mxu0  ;;  %v12640_v59 = vld [vmem:[#allocation102_spill] sm:$0xff] }
 0x29b   : > { %v5417_v3 = vsel %vm12637_vm11, 1.0, %v12004_v15  ;;  %vm12638_vm8 = vcmp.eq.s32.totalorder %v12633_v62, %v12409_v25  ;;  %v2834_v22 = vadd.f32 %v2833_v19, %v2725_v32  ;;  %v2876_v8 = vadd.f32 %v2875_v40, %v2727_v4  ;;  %5825 = vmatmul.mubr.msk.f32.gmra.mxu0 %vm3089_vm12, %v12639_v45  ;;  %5833 = vmatmul.mubr.msk.f32.gmra.mxu1 %vm3089_vm12, %v12639_v45 }
 0x29c   : > { %v5419_v53 = vsel %vm12638_vm8, 1.0, %v12004_v15  ;;  %v2733_v30 = vmul.f32 %v5416_v14, %v2491_v34  ;;  %v2735_v9 = vmul.f32 %v5418_v50, %v2604_v43  ;;  %v2896_v39 = vadd.f32 %v2895_v2, %v2720_v29  ;;  %3214 = vmatprep.mubr.f32.mxu0 %v12004_v15  ;;  %3327 = vmatprep.mubr.f32.mxu1 %v12004_v15  ;;  %v12641_v50 = vld [vmem:[#allocation78_spill] sm:$0xff] }
 0x29d   : > { %v2855_v5 = vadd.f32 %v2854_v46, %v2726_v48  ;;  %v2734_v44 = vmul.f32 %v5417_v3, %v2493_v12  ;;  %v2736_v13 = vmul.f32 %v5419_v53, %v2606_v10 }
 0x29e   : > { %v2835_v28 = vadd.f32 %v2834_v22, %v2733_v30  ;;  %v2877_v61 = vadd.f32 %v2876_v8, %v2735_v9  ;;  %v2897_v25 = vadd.f32 %v2896_v39, %v2728_v36  ;;  %v12642_v36 = vld [vmem:[#allocation77_spill] sm:$0xff] }
 0x29f   : > { %v2856_v35 = vadd.f32 %v2855_v5, %v2734_v44  ;;  %5826 = vmatmul.mubr.msk.f32.gmra.mxu0 %vm3089_vm12, %v10252_v20  ;;  %5834 = vmatmul.mubr.msk.f32.gmra.mxu1 %vm3089_vm12, %v10252_v20 }
 0x2a0   : > { %v2836_v31 = vrot.slane %v2835_v28, 4  ;;  %v2878_v52 = vrot.slane %v2877_v61, 4  ;;  %v2898_v58 = vadd.f32 %v2897_v25, %v2736_v13  ;;  %3220 = vmatprep.mubr.f32.mxu0 %v12004_v15  ;;  %3333 = vmatprep.mubr.f32.mxu1 %v12004_v15 }
 0x2a1   : > { %v2857_v26 = vrot.slane %v2856_v35, 4 }
 0x2a2   : > { %v2837_v37 = vadd.f32 %v2836_v31, %v2835_v28  ;;  %v2879_v21 = vadd.f32 %v2878_v52, %v2877_v61  ;;  %v2899_v11 = vrot.slane %v2898_v58, 4 }
 0x2a3   : > { %v2858_v56 = vadd.f32 %v2857_v26, %v2856_v35  ;;  %5827 = vmatmul.mubr.msk.f32.gmra.mxu0 %vm3089_vm12, %v12640_v59  ;;  %5835 = vmatmul.mubr.msk.f32.gmra.mxu1 %vm3089_vm12, %v12640_v59 }
 0x2a4   : > { %v2838_v27 = vrot.slane %v2837_v37, 2  ;;  %v2880_v60 = vrot.slane %v2879_v21, 2  ;;  %v2900_v38 = vadd.f32 %v2899_v11, %v2898_v58  ;;  %3404 = vmatprep.mubr.f32.mxu0 %v12004_v15  ;;  %3517 = vmatprep.mubr.f32.mxu1 %v12004_v15 }
 0x2a5   : > { %v2859_v62 = vrot.slane %v2858_v56, 2 }
 0x2a6   : > { %v2839_v41 = vadd.f32 %v2838_v27, %v2837_v37  ;;  %v2881_v63 = vadd.f32 %v2880_v60, %v2879_v21  ;;  %v2901_v14 = vrot.slane %v2900_v38, 2 }
 0x2a7   : > { %v2860_v32 = vadd.f32 %v2859_v62, %v2858_v56 }
 0x2a8   : > { %v2840_v0 = vrot.slane %v2839_v41, 1  ;;  %v2882_v57 = vrot.slane %v2881_v63, 1  ;;  %v2902_v4 = vadd.f32 %v2901_v14, %v2900_v38 }
 0x2a9   : > { %v2861_v29 = vrot.slane %v2860_v32, 1 }
 0x2aa   : > { %v2841_v24 = vadd.f32 %v2840_v0, %v2839_v41  ;;  %v2883_v42 = vadd.f32 %v2882_v57, %v2881_v63  ;;  %v2903_v47 = vrot.slane %v2902_v4, 1 }
 0x2ab   : > { %v2862_v1 = vadd.f32 %v2861_v29, %v2860_v32 }
 0x2ac   : > { %v2961_v19 = vmul.f32 %v12641_v50, %v2841_v24  ;;  %v2963_v40 = vmul.f32 %v12641_v50, %v2883_v42  ;;  %v2953_v48 = vmul.f32 %v10184_v51, %v2841_v24  ;;  %v2904_v3 = vadd.f32 %v2903_v47, %v2902_v4 }
 0x2ad   : > { %v2955_v2 = vmul.f32 %v10184_v51, %v2883_v42  ;;  %v2962_v46 = vmul.f32 %v12641_v50, %v2862_v1  ;;  %v2954_v53 = vmul.f32 %v10184_v51, %v2862_v1  ;;  %v2945_v30 = vmul.f32 %v10186_v49, %v2841_v24 }
 0x2ae   : > { %v3009_v34 = vadd.f32 %v12642_v36, %v2961_v19  ;;  %v3011_v43 = vadd.f32 %v12642_v36, %v2963_v40  ;;  %v2964_v22 = vmul.f32 %v12641_v50, %v2904_v3  ;;  %v2956_v8 = vmul.f32 %v10184_v51, %v2904_v3  ;;  %v10712_v19 = vld [vmem:[%s11488_s5 + $0x10] sm:$0xff]  ;;  %v10718_v40 = vld [vmem:[%s11488_s5 + $0x18] sm:$0xff] }
 0x2af   : > { %v2947_v9 = vmul.f32 %v10186_v49, %v2883_v42  ;;  %v3010_v39 = vadd.f32 %v12642_v36, %v2962_v46  ;;  %v3002_v5 = vadd.f32 %v10272_v54, %v2954_v53  ;;  %v3001_v12 = vadd.f32 %v10272_v54, %v2953_v48  ;;  %12645 = vst [vmem:[#allocation105_spill] sm:$0xff] %v10712_v19  ;;  %v10734_v46 = vld [vmem:[%s11488_s5 + $0x8] sm:$0xff] }
 0x2b0   : > { %v3012_v10 = vadd.f32 %v12642_v36, %v2964_v22  ;;  %v3041_v28 = vmax.f32 %v3009_v34, 0.0  ;;  %v3004_v61 = vadd.f32 %v10272_v54, %v2956_v8  ;;  %v3003_v44 = vadd.f32 %v10272_v54, %v2955_v2  ;;  %12646 = vst [vmem:[#allocation106_spill] sm:$0xff] %v10718_v40  ;;  %v10728_v2 = vld [vmem:[%s11488_s5] sm:$0xff]  ;;  %12648 = vst [vmem:[#allocation107_spill] sm:$0xff] %v10734_v46 }
 0x2b1   : > { %v3042_v25 = vmax.f32 %v3010_v39, 0.0  ;;  %v3043_v13 = vmax.f32 %v3011_v43, 0.0  ;;  %v2946_v51 = vmul.f32 %v10186_v49, %v2862_v1  ;;  %v2948_v31 = vmul.f32 %v10186_v49, %v2904_v3  ;;  %12647 = vst [vmem:[#allocation34_spill] sm:$0xff] %v10728_v2 }
 0x2b2   : > { %v3044_v52 = vmax.f32 %v3012_v10, 0.0  ;;  %v3034_v35 = vmax.f32 %v3002_v5, 0.0  ;;  %v2993_v58 = vadd.f32 %v10308_v23, %v2945_v30  ;;  %v2995_v37 = vadd.f32 %v10308_v23, %v2947_v9 }
 0x2b3   : > { %3364 = vmatprep.subr.mxu0 %v3042_v25  ;;  %v2994_v21 = vadd.f32 %v10308_v23, %v2946_v51  ;;  %v2996_v26 = vadd.f32 %v10308_v23, %v2948_v31  ;;  %v2938_v11 = vmul.f32 %v10274_v33, %v2862_v1  ;;  %v2940_v54 = vmul.f32 %v10274_v33, %v2904_v3 }
 0x2b4   : > { %3477 = vmatprep.subr.mxu1 %v3044_v52  ;;  %3365 = vmatpush1.msra.mxu0 %v3041_v28  ;;  %v3036_v27 = vmax.f32 %v3004_v61, 0.0  ;;  %v3033_v60 = vmax.f32 %v3001_v12, 0.0  ;;  %v2937_v49 = vmul.f32 %v10274_v33, %v2841_v24  ;;  %v2939_v56 = vmul.f32 %v10274_v33, %v2883_v42 }
 0x2b5   : > { %3478 = vmatpush1.msra.mxu1 %v3043_v13  ;;  %3366 = vmatprep.subr.mxu0 %v3034_v35  ;;  %v3035_v38 = vmax.f32 %v3003_v44, 0.0  ;;  %v3026_v41 = vmax.f32 %v2994_v21, 0.0  ;;  %v2986_v63 = vadd.f32 %v10318_v7, %v2938_v11  ;;  %v2988_v23 = vadd.f32 %v10318_v7, %v2940_v54 }
 0x2b6   : > { %3479 = vmatprep.subr.mxu1 %v3036_v27  ;;  %3367 = vmatpush1.msra.mxu0 %v3033_v60  ;;  %v3028_v62 = vmax.f32 %v2996_v26, 0.0  ;;  %v3025_v14 = vmax.f32 %v2993_v58, 0.0  ;;  %v2985_v0 = vadd.f32 %v10318_v7, %v2937_v49  ;;  %v2987_v57 = vadd.f32 %v10318_v7, %v2939_v56 }
 0x2b7   : > { %3480 = vmatpush1.msra.mxu1 %v3035_v38  ;;  %3368 = vmatprep.subr.mxu0 %v3026_v41  ;;  %v3027_v32 = vmax.f32 %v2995_v37, 0.0  ;;  %v3018_v33 = vmax.f32 %v2986_v63, 0.0  ;;  %v3020_v4 = vmax.f32 %v2988_v23, 0.0 }
 0x2b8   : > { %3481 = vmatprep.subr.mxu1 %v3028_v62  ;;  %3369 = vmatpush1.msra.mxu0 %v3025_v14  ;;  %v3017_v24 = vmax.f32 %v2985_v0, 0.0  ;;  %v3019_v42 = vmax.f32 %v2987_v57, 0.0 }
 0x2b9   : > { %3482 = vmatpush1.msra.mxu1 %v3027_v32  ;;  %3370 = vmatprep.subr.mxu0 %v3018_v33 }
 0x2ba   : > { %3483 = vmatprep.subr.mxu1 %v3020_v4  ;;  %3371 = vmatpush1.msra.mxu0 %v3017_v24 }
 0x2bb   : > { %3484 = vmatpush1.msra.mxu1 %v3019_v42  ;;  %5836 = vmatmul.mubr.msk.f32.vlgmr.msra.gmra.mxu0 %vm3089_vm12, %v12579_v55 }
 0x2bc   : > { %5844 = vmatmul.mubr.msk.f32.vlgmr.msra.gmra.mxu1 %vm3089_vm12, %v12579_v55  ;;  %3410 = vmatprep.mubr.f32.mxu0 %v12004_v15 }
 0x2bd   : > { %3523 = vmatprep.mubr.f32.mxu1 %v12004_v15 }
 0x2be   : > { %v10741_v30 = vpop.permute.xlu1 %3086 }
 0x2bf   : > { %5837 = vmatmul.mubr.msk.f32.gmra.mxu0 %vm3089_vm12, %v12604_v18 }
 0x2c0   : > { %5845 = vmatmul.mubr.msk.f32.gmra.mxu1 %vm3089_vm12, %v12604_v18  ;;  %3416 = vmatprep.mubr.f32.mxu0 %v12004_v15  ;;  %v6244_v18 = vmov 3  }
 0x2c1   : > { %3529 = vmatprep.mubr.f32.mxu1 %v12004_v15  ;;  %6021 = vset.pattern.permute.xlu0 %v6244_v18  ;;  %v10745_v31 = vpop.permute.xlu0 %3081 }
 0x2c2   : > { %6022 = vset.pattern.permute.xlu1 %v6244_v18  ;;  %v10743_v61 = vpop.permute.xlu1 %3076 }
 0x2c3   : > { %5838 = vmatmul.mubr.msk.f32.gmra.mxu0 %vm3089_vm12, %v12628_v17 }
 0x2c4   : > { %5846 = vmatmul.mubr.msk.f32.gmra.mxu1 %vm3089_vm12, %v12628_v17  ;;  %3422 = vmatprep.mubr.f32.mxu0 %v12004_v15  ;;  %v10682_v17 = vld [vmem:[%s11488_s5 + $0x30] sm:$0xff] }
 0x2c5   : > { %3535 = vmatprep.mubr.f32.mxu1 %v12004_v15  ;;  %3655 = vperm.xlu1 %6022, %v10682_v17   ;;  %v10763_v24 = vpop.permute.xlu0 %3066 }
 0x2c6   : > { %v10747_v58 = vpop.permute.xlu1 %3071 }
 0x2c7   : > { %5839 = vmatmul.mubr.msk.f32.gmra.mxu0 %vm3089_vm12, %v12631_v16 }
 0x2c8   : > { %5847 = vmatmul.mubr.msk.f32.gmra.mxu1 %vm3089_vm12, %v12631_v16  ;;  %3428 = vmatprep.mubr.f32.mxu0 %v12004_v15 }
 0x2c9   : > { %3541 = vmatprep.mubr.f32.mxu1 %v12004_v15 }
 0x2cb   : > { %5840 = vmatmul.mubr.msk.f32.gmra.mxu0 %vm3089_vm12, %v12636_v6 }
 0x2cc   : > { %5848 = vmatmul.mubr.msk.f32.gmra.mxu1 %vm3089_vm12, %v12636_v6  ;;  %3434 = vmatprep.mubr.f32.mxu0 %v12004_v15 }
 0x2cd   : > { %3547 = vmatprep.mubr.f32.mxu1 %v12004_v15 }
 0x2cf   : > { %5841 = vmatmul.mubr.msk.f32.gmra.mxu0 %vm3089_vm12, %v12639_v45 }
 0x2d0   : > { %5849 = vmatmul.mubr.msk.f32.gmra.mxu1 %vm3089_vm12, %v12639_v45  ;;  %3440 = vmatprep.mubr.f32.mxu0 %v12004_v15  ;;  %v10692_v45 = vld [vmem:[%s11488_s5 + $0x20] sm:$0xff] }
 0x2d1   : > { %3553 = vmatprep.mubr.f32.mxu1 %v12004_v15  ;;  %12643 = vst [vmem:[#allocation103_spill] sm:$0xff] %v10692_v45 }
 0x2d3   : > { %5842 = vmatmul.mubr.msk.f32.gmra.mxu0 %vm3089_vm12, %v10252_v20 }
 0x2d4   : > { %5850 = vmatmul.mubr.msk.f32.gmra.mxu1 %vm3089_vm12, %v10252_v20  ;;  %3446 = vmatprep.mubr.f32.mxu0 %v12004_v15  ;;  %v10676_v20 = vld [vmem:[%s11488_s5 + $0x38] sm:$0xff] }
 0x2d5   : > { %3559 = vmatprep.mubr.f32.mxu1 %v12004_v15  ;;  %3659 = vperm.xlu0 %6021, %v10676_v20  }
 0x2d7   : > { %5843 = vmatmul.mubr.msk.f32.gmra.mxu0 %vm3089_vm12, %v12640_v59 }
 0x2d8   : > { %5851 = vmatmul.mubr.msk.f32.gmra.mxu1 %vm3089_vm12, %v12640_v59  ;;  %3758 = vmatprep.mubr.f32.mxu0 %v12004_v15  ;;  %v10698_v59 = vld [vmem:[%s11488_s5 + $0x28] sm:$0xff] }
 0x2d9   : > { %3871 = vmatprep.mubr.f32.mxu1 %v12004_v15  ;;  %3647 = vperm.xlu0 %6021, %v10692_v45   ;;  %12644 = vst [vmem:[#allocation104_spill] sm:$0xff] %v10698_v59 }
 0x2da   : > { %3651 = vperm.xlu1 %6022, %v10698_v59  }
 0x2dd   : > { %3639 = vperm.xlu0 %6021, %v10712_v19  }
 0x2de   : > { %3643 = vperm.xlu1 %6022, %v10718_v40  }
 0x2e1   : > { %3631 = vperm.xlu0 %6021, %v10728_v2  }
 0x2e2   : > { %3635 = vperm.xlu1 %6022, %v10734_v46  }
 0x341   : > { %v10669_v7 = vpop.f32.mrf.mxu0  ;;  %v10671_v55 = vpop.f32.mrf.mxu1 }
 0x343   : > { %v10685_v16 = vpop.f32.mrf.mxu0  ;;  %v10687_v6 = vpop.f32.mrf.mxu1 }
 0x347   : > { %v10701_v29 = vpop.f32.mrf.mxu0 }
 0x348   : > { %v10703_v47 = vpop.f32.mrf.mxu1 }
 0x349   : > { %v10705_v1 = vpop.f32.mrf.mxu0 }
 0x34a   : > { %v10707_v50 = vpop.f32.mrf.mxu1 }
 0x34e   : > { %v10721_v48 = vpop.f32.mrf.mxu0 }
 0x34f   : > { %v10723_v3 = vpop.f32.mrf.mxu1 }
 0x350   : > { %v10737_v36 = vpop.f32.mrf.mxu0 }
 0x351   : > { %v10739_v34 = vpop.f32.mrf.mxu1 }
 0x352   : > { %v3198_v43 = vpop.f32.mrf.mxu0 }
 0x353   : > { %v3311_v53 = vpop.f32.mrf.mxu1 }
 0x354   : > { %v3200_v22 = vpop.f32.mrf.mxu0 }
 0x355   : > { %v3313_v8 = vpop.f32.mrf.mxu1 }
 0x357   : > { %v3204_v9 = vpop.f32.mrf.mxu0  ;;  %v3317_v39 = vpop.f32.mrf.mxu1 }
 0x359   : > { %v3206_v5 = vpop.f32.mrf.mxu0  ;;  %v3319_v12 = vpop.f32.mrf.mxu1 }
 0x35a   : > { %v3207_v41 = vadd.f32 %v3206_v5, %v10747_v58  ;;  %v3320_v63 = vadd.f32 %v3319_v12, %v10747_v58 }
 0x35b   : > { %v3210_v10 = vpop.f32.mrf.mxu0  ;;  %v3323_v28 = vpop.f32.mrf.mxu1 }
 0x35c   : > { %v3211_v57 = vadd.f32 %v3210_v10, %v10743_v61  ;;  %v3324_v32 = vadd.f32 %v3323_v28, %v10743_v61  ;;  %v3201_v28 = vadd.f32 %v3200_v22, %v10763_v24 }
 0x35d   : > { %v3212_v44 = vpop.f32.mrf.mxu0  ;;  %v3325_v25 = vpop.f32.mrf.mxu1 }
 0x35e   : > { %v3213_v23 = vadd.f32 %v3212_v44, %v10743_v61  ;;  %v3326_v62 = vadd.f32 %v3325_v25, %v10743_v61 }
 0x35f   : > { %v3216_v13 = vpop.f32.mrf.mxu0  ;;  %v3329_v51 = vpop.f32.mrf.mxu1 }
 0x360   : > { %v3217_v56 = vadd.f32 %v3216_v13, %v10745_v31  ;;  %v3330_v38 = vadd.f32 %v3329_v51, %v10745_v31  ;;  %v10765_v13 = vpop.permute.xlu1 %3062  ;;  %v3205_v51 = vadd.f32 %v3204_v9, %v10747_v58  ;;  %v3609_v10 = vmax.f32 %v3326_v62, 0.0 }
 0x361   : > { %v3218_v52 = vpop.f32.mrf.mxu0  ;;  %v3331_v35 = vpop.f32.mrf.mxu1  ;;  %v3599_v9 = vmax.f32 %v3207_v41, 0.0  ;;  %v3308_v22 = vadd.f32 %v10739_v34, %v10765_v13 }
 0x362   : > { %v3219_v54 = vadd.f32 %v3218_v52, %v10745_v31  ;;  %v3332_v27 = vadd.f32 %v3331_v35, %v10745_v31  ;;  %v3614_v44 = vmax.f32 %v3217_v56, 0.0  ;;  %v3616_v25 = vmax.f32 %v3330_v38, 0.0 }
 0x363   : > { %v3222_v37 = vpop.f32.mrf.mxu0  ;;  %v3335_v21 = vpop.f32.mrf.mxu1  ;;  %v3318_v52 = vadd.f32 %v3317_v39, %v10747_v58  ;;  %v3607_v35 = vmax.f32 %v3213_v23, 0.0  ;;  %v3601_v39 = vmax.f32 %v3320_v63, 0.0  ;;  %v3591_v56 = vmax.f32 %v3201_v28, 0.0 }
 0x364   : > { %v3223_v26 = vadd.f32 %v3222_v37, %v10741_v30  ;;  %v3336_v11 = vadd.f32 %v3335_v21, %v10741_v30  ;;  %v3615_v5 = vmax.f32 %v3219_v54, 0.0  ;;  %v3617_v12 = vmax.f32 %v3332_v27, 0.0 }
 0x365   : > { %v3224_v60 = vpop.f32.mrf.mxu0  ;;  %v3337_v49 = vpop.f32.mrf.mxu1  ;;  %v3314_v37 = vadd.f32 %v3313_v8, %v10763_v24  ;;  %v3606_v21 = vmax.f32 %v3211_v57, 0.0  ;;  %v3312_v54 = vadd.f32 %v3311_v53, %v10763_v24  ;;  %v3195_v27 = vadd.f32 %v10737_v36, %v10765_v13 }
 0x366   : > { %v3225_v14 = vadd.f32 %v3224_v60, %v10741_v30  ;;  %v3338_v0 = vadd.f32 %v3337_v49, %v10741_v30  ;;  %v3622_v33 = vmax.f32 %v3223_v26, 0.0  ;;  %v3624_v4 = vmax.f32 %v3336_v11, 0.0  ;;  %v10777_v60 = vpop.permute.xlu0 %3058  ;;  %v10783_v36 = vpop.permute.xlu1 %3054 }
 0x367   : > { %v3608_v26 = vmax.f32 %v3324_v32, 0.0  ;;  %v3199_v11 = vadd.f32 %v3198_v43, %v10763_v24  ;;  %v3598_v8 = vmax.f32 %v3205_v51, 0.0  ;;  %v3600_v49 = vmax.f32 %v3318_v52, 0.0 }
 0x368   : > { %v3623_v42 = vmax.f32 %v3225_v14, 0.0  ;;  %v3625_v18 = vmax.f32 %v3338_v0, 0.0  ;;  %v3193_v43 = vadd.f32 %v10721_v48, %v10765_v13  ;;  %v3306_v53 = vadd.f32 %v10723_v3, %v10765_v13 }
 0x369   : > { %v3593_v38 = vmax.f32 %v3314_v37, 0.0  ;;  %v3590_v34 = vmax.f32 %v3199_v11, 0.0  ;;  %v3592_v41 = vmax.f32 %v3312_v54, 0.0  ;;  %v3583_v63 = vmax.f32 %v3195_v27, 0.0 }
 0x36a   : > { %3710 = vmatprep.subr.mxu0 %v3623_v42  ;;  %3823 = vmatprep.subr.mxu1 %v3625_v18  ;;  %v3585_v23 = vmax.f32 %v3308_v22, 0.0  ;;  %v3189_v48 = vadd.f32 %v10705_v1, %v10777_v60  ;;  %v3302_v3 = vadd.f32 %v10707_v50, %v10777_v60  ;;  %v3582_v62 = vmax.f32 %v3193_v43, 0.0  ;;  %v10801_v18 = vpop.permute.xlu0 %3662 }
 0x36b   : > { %3711 = vmatpush1.msra.mxu0 %v3622_v33  ;;  %3824 = vmatpush1.msra.mxu1 %v3624_v4  ;;  %v3584_v14 = vmax.f32 %v3306_v53, 0.0  ;;  %v3187_v0 = vadd.f32 %v10701_v29, %v10777_v60  ;;  %v3300_v57 = vadd.f32 %v10703_v47, %v10777_v60  ;;  %v3183_v32 = vadd.f32 %v10685_v16, %v10783_v36 }
 0x36c   : > { %3712 = vmatprep.subr.mxu0 %v3615_v5  ;;  %3825 = vmatprep.subr.mxu1 %v3617_v12  ;;  %v3296_v1 = vadd.f32 %v10687_v6, %v10783_v36  ;;  %v3181_v50 = vadd.f32 %v10669_v7, %v10783_v36  ;;  %v3294_v33 = vadd.f32 %v10671_v55, %v10783_v36  ;;  %v3575_v29 = vmax.f32 %v3189_v48, 0.0 }
 0x36d   : > { %3713 = vmatpush1.msra.mxu0 %v3614_v44  ;;  %3826 = vmatpush1.msra.mxu1 %v3616_v25  ;;  %v3577_v47 = vmax.f32 %v3302_v3, 0.0  ;;  %v3574_v4 = vmax.f32 %v3187_v0, 0.0  ;;  %v3576_v42 = vmax.f32 %v3300_v57, 0.0  ;;  %v3567_v16 = vmax.f32 %v3183_v32, 0.0  ;;  %v10811_v44 = vpop.permute.xlu1 %3664 }
 0x36e   : > { %3714 = vmatprep.subr.mxu0 %v3607_v35  ;;  %3827 = vmatprep.subr.mxu1 %v3609_v10  ;;  %v3569_v6 = vmax.f32 %v3296_v1, 0.0  ;;  %v3566_v7 = vmax.f32 %v3181_v50, 0.0  ;;  %v3568_v5 = vmax.f32 %v3294_v33, 0.0  ;;  %v10827_v10 = vpop.permute.xlu0 %3666 }
 0x36f   : > { %3715 = vmatpush1.msra.mxu0 %v3606_v21  ;;  %3828 = vmatpush1.msra.mxu1 %v3608_v26 }
 0x370   : > { %3716 = vmatprep.subr.mxu0 %v3599_v9  ;;  %3829 = vmatprep.subr.mxu1 %v3601_v39 }
 0x371   : > { %3717 = vmatpush1.msra.mxu0 %v3598_v8  ;;  %3830 = vmatpush1.msra.mxu1 %v3600_v49  ;;  %v10843_v11 = vpop.permute.xlu1 %3668 }
 0x372   : > { %3718 = vmatprep.subr.mxu0 %v3591_v56  ;;  %3831 = vmatprep.subr.mxu1 %v3593_v38  ;;  %v10859_v22 = vpop.permute.xlu0 %3670 }
 0x373   : > { %3719 = vmatpush1.msra.mxu0 %v3590_v34  ;;  %3832 = vmatpush1.msra.mxu1 %v3592_v41 }
 0x374   : > { %3720 = vmatprep.subr.mxu0 %v3583_v63  ;;  %3833 = vmatprep.subr.mxu1 %v3585_v23 }
 0x375   : > { %3721 = vmatpush1.msra.mxu0 %v3582_v62  ;;  %3834 = vmatpush1.msra.mxu1 %v3584_v14  ;;  %v10869_v56 = vpop.permute.xlu1 %3672 }
 0x376   : > { %3722 = vmatprep.subr.mxu0 %v3575_v29  ;;  %3835 = vmatprep.subr.mxu1 %v3577_v47  ;;  %v10877_v23 = vpop.permute.xlu0 %3674 }
 0x377   : > { %3723 = vmatpush1.msra.mxu0 %v3574_v4  ;;  %3836 = vmatpush1.msra.mxu1 %v3576_v42 }
 0x378   : > { %3724 = vmatprep.subr.mxu0 %v3567_v16  ;;  %3837 = vmatprep.subr.mxu1 %v3569_v6 }
 0x379   : > { %3725 = vmatpush1.msra.mxu0 %v3566_v7  ;;  %3838 = vmatpush1.msra.mxu1 %v3568_v5  ;;  %v10885_v0 = vpop.permute.xlu1 %3676 }
 0x37a   : > { %5852 = vmatmul.mubr.msk.f32.vlgmr.msra.gmra.mxu0 %vm3089_vm12, %v10801_v18  ;;  %5860 = vmatmul.mubr.msk.f32.vlgmr.msra.gmra.mxu1 %vm3089_vm12, %v10801_v18 }
 0x37b   : > { %v10803_v55 = vpop.f32.mrf.mxu0  ;;  %3764 = vmatprep.mubr.f32.mxu0 %v12004_v15  ;;  %3877 = vmatprep.mubr.f32.mxu1 %v12004_v15 }
 0x37c   : > { %v10809_v12 = vpop.f32.mrf.mxu1 }
 0x37d   : > { %v10815_v25 = vpop.f32.mrf.mxu0 }
 0x37e   : > { %v10817_v51 = vpop.f32.mrf.mxu1  ;;  %5853 = vmatmul.mubr.msk.f32.gmra.mxu0 %vm3089_vm12, %v10811_v44  ;;  %5861 = vmatmul.mubr.msk.f32.gmra.mxu1 %vm3089_vm12, %v10811_v44 }
 0x37f   : > { %v10819_v52 = vpop.f32.mrf.mxu0  ;;  %3770 = vmatprep.mubr.f32.mxu0 %v12004_v15  ;;  %3883 = vmatprep.mubr.f32.mxu1 %v12004_v15 }
 0x380   : > { %v10825_v35 = vpop.f32.mrf.mxu1 }
 0x381   : > { %v10831_v28 = vpop.f32.mrf.mxu0 }
 0x382   : > { %v10833_v37 = vpop.f32.mrf.mxu1  ;;  %5854 = vmatmul.mubr.msk.f32.gmra.mxu0 %vm3089_vm12, %v10827_v10  ;;  %5862 = vmatmul.mubr.msk.f32.gmra.mxu1 %vm3089_vm12, %v10827_v10 }
 0x383   : > { %v10835_v21 = vpop.f32.mrf.mxu0  ;;  %3776 = vmatprep.mubr.f32.mxu0 %v12004_v15  ;;  %3889 = vmatprep.mubr.f32.mxu1 %v12004_v15 }
 0x384   : > { %v10841_v26 = vpop.f32.mrf.mxu1 }
 0x385   : > { %v10847_v54 = vpop.f32.mrf.mxu0 }
 0x386   : > { %v10849_v9 = vpop.f32.mrf.mxu1  ;;  %5855 = vmatmul.mubr.msk.f32.gmra.mxu0 %vm3089_vm12, %v10843_v11  ;;  %5863 = vmatmul.mubr.msk.f32.gmra.mxu1 %vm3089_vm12, %v10843_v11 }
 0x387   : > { %v10851_v39 = vpop.f32.mrf.mxu0  ;;  %3782 = vmatprep.mubr.f32.mxu0 %v12004_v15  ;;  %3895 = vmatprep.mubr.f32.mxu1 %v12004_v15 }
 0x388   : > { %v10857_v27 = vpop.f32.mrf.mxu1 }
 0x389   : > { %v3426_v8 = vpop.f32.mrf.mxu0 }
 0x38a   : > { %v10863_v49 = vpop.f32.mrf.mxu1  ;;  %5856 = vmatmul.mubr.msk.f32.gmra.mxu0 %vm3089_vm12, %v10859_v22  ;;  %5864 = vmatmul.mubr.msk.f32.gmra.mxu1 %vm3089_vm12, %v10859_v22 }
 0x38b   : > { %v3430_v43 = vpop.f32.mrf.mxu0  ;;  %3788 = vmatprep.mubr.f32.mxu0 %v12004_v15  ;;  %3901 = vmatprep.mubr.f32.mxu1 %v12004_v15 }
 0x38c   : > { %v3543_v53 = vpop.f32.mrf.mxu1 }
 0x38d   : > { %v3432_v38 = vpop.f32.mrf.mxu0 }
 0x38e   : > { %v3545_v34 = vpop.f32.mrf.mxu1  ;;  %5857 = vmatmul.mubr.msk.f32.gmra.mxu0 %vm3089_vm12, %v10869_v56  ;;  %5865 = vmatmul.mubr.msk.f32.gmra.mxu1 %vm3089_vm12, %v10869_v56 }
 0x38f   : > { %v3436_v41 = vpop.f32.mrf.mxu0  ;;  %3794 = vmatprep.mubr.f32.mxu0 %v12004_v15  ;;  %3907 = vmatprep.mubr.f32.mxu1 %v12004_v15 }
 0x390   : > { %v3549_v63 = vpop.f32.mrf.mxu1  ;;  %v3437_v46 = vadd.f32 %v3436_v41, %v10743_v61  ;;  %v3427_v41 = vadd.f32 %v3426_v8, %v10763_v24 }
 0x391   : > { %v3438_v48 = vpop.f32.mrf.mxu0  ;;  %v3550_v40 = vadd.f32 %v3549_v63, %v10743_v61 }
 0x392   : > { %v3551_v3 = vpop.f32.mrf.mxu1  ;;  %5858 = vmatmul.mubr.msk.f32.gmra.mxu0 %vm3089_vm12, %v10877_v23  ;;  %5866 = vmatmul.mubr.msk.f32.gmra.mxu1 %vm3089_vm12, %v10877_v23 }
 0x393   : > { %v3442_v62 = vpop.f32.mrf.mxu0  ;;  %3800 = vmatprep.mubr.f32.mxu0 %v12004_v15  ;;  %3913 = vmatprep.mubr.f32.mxu1 %v12004_v15 }
 0x394   : > { %v3555_v14 = vpop.f32.mrf.mxu1  ;;  %v3443_v6 = vadd.f32 %v3442_v62, %v10745_v31 }
 0x395   : > { %v3444_v57 = vpop.f32.mrf.mxu0  ;;  %v3556_v2 = vadd.f32 %v3555_v14, %v10745_v31 }
 0x396   : > { %v3557_v32 = vpop.f32.mrf.mxu1  ;;  %5859 = vmatmul.mubr.msk.f32.gmra.mxu0 %vm3089_vm12, %v10885_v0  ;;  %5867 = vmatmul.mubr.msk.f32.gmra.mxu1 %vm3089_vm12, %v10885_v0  ;;  %v3445_v47 = vadd.f32 %v3444_v57, %v10745_v31  ;;  %v3552_v57 = vadd.f32 %v3551_v3, %v10743_v61  ;;  %v3544_v3 = vadd.f32 %v3543_v53, %v10747_v58 }
 0x397   : > { %v3448_v1 = vpop.f32.mrf.mxu0  ;;  %3984 = vmatprep.mubr.f32.mxu0 %v12004_v15  ;;  %4097 = vmatprep.mubr.f32.mxu1 %v12004_v15  ;;  %v3558_v7 = vadd.f32 %v3557_v32, %v10745_v31  ;;  %v3618_v32 = vmax.f32 %v3443_v6, 0.0 }
 0x398   : > { %v3561_v50 = vpop.f32.mrf.mxu1  ;;  %v3449_v33 = vadd.f32 %v3448_v1, %v10741_v30  ;;  %v3439_v1 = vadd.f32 %v3438_v48, %v10743_v61  ;;  %v3619_v62 = vmax.f32 %v3445_v47, 0.0  ;;  %v3546_v48 = vadd.f32 %v3545_v34, %v10747_v58 }
 0x399   : > { %v3450_v29 = vpop.f32.mrf.mxu0  ;;  %v3562_v4 = vadd.f32 %v3561_v50, %v10741_v30  ;;  %v3621_v31 = vmax.f32 %v3558_v7, 0.0  ;;  %v3425_v61 = vadd.f32 %v10851_v39, %v10763_v24  ;;  %v3534_v39 = vadd.f32 %v10849_v9, %v10765_v13 }
 0x39a   : > { %v3451_v42 = vadd.f32 %v3450_v29, %v10741_v30  ;;  %v3563_v16 = vpop.f32.mrf.mxu1  ;;  %v3626_v45 = vmax.f32 %v3449_v33, 0.0  ;;  %v3433_v29 = vadd.f32 %v3432_v38, %v10747_v58  ;;  %v3611_v14 = vmax.f32 %v3439_v1, 0.0  ;;  %v12650_v1 = vld [vmem:[#allocation106_spill] sm:$0xff] }
 0x39b   : > { %v3564_v5 = vadd.f32 %v3563_v16, %v10741_v30  ;;  %v3628_v59 = vmax.f32 %v3562_v4, 0.0  ;;  %v3431_v30 = vadd.f32 %v3430_v43, %v10747_v58  ;;  %v3620_v33 = vmax.f32 %v3556_v2, 0.0 }
 0x39c   : > { %v3627_v19 = vmax.f32 %v3451_v42, 0.0  ;;  %v3610_v43 = vmax.f32 %v3437_v46, 0.0  ;;  %v3613_v38 = vmax.f32 %v3552_v57, 0.0  ;;  %v3538_v58 = vadd.f32 %v10857_v27, %v10763_v24 }
 0x39d   : > { %v3629_v50 = vmax.f32 %v3564_v5, 0.0  ;;  %v3603_v8 = vmax.f32 %v3433_v29, 0.0  ;;  %v3612_v2 = vmax.f32 %v3550_v40, 0.0  ;;  %v3602_v46 = vmax.f32 %v3431_v30, 0.0 }
 0x39e   : > { %3936 = vmatprep.subr.mxu0 %v3627_v19  ;;  %v3540_v19 = vadd.f32 %v10863_v49, %v10763_v24  ;;  %v3605_v49 = vmax.f32 %v3546_v48, 0.0  ;;  %v3532_v24 = vadd.f32 %v10841_v26, %v10765_v13  ;;  %v3595_v27 = vmax.f32 %v3427_v41, 0.0  ;;  %v12653_v41 = vld [vmem:[#allocation105_spill] sm:$0xff] }
 0x39f   : > { %4049 = vmatprep.subr.mxu1 %v3629_v50  ;;  %3937 = vmatpush1.msra.mxu0 %v3626_v45  ;;  %v3421_v45 = vadd.f32 %v10847_v54, %v10765_v13  ;;  %v3415_v54 = vadd.f32 %v10831_v28, %v10777_v60  ;;  %v3604_v40 = vmax.f32 %v3544_v3, 0.0  ;;  %v3528_v9 = vadd.f32 %v10833_v37, %v10777_v60 }
 0x3a0   : > { %4050 = vmatpush1.msra.mxu1 %v3628_v59  ;;  %3938 = vmatprep.subr.mxu0 %v3619_v62  ;;  %v3419_v59 = vadd.f32 %v10835_v21, %v10765_v13  ;;  %v3413_v21 = vadd.f32 %v10819_v52, %v10777_v60  ;;  %v3594_v53 = vmax.f32 %v3425_v61, 0.0  ;;  %v3597_v34 = vmax.f32 %v3540_v19, 0.0  ;;  %v12652_v62 = vld [vmem:[#allocation107_spill] sm:$0xff]  ;;  %v12654_v19 = vld [vmem:[#allocation34_spill] sm:$0xff] }
 0x3a1   : > { %4051 = vmatprep.subr.mxu1 %v3621_v31  ;;  %3939 = vmatpush1.msra.mxu0 %v3618_v32  ;;  %v3409_v28 = vadd.f32 %v10815_v25, %v10783_v36  ;;  %v3526_v13 = vadd.f32 %v10825_v35, %v10777_v60  ;;  %v3587_v26 = vmax.f32 %v3421_v45, 0.0  ;;  %v3596_v63 = vmax.f32 %v3538_v58, 0.0  ;;  %v11022_v45 = vpop.permute.xlu1 %3655 }
 0x3a2   : > { %4052 = vmatpush1.msra.mxu1 %v3620_v33  ;;  %3940 = vmatprep.subr.mxu0 %v3611_v14  ;;  %v3407_v52 = vadd.f32 %v10803_v55, %v10783_v36  ;;  %v3522_v37 = vadd.f32 %v10817_v51, %v10783_v36  ;;  %v3586_v47 = vmax.f32 %v3419_v59, 0.0  ;;  %v3589_v4 = vmax.f32 %v3534_v39, 0.0 }
 0x3a3   : > { %4053 = vmatprep.subr.mxu1 %v3613_v38  ;;  %3941 = vmatpush1.msra.mxu0 %v3610_v43  ;;  %v3520_v25 = vadd.f32 %v10809_v12, %v10783_v36  ;;  %v3579_v42 = vmax.f32 %v3415_v54, 0.0  ;;  %v3588_v16 = vmax.f32 %v3532_v24, 0.0  ;;  %v3578_v60 = vmax.f32 %v3413_v21, 0.0 }
 0x3a4   : > { %4054 = vmatpush1.msra.mxu1 %v3612_v2  ;;  %3942 = vmatprep.subr.mxu0 %v3603_v8  ;;  %v3581_v35 = vmax.f32 %v3528_v9, 0.0  ;;  %v3571_v6 = vmax.f32 %v3409_v28, 0.0  ;;  %v3580_v55 = vmax.f32 %v3526_v13, 0.0  ;;  %v3570_v51 = vmax.f32 %v3407_v52, 0.0  ;;  %v11024_v2 = vpop.permute.xlu0 %3659 }
 0x3a5   : > { %4055 = vmatprep.subr.mxu1 %v3605_v49  ;;  %3943 = vmatpush1.msra.mxu0 %v3602_v46  ;;  %v3573_v7 = vmax.f32 %v3522_v37, 0.0  ;;  %v3572_v5 = vmax.f32 %v3520_v25, 0.0  ;;  %v6245_v12 = vmov 4   ;;  %v11026_v54 = vpop.permute.xlu1 %3651 }
 0x3a6   : > { %4056 = vmatpush1.msra.mxu1 %v3604_v40  ;;  %3944 = vmatprep.subr.mxu0 %v3595_v27 }
 0x3a7   : > { %4057 = vmatprep.subr.mxu1 %v3597_v34  ;;  %3945 = vmatpush1.msra.mxu0 %v3594_v53 }
 0x3a8   : > { %4058 = vmatpush1.msra.mxu1 %v3596_v63  ;;  %3946 = vmatprep.subr.mxu0 %v3587_v26  ;;  %v11028_v40 = vpop.permute.xlu0 %3647 }
 0x3a9   : > { %4059 = vmatprep.subr.mxu1 %v3589_v4  ;;  %3947 = vmatpush1.msra.mxu0 %v3586_v47  ;;  %v11040_v25 = vpop.permute.xlu1 %3643 }
 0x3aa   : > { %4060 = vmatpush1.msra.mxu1 %v3588_v16  ;;  %3948 = vmatprep.subr.mxu0 %v3579_v42 }
 0x3ab   : > { %4061 = vmatprep.subr.mxu1 %v3581_v35  ;;  %3949 = vmatpush1.msra.mxu0 %v3578_v60 }
 0x3ac   : > { %4062 = vmatpush1.msra.mxu1 %v3580_v55  ;;  %3950 = vmatprep.subr.mxu0 %v3571_v6  ;;  %v11046_v6 = vpop.permute.xlu0 %3639 }
 0x3ad   : > { %4063 = vmatprep.subr.mxu1 %v3573_v7  ;;  %3951 = vmatpush1.msra.mxu0 %v3570_v51 }
 0x3ae   : > { %4064 = vmatpush1.msra.mxu1 %v3572_v5  ;;  %5868 = vmatmul.mubr.msk.f32.vlgmr.msra.gmra.mxu0 %vm3089_vm12, %v10801_v18 }
 0x3af   : > { %5876 = vmatmul.mubr.msk.f32.vlgmr.msra.gmra.mxu1 %vm3089_vm12, %v10801_v18  ;;  %3990 = vmatprep.mubr.f32.mxu0 %v12004_v15 }
 0x3b0   : > { %4103 = vmatprep.mubr.f32.mxu1 %v12004_v15  ;;  %6023 = vset.pattern.permute.xlu1 %v6245_v12 }
 0x3b1   : > { %6024 = vset.pattern.permute.xlu0 %v6245_v12  ;;  %4183 = vperm.xlu1 %6023, %v10676_v20  }
 0x3b2   : > { %5869 = vmatmul.mubr.msk.f32.gmra.mxu0 %vm3089_vm12, %v10811_v44  ;;  %4179 = vperm.xlu0 %6024, %v10682_v17   ;;  %v12651_v17 = vld [vmem:[#allocation103_spill] sm:$0xff] }
 0x3b3   : > { %5877 = vmatmul.mubr.msk.f32.gmra.mxu1 %vm3089_vm12, %v10811_v44  ;;  %3996 = vmatprep.mubr.f32.mxu0 %v12004_v15 }
 0x3b4   : > { %4109 = vmatprep.mubr.f32.mxu1 %v12004_v15 }
 0x3b6   : > { %5870 = vmatmul.mubr.msk.f32.gmra.mxu0 %vm3089_vm12, %v10827_v10  ;;  %4167 = vperm.xlu0 %6024, %v12650_v1  }
 0x3b7   : > { %5878 = vmatmul.mubr.msk.f32.gmra.mxu1 %vm3089_vm12, %v10827_v10  ;;  %4002 = vmatprep.mubr.f32.mxu0 %v12004_v15 }
 0x3b8   : > { %4115 = vmatprep.mubr.f32.mxu1 %v12004_v15 }
 0x3ba   : > { %5871 = vmatmul.mubr.msk.f32.gmra.mxu0 %vm3089_vm12, %v10843_v11  ;;  %4159 = vperm.xlu0 %6024, %v12652_v62   ;;  %v11058_v62 = vpop.permute.xlu1 %3635 }
 0x3bb   : > { %5879 = vmatmul.mubr.msk.f32.gmra.mxu1 %vm3089_vm12, %v10843_v11  ;;  %4008 = vmatprep.mubr.f32.mxu0 %v12004_v15 }
 0x3bc   : > { %4121 = vmatprep.mubr.f32.mxu1 %v12004_v15 }
 0x3be   : > { %5872 = vmatmul.mubr.msk.f32.gmra.mxu0 %vm3089_vm12, %v10859_v22 }
 0x3bf   : > { %5880 = vmatmul.mubr.msk.f32.gmra.mxu1 %vm3089_vm12, %v10859_v22  ;;  %4014 = vmatprep.mubr.f32.mxu0 %v12004_v15 }
 0x3c0   : > { %4127 = vmatprep.mubr.f32.mxu1 %v12004_v15 }
 0x3c2   : > { %5873 = vmatmul.mubr.msk.f32.gmra.mxu0 %vm3089_vm12, %v10869_v56 }
 0x3c3   : > { %5881 = vmatmul.mubr.msk.f32.gmra.mxu1 %vm3089_vm12, %v10869_v56  ;;  %4020 = vmatprep.mubr.f32.mxu0 %v12004_v15 }
 0x3c4   : > { %4133 = vmatprep.mubr.f32.mxu1 %v12004_v15 }
 0x3c6   : > { %5874 = vmatmul.mubr.msk.f32.gmra.mxu0 %vm3089_vm12, %v10877_v23 }
 0x3c7   : > { %5882 = vmatmul.mubr.msk.f32.gmra.mxu1 %vm3089_vm12, %v10877_v23  ;;  %4026 = vmatprep.mubr.f32.mxu0 %v12004_v15 }
 0x3c8   : > { %4139 = vmatprep.mubr.f32.mxu1 %v12004_v15 }
 0x3ca   : > { %5875 = vmatmul.mubr.msk.f32.gmra.mxu0 %vm3089_vm12, %v10885_v0 }
 0x3cb   : > { %5883 = vmatmul.mubr.msk.f32.gmra.mxu1 %vm3089_vm12, %v10885_v0  ;;  %4274 = vmatprep.mubr.f32.mxu0 %v12004_v15  ;;  %v12649_v0 = vld [vmem:[#allocation104_spill] sm:$0xff] }
 0x3cc   : > { %4387 = vmatprep.mubr.f32.mxu1 %v12004_v15  ;;  %4175 = vperm.xlu1 %6023, %v12649_v0  }
 0x3d0   : > { %4171 = vperm.xlu1 %6023, %v12651_v17  }
 0x3d4   : > { %4163 = vperm.xlu1 %6023, %v12653_v41  }
 0x3d8   : > { %4155 = vperm.xlu1 %6023, %v12654_v19  }
 0x43a   : > { %v10990_v36 = vpop.f32.mrf.mxu0  ;;  %v10992_v18 = vpop.f32.mrf.mxu1 }
 0x43c   : > { %v10994_v44 = vpop.f32.mrf.mxu0  ;;  %v10996_v10 = vpop.f32.mrf.mxu1 }
 0x43e   : > { %v11000_v11 = vpop.f32.mrf.mxu0  ;;  %v11002_v22 = vpop.f32.mrf.mxu1 }
 0x440   : > { %v11004_v56 = vpop.f32.mrf.mxu0  ;;  %v11006_v23 = vpop.f32.mrf.mxu1 }
 0x442   : > { %v11010_v57 = vpop.f32.mrf.mxu0  ;;  %v11012_v50 = vpop.f32.mrf.mxu1 }
 0x444   : > { %v11014_v29 = vpop.f32.mrf.mxu0  ;;  %v11016_v20 = vpop.f32.mrf.mxu1 }
 0x445   : > { %v3775_v1 = vadd.f32 %v11014_v29, %v11046_v6  ;;  %v3888_v17 = vadd.f32 %v11016_v20, %v11046_v6  ;;  %v3769_v29 = vadd.f32 %v11004_v56, %v11058_v62  ;;  %v3882_v20 = vadd.f32 %v11006_v23, %v11058_v62 }
 0x446   : > { %v3778_v30 = vpop.f32.mrf.mxu0  ;;  %v3891_v48 = vpop.f32.mrf.mxu1 }
 0x447   : > { %v3779_v12 = vadd.f32 %v3778_v30, %v11040_v25  ;;  %v3892_v0 = vadd.f32 %v3891_v48, %v11040_v25  ;;  %v3886_v30 = vadd.f32 %v11012_v50, %v11046_v6  ;;  %v11064_v48 = vpop.permute.xlu0 %3631  ;;  %v3880_v50 = vadd.f32 %v11002_v22, %v11058_v62 }
 0x448   : > { %v3780_v32 = vpop.f32.mrf.mxu0  ;;  %v3893_v31 = vpop.f32.mrf.mxu1  ;;  %v3876_v41 = vadd.f32 %v10996_v10, %v11064_v48  ;;  %v3761_v56 = vadd.f32 %v10990_v36, %v11064_v48  ;;  %v3874_v23 = vadd.f32 %v10992_v18, %v11064_v48  ;;  %v11090_v36 = vld [vmem:[#allocation8 + $0x18] sm:$0xff] }
 0x449   : > { %v3781_v7 = vadd.f32 %v3780_v32, %v11040_v25  ;;  %v3894_v5 = vadd.f32 %v3893_v31, %v11040_v25  ;;  %v3773_v32 = vadd.f32 %v11010_v57, %v11046_v6  ;;  %v3767_v57 = vadd.f32 %v11000_v11, %v11058_v62  ;;  %v11082_v11 = vld [vmem:[#allocation8 + $0x8] sm:$0xff] }
 0x44a   : > { %v3784_v3 = vpop.f32.mrf.mxu0  ;;  %v3897_v14 = vpop.f32.mrf.mxu1  ;;  %v3763_v31 = vadd.f32 %v10994_v44, %v11064_v48 }
 0x44b   : > { %v3785_v55 = vadd.f32 %v3784_v3, %v11028_v40  ;;  %v3898_v51 = vadd.f32 %v3897_v14, %v11028_v40  ;;  %v11106_v3 = vld [vmem:[#allocation8 + $0x28] sm:$0xff] }
 0x44c   : > { %v3786_v33 = vpop.f32.mrf.mxu0  ;;  %v3899_v61 = vpop.f32.mrf.mxu1 }
 0x44d   : > { %v3787_v60 = vadd.f32 %v3786_v33, %v11028_v40  ;;  %v3900_v35 = vadd.f32 %v3899_v61, %v11028_v40 }
 0x44e   : > { %v3790_v43 = vpop.f32.mrf.mxu0  ;;  %v3903_v38 = vpop.f32.mrf.mxu1 }
 0x44f   : > { %v3791_v42 = vadd.f32 %v3790_v43, %v11026_v54  ;;  %v3904_v16 = vadd.f32 %v3903_v38, %v11026_v54  ;;  %v11122_v43 = vld [vmem:[#allocation8 + $0x38] sm:$0xff] }
 0x450   : > { %v3792_v58 = vpop.f32.mrf.mxu0  ;;  %v3905_v8 = vpop.f32.mrf.mxu1 }
 0x451   : > { %v3793_v47 = vadd.f32 %v3792_v58, %v11026_v54  ;;  %v3906_v4 = vadd.f32 %v3905_v8, %v11026_v54 }
 0x452   : > { %v3796_v59 = vpop.f32.mrf.mxu0  ;;  %v3909_v39 = vpop.f32.mrf.mxu1 }
 0x453   : > { %v3797_v52 = vadd.f32 %v3796_v59, %v11022_v45  ;;  %v3910_v37 = vadd.f32 %v3909_v39, %v11022_v45  ;;  %v11138_v39 = vld [vmem:[#allocation8 + $0x48] sm:$0xff] }
 0x454   : > { %v3798_v46 = vpop.f32.mrf.mxu0  ;;  %v3911_v49 = vpop.f32.mrf.mxu1 }
 0x455   : > { %v3799_v28 = vadd.f32 %v3798_v46, %v11022_v45  ;;  %v3912_v13 = vadd.f32 %v3911_v49, %v11022_v45 }
 0x456   : > { %v3802_v24 = vpop.f32.mrf.mxu0  ;;  %v3915_v27 = vpop.f32.mrf.mxu1 }
 0x457   : > { %v3803_v21 = vadd.f32 %v3802_v24, %v11024_v2  ;;  %v3916_v9 = vadd.f32 %v3915_v27, %v11024_v2 }
 0x458   : > { %v3804_v53 = vpop.f32.mrf.mxu0  ;;  %v3917_v34 = vpop.f32.mrf.mxu1 }
 0x459   : > { %v3805_v26 = vadd.f32 %v3804_v53, %v11024_v2  ;;  %v3918_v63 = vadd.f32 %v3917_v34, %v11024_v2 }
 0x45b   : > { %4226 = vmatprep.subr.mxu0 %v3805_v26  ;;  %4339 = vmatprep.subr.mxu1 %v3918_v63 }
 0x45c   : > { %4227 = vmatpush1.msra.mxu0 %v3803_v21  ;;  %4340 = vmatpush1.msra.mxu1 %v3916_v9  ;;  %v11154_v21 = vld [vmem:[#allocation8 + $0x58] sm:$0xff] }
 0x45d   : > { %4228 = vmatprep.subr.mxu0 %v3799_v28  ;;  %4341 = vmatprep.subr.mxu1 %v3912_v13  ;;  %v11162_v13 = vld [vmem:[#allocation8 + $0x68] sm:$0xff] }
 0x45e   : > { %4229 = vmatpush1.msra.mxu0 %v3797_v52  ;;  %4342 = vmatpush1.msra.mxu1 %v3910_v37 }
 0x45f   : > { %4230 = vmatprep.subr.mxu0 %v3793_v47  ;;  %4343 = vmatprep.subr.mxu1 %v3906_v4  ;;  %v11170_v47 = vld [vmem:[#allocation8 + $0x78] sm:$0xff] }
 0x460   : > { %4231 = vmatpush1.msra.mxu0 %v3791_v42  ;;  %4344 = vmatpush1.msra.mxu1 %v3904_v16 }
 0x461   : > { %4232 = vmatprep.subr.mxu0 %v3787_v60  ;;  %4345 = vmatprep.subr.mxu1 %v3900_v35 }
 0x462   : > { %4233 = vmatpush1.msra.mxu0 %v3785_v55  ;;  %4346 = vmatpush1.msra.mxu1 %v3898_v51 }
 0x463   : > { %4234 = vmatprep.subr.mxu0 %v3781_v7  ;;  %4347 = vmatprep.subr.mxu1 %v3894_v5 }
 0x464   : > { %4235 = vmatpush1.msra.mxu0 %v3779_v12  ;;  %4348 = vmatpush1.msra.mxu1 %v3892_v0 }
 0x465   : > { %4236 = vmatprep.subr.mxu0 %v3775_v1  ;;  %4349 = vmatprep.subr.mxu1 %v3888_v17 }
 0x466   : > { %4237 = vmatpush1.msra.mxu0 %v3773_v32  ;;  %4350 = vmatpush1.msra.mxu1 %v3886_v30 }
 0x467   : > { %4238 = vmatprep.subr.mxu0 %v3769_v29  ;;  %4351 = vmatprep.subr.mxu1 %v3882_v20 }
 0x468   : > { %4239 = vmatpush1.msra.mxu0 %v3767_v57  ;;  %4352 = vmatpush1.msra.mxu1 %v3880_v50 }
 0x469   : > { %4240 = vmatprep.subr.mxu0 %v3763_v31  ;;  %4353 = vmatprep.subr.mxu1 %v3876_v41 }
 0x46a   : > { %4241 = vmatpush1.msra.mxu0 %v3761_v56  ;;  %4354 = vmatpush1.msra.mxu1 %v3874_v23 }
 0x46b   : > { %5884 = vmatmul.mubr.msk.f32.vlgmr.msra.gmra.mxu0 %vm3089_vm12, %v11082_v11  ;;  %5892 = vmatmul.mubr.msk.f32.vlgmr.msra.gmra.mxu1 %vm3089_vm12, %v11082_v11 }
 0x46c   : > { %4280 = vmatprep.mubr.f32.mxu0 %v12004_v15  ;;  %4393 = vmatprep.mubr.f32.mxu1 %v12004_v15 }
 0x46e   : > { %v11092_v44 = vpop.f32.mrf.mxu0 }
 0x46f   : > { %v11094_v18 = vpop.f32.mrf.mxu1  ;;  %5885 = vmatmul.mubr.msk.f32.gmra.mxu0 %vm3089_vm12, %v11090_v36  ;;  %5893 = vmatmul.mubr.msk.f32.gmra.mxu1 %vm3089_vm12, %v11090_v36 }
 0x470   : > { %v11096_v10 = vpop.f32.mrf.mxu0  ;;  %4286 = vmatprep.mubr.f32.mxu0 %v12004_v15  ;;  %4399 = vmatprep.mubr.f32.mxu1 %v12004_v15 }
 0x471   : > { %v11102_v22 = vpop.f32.mrf.mxu1 }
 0x472   : > { %v11108_v14 = vpop.f32.mrf.mxu0 }
 0x473   : > { %v11110_v33 = vpop.f32.mrf.mxu1  ;;  %5886 = vmatmul.mubr.msk.f32.gmra.mxu0 %vm3089_vm12, %v11106_v3  ;;  %5894 = vmatmul.mubr.msk.f32.gmra.mxu1 %vm3089_vm12, %v11106_v3 }
 0x474   : > { %v11112_v61 = vpop.f32.mrf.mxu0  ;;  %4292 = vmatprep.mubr.f32.mxu0 %v12004_v15  ;;  %4405 = vmatprep.mubr.f32.mxu1 %v12004_v15 }
 0x475   : > { %v11118_v19 = vpop.f32.mrf.mxu1 }
 0x476   : > { %v11124_v38 = vpop.f32.mrf.mxu0 }
 0x477   : > { %v11126_v58 = vpop.f32.mrf.mxu1  ;;  %5887 = vmatmul.mubr.msk.f32.gmra.mxu0 %vm3089_vm12, %v11122_v43  ;;  %5895 = vmatmul.mubr.msk.f32.gmra.mxu1 %vm3089_vm12, %v11122_v43 }
 0x478   : > { %v11128_v8 = vpop.f32.mrf.mxu0  ;;  %4298 = vmatprep.mubr.f32.mxu0 %v12004_v15  ;;  %4411 = vmatprep.mubr.f32.mxu1 %v12004_v15 }
 0x479   : > { %v11134_v59 = vpop.f32.mrf.mxu1 }
 0x47a   : > { %v11140_v46 = vpop.f32.mrf.mxu0 }
 0x47b   : > { %v11142_v49 = vpop.f32.mrf.mxu1  ;;  %5888 = vmatmul.mubr.msk.f32.gmra.mxu0 %vm3089_vm12, %v11138_v39  ;;  %5896 = vmatmul.mubr.msk.f32.gmra.mxu1 %vm3089_vm12, %v11138_v39 }
 0x47c   : > { %v11144_v24 = vpop.f32.mrf.mxu0  ;;  %4304 = vmatprep.mubr.f32.mxu0 %v12004_v15  ;;  %4417 = vmatprep.mubr.f32.mxu1 %v12004_v15 }
 0x47d   : > { %v11150_v27 = vpop.f32.mrf.mxu1 }
 0x47e   : > { %v4010_v9 = vpop.f32.mrf.mxu0 }
 0x47f   : > { %v4123_v53 = vpop.f32.mrf.mxu1  ;;  %5889 = vmatmul.mubr.msk.f32.gmra.mxu0 %vm3089_vm12, %v11154_v21  ;;  %5897 = vmatmul.mubr.msk.f32.gmra.mxu1 %vm3089_vm12, %v11154_v21  ;;  %v4011_v41 = vadd.f32 %v4010_v9, %v11028_v40  ;;  %v4001_v9 = vadd.f32 %v11128_v8, %v11046_v6  ;;  %v4108_v8 = vadd.f32 %v11118_v19, %v11058_v62 }
 0x480   : > { %v4012_v34 = vpop.f32.mrf.mxu0  ;;  %4310 = vmatprep.mubr.f32.mxu0 %v12004_v15  ;;  %4423 = vmatprep.mubr.f32.mxu1 %v12004_v15  ;;  %v4124_v23 = vadd.f32 %v4123_v53, %v11028_v40 }
 0x481   : > { %v4125_v28 = vpop.f32.mrf.mxu1 }
 0x482   : > { %v4016_v26 = vpop.f32.mrf.mxu0  ;;  %v4126_v56 = vadd.f32 %v4125_v28, %v11028_v40  ;;  %v4118_v28 = vadd.f32 %v11142_v49, %v11040_v25 }
 0x483   : > { %v4129_v63 = vpop.f32.mrf.mxu1  ;;  %5890 = vmatmul.mubr.msk.f32.gmra.mxu0 %vm3089_vm12, %v11162_v13  ;;  %5898 = vmatmul.mubr.msk.f32.gmra.mxu1 %vm3089_vm12, %v11162_v13  ;;  %v4017_v57 = vadd.f32 %v4016_v26, %v11026_v54  ;;  %v11301_v26 = vpop.permute.xlu1 %4183 }
 0x484   : > { %v4018_v52 = vpop.f32.mrf.mxu0  ;;  %4316 = vmatprep.mubr.f32.mxu0 %v12004_v15  ;;  %4429 = vmatprep.mubr.f32.mxu1 %v12004_v15  ;;  %v4130_v31 = vadd.f32 %v4129_v63, %v11026_v54 }
 0x485   : > { %v4131_v37 = vpop.f32.mrf.mxu1  ;;  %v4019_v29 = vadd.f32 %v4018_v52, %v11026_v54 }
 0x486   : > { %v4022_v4 = vpop.f32.mrf.mxu0  ;;  %v4132_v50 = vadd.f32 %v4131_v37, %v11026_v54  ;;  %v4120_v54 = vadd.f32 %v11150_v27, %v11040_v25  ;;  %v4112_v27 = vadd.f32 %v11126_v58, %v11046_v6 }
 0x487   : > { %v4135_v42 = vpop.f32.mrf.mxu1  ;;  %5891 = vmatmul.mubr.msk.f32.gmra.mxu0 %vm3089_vm12, %v11170_v47  ;;  %5899 = vmatmul.mubr.msk.f32.gmra.mxu1 %vm3089_vm12, %v11170_v47  ;;  %v4023_v32 = vadd.f32 %v4022_v4, %v11022_v45 }
 0x488   : > { %v4024_v16 = vpop.f32.mrf.mxu0  ;;  %4500 = vmatprep.mubr.f32.mxu0 %v12004_v15  ;;  %4613 = vmatprep.mubr.f32.mxu1 %v12004_v15  ;;  %v4136_v20 = vadd.f32 %v4135_v42, %v11022_v45 }
 0x489   : > { %v4137_v60 = vpop.f32.mrf.mxu1  ;;  %v4025_v1 = vadd.f32 %v4024_v16, %v11022_v45  ;;  %v11303_v16 = vpop.permute.xlu1 %4175 }
 0x48a   : > { %v4028_v35 = vpop.f32.mrf.mxu0  ;;  %v4138_v30 = vadd.f32 %v4137_v60, %v11022_v45  ;;  %v4007_v45 = vadd.f32 %v11144_v24, %v11040_v25  ;;  %v4114_v24 = vadd.f32 %v11134_v59, %v11046_v6  ;;  %v4106_v59 = vadd.f32 %v11110_v33, %v11058_v62 }
 0x48b   : > { %v4141_v55 = vpop.f32.mrf.mxu1  ;;  %v4029_v12 = vadd.f32 %v4028_v35, %v11024_v2 }
 0x48c   : > { %v4030_v51 = vpop.f32.mrf.mxu0  ;;  %v4142_v17 = vadd.f32 %v4141_v55, %v11024_v2 }
 0x48d   : > { %v4031_v7 = vadd.f32 %v4030_v51, %v11024_v2  ;;  %v4143_v5 = vpop.f32.mrf.mxu1 }
 0x48e   : > { %v4144_v0 = vadd.f32 %v4143_v5, %v11024_v2  ;;  %v4013_v2 = vadd.f32 %v4012_v34, %v11028_v40  ;;  %v4005_v34 = vadd.f32 %v11140_v46, %v11040_v25  ;;  %v3999_v40 = vadd.f32 %v11124_v38, %v11046_v6 }
 0x48f   : > { %4452 = vmatprep.subr.mxu0 %v4031_v7  ;;  %v3995_v46 = vadd.f32 %v11112_v61, %v11058_v62  ;;  %v3993_v25 = vadd.f32 %v11108_v14, %v11058_v62  ;;  %v3989_v38 = vadd.f32 %v11096_v10, %v11064_v48  ;;  %v3987_v6 = vadd.f32 %v11092_v44, %v11064_v48  ;;  %v4727_v62 = vld [vmem:[%s11488_s5] sm:$0xff]  ;;  %v11305_v7 = vpop.permute.xlu0 %4179 }
 0x490   : > { %4565 = vmatprep.subr.mxu1 %v4144_v0  ;;  %4453 = vmatpush1.msra.mxu0 %v4029_v12  ;;  %v4102_v61 = vadd.f32 %v11102_v22, %v11064_v48  ;;  %v4100_v14 = vadd.f32 %v11094_v18, %v11064_v48  ;;  %v6246_v48 = vmov 5   ;;  %v11307_v0 = vpop.permute.xlu1 %4171 }
 0x491   : > { %4566 = vmatpush1.msra.mxu1 %v4142_v17  ;;  %4454 = vmatprep.subr.mxu0 %v4025_v1 }
 0x492   : > { %4567 = vmatprep.subr.mxu1 %v4138_v30  ;;  %4455 = vmatpush1.msra.mxu0 %v4023_v32 }
 0x493   : > { %4568 = vmatpush1.msra.mxu1 %v4136_v20  ;;  %4456 = vmatprep.subr.mxu0 %v4019_v29 }
 0x494   : > { %4569 = vmatprep.subr.mxu1 %v4132_v50  ;;  %4457 = vmatpush1.msra.mxu0 %v4017_v57 }
 0x495   : > { %4570 = vmatpush1.msra.mxu1 %v4130_v31  ;;  %4458 = vmatprep.subr.mxu0 %v4013_v2 }
 0x496   : > { %4571 = vmatprep.subr.mxu1 %v4126_v56  ;;  %4459 = vmatpush1.msra.mxu0 %v4011_v41 }
 0x497   : > { %4572 = vmatpush1.msra.mxu1 %v4124_v23  ;;  %4460 = vmatprep.subr.mxu0 %v4007_v45 }
 0x498   : > { %4573 = vmatprep.subr.mxu1 %v4120_v54  ;;  %4461 = vmatpush1.msra.mxu0 %v4005_v34 }
 0x499   : > { %4574 = vmatpush1.msra.mxu1 %v4118_v28  ;;  %4462 = vmatprep.subr.mxu0 %v4001_v9 }
 0x49a   : > { %4575 = vmatprep.subr.mxu1 %v4114_v24  ;;  %4463 = vmatpush1.msra.mxu0 %v3999_v40  ;;  %v11321_v40 = vpop.permute.xlu0 %4167 }
 0x49b   : > { %4576 = vmatpush1.msra.mxu1 %v4112_v27  ;;  %4464 = vmatprep.subr.mxu0 %v3995_v46 }
 0x49c   : > { %4577 = vmatprep.subr.mxu1 %v4108_v8  ;;  %4465 = vmatpush1.msra.mxu0 %v3993_v25 }
 0x49d   : > { %4578 = vmatpush1.msra.mxu1 %v4106_v59  ;;  %4466 = vmatprep.subr.mxu0 %v3989_v38 }
 0x49e   : > { %4579 = vmatprep.subr.mxu1 %v4102_v61  ;;  %4467 = vmatpush1.msra.mxu0 %v3987_v6  ;;  %v11325_v61 = vpop.permute.xlu1 %4163 }
 0x49f   : > { %4580 = vmatpush1.msra.mxu1 %v4100_v14  ;;  %5900 = vmatmul.mubr.msk.f32.vlgmr.msra.gmra.mxu0 %vm3089_vm12, %v11082_v11 }
 0x4a0   : > { %5908 = vmatmul.mubr.msk.f32.vlgmr.msra.gmra.mxu1 %vm3089_vm12, %v11082_v11  ;;  %4506 = vmatprep.mubr.f32.mxu0 %v12004_v15 }
 0x4a1   : > { %4619 = vmatprep.mubr.f32.mxu1 %v12004_v15  ;;  %6025 = vset.pattern.permute.xlu0 %v6246_v48 }
 0x4a2   : > { %4730 = vperm.xlu0 %6025, %v4727_v62  }
 0x4a3   : > { %5901 = vmatmul.mubr.msk.f32.gmra.mxu0 %vm3089_vm12, %v11090_v36 }
 0x4a4   : > { %5909 = vmatmul.mubr.msk.f32.gmra.mxu1 %vm3089_vm12, %v11090_v36  ;;  %4512 = vmatprep.mubr.f32.mxu0 %v12004_v15 }
 0x4a5   : > { %4625 = vmatprep.mubr.f32.mxu1 %v12004_v15 }
 0x4a7   : > { %5902 = vmatmul.mubr.msk.f32.gmra.mxu0 %vm3089_vm12, %v11106_v3 }
 0x4a8   : > { %5910 = vmatmul.mubr.msk.f32.gmra.mxu1 %vm3089_vm12, %v11106_v3  ;;  %4518 = vmatprep.mubr.f32.mxu0 %v12004_v15 }
 0x4a9   : > { %4631 = vmatprep.mubr.f32.mxu1 %v12004_v15 }
 0x4ab   : > { %5903 = vmatmul.mubr.msk.f32.gmra.mxu0 %vm3089_vm12, %v11122_v43 }
 0x4ac   : > { %5911 = vmatmul.mubr.msk.f32.gmra.mxu1 %vm3089_vm12, %v11122_v43  ;;  %4524 = vmatprep.mubr.f32.mxu0 %v12004_v15 }
 0x4ad   : > { %4637 = vmatprep.mubr.f32.mxu1 %v12004_v15 }
 0x4af   : > { %5904 = vmatmul.mubr.msk.f32.gmra.mxu0 %vm3089_vm12, %v11138_v39 }
 0x4b0   : > { %5912 = vmatmul.mubr.msk.f32.gmra.mxu1 %vm3089_vm12, %v11138_v39  ;;  %4530 = vmatprep.mubr.f32.mxu0 %v12004_v15 }
 0x4b1   : > { %4643 = vmatprep.mubr.f32.mxu1 %v12004_v15 }
 0x4b3   : > { %5905 = vmatmul.mubr.msk.f32.gmra.mxu0 %vm3089_vm12, %v11154_v21 }
 0x4b4   : > { %5913 = vmatmul.mubr.msk.f32.gmra.mxu1 %vm3089_vm12, %v11154_v21  ;;  %4536 = vmatprep.mubr.f32.mxu0 %v12004_v15 }
 0x4b5   : > { %4649 = vmatprep.mubr.f32.mxu1 %v12004_v15 }
 0x4b7   : > { %5906 = vmatmul.mubr.msk.f32.gmra.mxu0 %vm3089_vm12, %v11162_v13 }
 0x4b8   : > { %5914 = vmatmul.mubr.msk.f32.gmra.mxu1 %vm3089_vm12, %v11162_v13  ;;  %4542 = vmatprep.mubr.f32.mxu0 %v12004_v15 }
 0x4b9   : > { %4655 = vmatprep.mubr.f32.mxu1 %v12004_v15 }
 0x4bb   : > { %5907 = vmatmul.mubr.msk.f32.gmra.mxu0 %vm3089_vm12, %v11170_v47 }
 0x4bc   : > { %5915 = vmatmul.mubr.msk.f32.gmra.mxu1 %vm3089_vm12, %v11170_v47  ;;  %4800 = vmatprep.mubr.f32.mxu0 %v12004_v15 }
 0x4bd   : > { %4871 = vmatprep.mubr.f32.mxu1 %v12004_v15 }
 0x52b   : > { %v11277_v11 = vpop.f32.mrf.mxu0  ;;  %v11279_v36 = vpop.f32.mrf.mxu1 }
 0x52d   : > { %v11281_v44 = vpop.f32.mrf.mxu0  ;;  %v11283_v18 = vpop.f32.mrf.mxu1 }
 0x52f   : > { %v11285_v10 = vpop.f32.mrf.mxu0  ;;  %v11287_v22 = vpop.f32.mrf.mxu1 }
 0x531   : > { %v11289_v3 = vpop.f32.mrf.mxu0  ;;  %v11291_v33 = vpop.f32.mrf.mxu1 }
 0x533   : > { %v11293_v19 = vpop.f32.mrf.mxu0  ;;  %v11295_v43 = vpop.f32.mrf.mxu1 }
 0x535   : > { %v11297_v58 = vpop.f32.mrf.mxu0  ;;  %v11299_v39 = vpop.f32.mrf.mxu1 }
 0x537   : > { %v4294_v49 = vpop.f32.mrf.mxu0  ;;  %v4407_v21 = vpop.f32.mrf.mxu1 }
 0x539   : > { %v4296_v53 = vpop.f32.mrf.mxu0  ;;  %v4409_v13 = vpop.f32.mrf.mxu1 }
 0x53b   : > { %v4300_v63 = vpop.f32.mrf.mxu0  ;;  %v4413_v52 = vpop.f32.mrf.mxu1 }
 0x53c   : > { %v4301_v14 = vadd.f32 %v4300_v63, %v11307_v0  ;;  %v4414_v62 = vadd.f32 %v4413_v52, %v11307_v0 }
 0x53d   : > { %v4302_v37 = vpop.f32.mrf.mxu0  ;;  %v4415_v47 = vpop.f32.mrf.mxu1 }
 0x53e   : > { %v4303_v41 = vadd.f32 %v4302_v37, %v11307_v0  ;;  %v4416_v56 = vadd.f32 %v4415_v47, %v11307_v0  ;;  %v4297_v47 = vadd.f32 %v4296_v53, %v11321_v40  ;;  %v4404_v53 = vadd.f32 %v11299_v39, %v11325_v61 }
 0x53f   : > { %v4306_v4 = vpop.f32.mrf.mxu0  ;;  %v4419_v42 = vpop.f32.mrf.mxu1 }
 0x540   : > { %v4307_v24 = vadd.f32 %v4306_v4, %v11303_v16  ;;  %v4420_v46 = vadd.f32 %v4419_v42, %v11303_v16  ;;  %v4410_v4 = vadd.f32 %v4409_v13, %v11321_v40  ;;  %v4695_v63 = vmax.f32 %v4303_v41, 0.0  ;;  %v11337_v13 = vpop.permute.xlu0 %4159 }
 0x541   : > { %v4308_v60 = vpop.f32.mrf.mxu0  ;;  %v4421_v35 = vpop.f32.mrf.mxu1  ;;  %v4697_v52 = vmax.f32 %v4416_v56, 0.0 }
 0x542   : > { %v4309_v34 = vadd.f32 %v4308_v60, %v11303_v16  ;;  %v4422_v54 = vadd.f32 %v4421_v35, %v11303_v16  ;;  %v4702_v42 = vmax.f32 %v4307_v24, 0.0  ;;  %v4704_v60 = vmax.f32 %v4420_v46, 0.0 }
 0x543   : > { %v4312_v55 = vpop.f32.mrf.mxu0  ;;  %v4425_v51 = vpop.f32.mrf.mxu1  ;;  %v4295_v35 = vadd.f32 %v4294_v49, %v11321_v40  ;;  %v4289_v49 = vadd.f32 %v11293_v19, %v11325_v61  ;;  %v4285_v19 = vadd.f32 %v11289_v3, %v11337_v13 }
 0x544   : > { %v4313_v2 = vadd.f32 %v4312_v55, %v11305_v7  ;;  %v4426_v31 = vadd.f32 %v4425_v51, %v11305_v7  ;;  %v4703_v48 = vmax.f32 %v4309_v34, 0.0  ;;  %v4705_v37 = vmax.f32 %v4422_v54, 0.0 }
 0x545   : > { %v4314_v5 = vpop.f32.mrf.mxu0  ;;  %v4427_v12 = vpop.f32.mrf.mxu1  ;;  %v4408_v55 = vadd.f32 %v4407_v21, %v11321_v40  ;;  %v4291_v51 = vadd.f32 %v11297_v58, %v11325_v61  ;;  %v4402_v21 = vadd.f32 %v11295_v43, %v11325_v61  ;;  %v4686_v39 = vmax.f32 %v4295_v35, 0.0 }
 0x546   : > { %v4315_v29 = vadd.f32 %v4314_v5, %v11305_v7  ;;  %v4428_v20 = vadd.f32 %v4427_v12, %v11305_v7  ;;  %v4710_v59 = vmax.f32 %v4313_v2, 0.0  ;;  %v4712_v6 = vmax.f32 %v4426_v31, 0.0  ;;  %v11343_v58 = vpop.permute.xlu1 %4155 }
 0x547   : > { %v4318_v1 = vpop.f32.mrf.mxu0  ;;  %v4431_v17 = vpop.f32.mrf.mxu1  ;;  %v4694_v5 = vmax.f32 %v4301_v14, 0.0  ;;  %v4696_v12 = vmax.f32 %v4414_v62, 0.0  ;;  %v4398_v43 = vadd.f32 %v11291_v33, %v11337_v13  ;;  %v4396_v2 = vadd.f32 %v11287_v22, %v11337_v13 }
 0x548   : > { %v4319_v32 = vadd.f32 %v4318_v1, %v11301_v26  ;;  %v4432_v30 = vadd.f32 %v4431_v17, %v11301_v26  ;;  %v4711_v8 = vmax.f32 %v4315_v29, 0.0  ;;  %v4713_v38 = vmax.f32 %v4428_v20, 0.0 }
 0x549   : > { %v4320_v57 = vpop.f32.mrf.mxu0  ;;  %v4433_v50 = vpop.f32.mrf.mxu1  ;;  %v4687_v1 = vmax.f32 %v4297_v47, 0.0  ;;  %v4689_v17 = vmax.f32 %v4410_v4, 0.0  ;;  %v4681_v29 = vmax.f32 %v4404_v53, 0.0  ;;  %v4678_v20 = vmax.f32 %v4289_v49, 0.0 }
 0x54a   : > { %v4321_v45 = vadd.f32 %v4320_v57, %v11301_v26  ;;  %v4434_v23 = vadd.f32 %v4433_v50, %v11301_v26  ;;  %v4718_v9 = vmax.f32 %v4319_v32, 0.0  ;;  %v4720_v28 = vmax.f32 %v4432_v30, 0.0 }
 0x54b   : > { %v4688_v32 = vmax.f32 %v4408_v55, 0.0  ;;  %v4679_v30 = vmax.f32 %v4291_v51, 0.0  ;;  %v4680_v57 = vmax.f32 %v4402_v21, 0.0  ;;  %v4283_v50 = vadd.f32 %v11285_v10, %v11337_v13 }
 0x54c   : > { %v4719_v27 = vmax.f32 %v4321_v45, 0.0  ;;  %v4721_v25 = vmax.f32 %v4434_v23, 0.0  ;;  %v4279_v31 = vadd.f32 %v11281_v44, %v11343_v58  ;;  %v4392_v3 = vadd.f32 %v11283_v18, %v11343_v58 }
 0x54d   : > { %v4277_v33 = vadd.f32 %v11277_v11, %v11343_v58  ;;  %v4390_v41 = vadd.f32 %v11279_v36, %v11343_v58  ;;  %v4671_v10 = vmax.f32 %v4285_v19, 0.0  ;;  %v4673_v22 = vmax.f32 %v4398_v43, 0.0  ;;  %v11364_v11 = vld [vmem:[%s11489_s6] sm:$0xff] }
 0x54e   : > { %4752 = vmatprep.subr.mxu0 %v4719_v27  ;;  %4823 = vmatprep.subr.mxu1 %v4721_v25  ;;  %v4670_v56 = vmax.f32 %v4283_v50, 0.0  ;;  %v4672_v45 = vmax.f32 %v4396_v2, 0.0  ;;  %v4663_v44 = vmax.f32 %v4279_v31, 0.0  ;;  %v4665_v18 = vmax.f32 %v4392_v3, 0.0 }
 0x54f   : > { %4753 = vmatpush1.msra.mxu0 %v4718_v9  ;;  %4824 = vmatpush1.msra.mxu1 %v4720_v28  ;;  %v4662_v23 = vmax.f32 %v4277_v33, 0.0  ;;  %v4664_v34 = vmax.f32 %v4390_v41, 0.0 }
 0x550   : > { %4754 = vmatprep.subr.mxu0 %v4711_v8  ;;  %4825 = vmatprep.subr.mxu1 %v4713_v38 }
 0x551   : > { %4755 = vmatpush1.msra.mxu0 %v4710_v59  ;;  %4826 = vmatpush1.msra.mxu1 %v4712_v6 }
 0x552   : > { %4756 = vmatprep.subr.mxu0 %v4703_v48  ;;  %4827 = vmatprep.subr.mxu1 %v4705_v37 }
 0x553   : > { %4757 = vmatpush1.msra.mxu0 %v4702_v42  ;;  %4828 = vmatpush1.msra.mxu1 %v4704_v60 }
 0x554   : > { %4758 = vmatprep.subr.mxu0 %v4695_v63  ;;  %4829 = vmatprep.subr.mxu1 %v4697_v52 }
 0x555   : > { %4759 = vmatpush1.msra.mxu0 %v4694_v5  ;;  %4830 = vmatpush1.msra.mxu1 %v4696_v12 }
 0x556   : > { %4760 = vmatprep.subr.mxu0 %v4687_v1  ;;  %4831 = vmatprep.subr.mxu1 %v4689_v17 }
 0x557   : > { %4761 = vmatpush1.msra.mxu0 %v4686_v39  ;;  %4832 = vmatpush1.msra.mxu1 %v4688_v32 }
 0x558   : > { %4762 = vmatprep.subr.mxu0 %v4679_v30  ;;  %4833 = vmatprep.subr.mxu1 %v4681_v29 }
 0x559   : > { %4763 = vmatpush1.msra.mxu0 %v4678_v20  ;;  %4834 = vmatpush1.msra.mxu1 %v4680_v57 }
 0x55a   : > { %4764 = vmatprep.subr.mxu0 %v4671_v10  ;;  %4835 = vmatprep.subr.mxu1 %v4673_v22 }
 0x55b   : > { %4765 = vmatpush1.msra.mxu0 %v4670_v56  ;;  %4836 = vmatpush1.msra.mxu1 %v4672_v45 }
 0x55c   : > { %4766 = vmatprep.subr.mxu0 %v4663_v44  ;;  %4837 = vmatprep.subr.mxu1 %v4665_v18 }
 0x55d   : > { %4767 = vmatpush1.msra.mxu0 %v4662_v23  ;;  %4838 = vmatpush1.msra.mxu1 %v4664_v34 }
 0x55e   : > { %5916 = vmatmul.mubr.msk.f32.vlgmr.msra.gmra.mxu0 %vm3089_vm12, %v11364_v11  ;;  %5917 = vmatmul.mubr.msk.f32.vlgmr.msra.gmra.mxu1 %vm3089_vm12, %v11364_v11 }
 0x55f   : > { %v11366_v36 = vpop.f32.mrf.mxu0  ;;  %4942 = vmatprep.mubr.f32.mxu0 %v12004_v15  ;;  %5013 = vmatprep.mubr.f32.mxu1 %v12004_v15 }
 0x560   : > { %v11368_v54 = vpop.f32.mrf.mxu1 }
 0x561   : > { %v11374_v9 = vpop.f32.mrf.mxu0 }
 0x562   : > { %v11378_v28 = vpop.f32.mrf.mxu1 }
 0x563   : > { %v11380_v24 = vpop.f32.mrf.mxu0 }
 0x564   : > { %v11382_v46 = vpop.f32.mrf.mxu1 }
 0x565   : > { %v11384_v27 = vpop.f32.mrf.mxu0 }
 0x566   : > { %v11386_v25 = vpop.f32.mrf.mxu1 }
 0x567   : > { %v11388_v8 = vpop.f32.mrf.mxu0 }
 0x568   : > { %v11390_v38 = vpop.f32.mrf.mxu1 }
 0x569   : > { %v4516_v59 = vpop.f32.mrf.mxu0 }
 0x56a   : > { %v11392_v6 = vpop.f32.mrf.mxu1 }
 0x56b   : > { %v4520_v14 = vpop.f32.mrf.mxu0 }
 0x56c   : > { %v4633_v62 = vpop.f32.mrf.mxu1 }
 0x56d   : > { %v4522_v15 = vpop.f32.mrf.mxu0 }
 0x56e   : > { %v4635_v48 = vpop.f32.mrf.mxu1  ;;  %v4523_v18 = vadd.f32 %v4522_v15, %v11321_v40 }
 0x56f   : > { %v4526_v37 = vpop.f32.mrf.mxu0 }
 0x570   : > { %v4639_v47 = vpop.f32.mrf.mxu1 }
 0x571   : > { %v4528_v4 = vpop.f32.mrf.mxu0  ;;  %v4640_v23 = vadd.f32 %v4639_v47, %v11307_v0 }
 0x572   : > { %v4641_v42 = vpop.f32.mrf.mxu1  ;;  %v4529_v41 = vadd.f32 %v4528_v4, %v11307_v0  ;;  %v4636_v4 = vadd.f32 %v4635_v48, %v11321_v40 }
 0x573   : > { %v4532_v60 = vpop.f32.mrf.mxu0  ;;  %v4642_v45 = vadd.f32 %v4641_v42, %v11307_v0  ;;  %v4517_v42 = vadd.f32 %v4516_v59, %v11325_v61  ;;  %v4691_v59 = vmax.f32 %v4523_v18, 0.0 }
 0x574   : > { %v4645_v35 = vpop.f32.mrf.mxu1  ;;  %v4533_v2 = vadd.f32 %v4532_v60, %v11303_v16 }
 0x575   : > { %v4534_v55 = vpop.f32.mrf.mxu0  ;;  %v4646_v10 = vadd.f32 %v4645_v35, %v11303_v16  ;;  %v4701_v48 = vmax.f32 %v4642_v45, 0.0 }
 0x576   : > { %v4647_v63 = vpop.f32.mrf.mxu1  ;;  %v4535_v20 = vadd.f32 %v4534_v55, %v11303_v16  ;;  %v4706_v35 = vmax.f32 %v4533_v2, 0.0  ;;  %v4634_v55 = vadd.f32 %v4633_v62, %v11321_v40  ;;  %v4700_v62 = vmax.f32 %v4640_v23, 0.0 }
 0x577   : > { %v4538_v52 = vpop.f32.mrf.mxu0  ;;  %v4648_v31 = vadd.f32 %v4647_v63, %v11303_v16  ;;  %v4521_v16 = vadd.f32 %v4520_v14, %v11321_v40  ;;  %v4699_v63 = vmax.f32 %v4529_v41, 0.0  ;;  %v4708_v15 = vmax.f32 %v4646_v10, 0.0 }
 0x578   : > { %v4651_v51 = vpop.f32.mrf.mxu1  ;;  %v4539_v29 = vadd.f32 %v4538_v52, %v11305_v7  ;;  %v4707_v34 = vmax.f32 %v4535_v20, 0.0  ;;  %v4630_v14 = vadd.f32 %v11392_v6, %v11325_v61  ;;  %v4511_v52 = vadd.f32 %v11384_v27, %v11337_v13 }
 0x579   : > { %v4540_v53 = vpop.f32.mrf.mxu0  ;;  %v4652_v57 = vadd.f32 %v4651_v51, %v11305_v7  ;;  %v4628_v40 = vadd.f32 %v11390_v38, %v11325_v61  ;;  %v4624_v6 = vadd.f32 %v11386_v25, %v11337_v13  ;;  %v4690_v51 = vmax.f32 %v4521_v16, 0.0 }
 0x57a   : > { %v4653_v5 = vpop.f32.mrf.mxu1  ;;  %v4541_v17 = vadd.f32 %v4540_v53, %v11305_v7  ;;  %v4714_v44 = vmax.f32 %v4539_v29, 0.0  ;;  %v4693_v53 = vmax.f32 %v4636_v4, 0.0  ;;  %v4505_v27 = vadd.f32 %v11374_v9, %v11343_v58 }
 0x57b   : > { %v4544_v12 = vpop.f32.mrf.mxu0  ;;  %v4654_v19 = vadd.f32 %v4653_v5, %v11305_v7  ;;  %v4716_v60 = vmax.f32 %v4652_v57, 0.0  ;;  %v4683_v38 = vmax.f32 %v4517_v42, 0.0  ;;  %v4692_v5 = vmax.f32 %v4634_v55, 0.0 }
 0x57c   : > { %v4657_v49 = vpop.f32.mrf.mxu1  ;;  %v4545_v21 = vadd.f32 %v4544_v12, %v11301_v26  ;;  %v4715_v22 = vmax.f32 %v4541_v17, 0.0  ;;  %v4618_v25 = vadd.f32 %v11378_v28, %v11343_v58  ;;  %v4616_v9 = vadd.f32 %v11368_v54, %v11343_v58 }
 0x57d   : > { %v4546_v1 = vpop.f32.mrf.mxu0  ;;  %v4658_v39 = vadd.f32 %v4657_v49, %v11301_v26  ;;  %v4717_v7 = vmax.f32 %v4654_v19, 0.0  ;;  %v4685_v49 = vmax.f32 %v4630_v14, 0.0  ;;  %v4667_v17 = vmax.f32 %v4505_v27, 0.0 }
 0x57e   : > { %v4547_v32 = vadd.f32 %v4546_v1, %v11301_v26  ;;  %v4659_v30 = vpop.f32.mrf.mxu1  ;;  %v4722_v3 = vmax.f32 %v4545_v21, 0.0  ;;  %v4675_v21 = vmax.f32 %v4511_v52, 0.0  ;;  %v4684_v1 = vmax.f32 %v4628_v40, 0.0 }
 0x57f   : > { %v4660_v43 = vadd.f32 %v4659_v30, %v11301_v26  ;;  %v4724_v56 = vmax.f32 %v4658_v39, 0.0  ;;  %v4527_v26 = vadd.f32 %v4526_v37, %v11307_v0  ;;  %v4709_v37 = vmax.f32 %v4648_v31, 0.0 }
 0x580   : > { %v4723_v50 = vmax.f32 %v4547_v32, 0.0  ;;  %v4515_v0 = vadd.f32 %v11388_v8, %v11325_v61  ;;  %v4509_v8 = vadd.f32 %v11380_v24, %v11337_v13  ;;  %v4622_v61 = vadd.f32 %v11382_v46, %v11337_v13 }
 0x581   : > { %v4725_v33 = vmax.f32 %v4660_v43, 0.0  ;;  %v4698_v47 = vmax.f32 %v4527_v26, 0.0  ;;  %v4503_v24 = vadd.f32 %v11366_v36, %v11343_v58  ;;  %v4677_v46 = vmax.f32 %v4624_v6, 0.0  ;;  %v4731_v58 = vpop.permute.xlu0 %4730 }
 0x582   : > { %4894 = vmatprep.subr.mxu0 %v4723_v50  ;;  %v4682_v12 = vmax.f32 %v4515_v0, 0.0  ;;  %v4674_v13 = vmax.f32 %v4509_v8, 0.0  ;;  %v4676_v36 = vmax.f32 %v4622_v61, 0.0  ;;  %v4669_v39 = vmax.f32 %v4618_v25, 0.0 }
 0x583   : > { %4965 = vmatprep.subr.mxu1 %v4725_v33  ;;  %4895 = vmatpush1.msra.mxu0 %v4722_v3  ;;  %v4666_v28 = vmax.f32 %v4503_v24, 0.0  ;;  %v4668_v32 = vmax.f32 %v4616_v9, 0.0 }
 0x584   : > { %4966 = vmatpush1.msra.mxu1 %v4724_v56  ;;  %4896 = vmatprep.subr.mxu0 %v4715_v22 }
 0x585   : > { %4967 = vmatprep.subr.mxu1 %v4717_v7  ;;  %4897 = vmatpush1.msra.mxu0 %v4714_v44 }
 0x586   : > { %4968 = vmatpush1.msra.mxu1 %v4716_v60  ;;  %4898 = vmatprep.subr.mxu0 %v4707_v34 }
 0x587   : > { %4969 = vmatprep.subr.mxu1 %v4709_v37  ;;  %4899 = vmatpush1.msra.mxu0 %v4706_v35 }
 0x588   : > { %4970 = vmatpush1.msra.mxu1 %v4708_v15  ;;  %4900 = vmatprep.subr.mxu0 %v4699_v63 }
 0x589   : > { %4971 = vmatprep.subr.mxu1 %v4701_v48  ;;  %4901 = vmatpush1.msra.mxu0 %v4698_v47 }
 0x58a   : > { %4972 = vmatpush1.msra.mxu1 %v4700_v62  ;;  %4902 = vmatprep.subr.mxu0 %v4691_v59 }
 0x58b   : > { %4973 = vmatprep.subr.mxu1 %v4693_v53  ;;  %4903 = vmatpush1.msra.mxu0 %v4690_v51 }
 0x58c   : > { %4974 = vmatpush1.msra.mxu1 %v4692_v5  ;;  %4904 = vmatprep.subr.mxu0 %v4683_v38 }
 0x58d   : > { %4975 = vmatprep.subr.mxu1 %v4685_v49  ;;  %4905 = vmatpush1.msra.mxu0 %v4682_v12 }
 0x58e   : > { %4976 = vmatpush1.msra.mxu1 %v4684_v1  ;;  %4906 = vmatprep.subr.mxu0 %v4675_v21 }
 0x58f   : > { %4977 = vmatprep.subr.mxu1 %v4677_v46  ;;  %4907 = vmatpush1.msra.mxu0 %v4674_v13 }
 0x590   : > { %4978 = vmatpush1.msra.mxu1 %v4676_v36  ;;  %4908 = vmatprep.subr.mxu0 %v4667_v17 }
 0x591   : > { %4979 = vmatprep.subr.mxu1 %v4669_v39  ;;  %4909 = vmatpush1.msra.mxu0 %v4666_v28 }
 0x592   : > { %4980 = vmatpush1.msra.mxu1 %v4668_v32  ;;  %5918 = vmatmul.mubr.msk.f32.vlgmr.msra.gmra.mxu0 %vm3089_vm12, %v11364_v11 }
 0x593   : > { %5919 = vmatmul.mubr.msk.f32.vlgmr.msra.gmra.mxu1 %vm3089_vm12, %v11364_v11 }
 0x61e   : > { %v4802_v54 = vpop.f32.mrf.mxu0  ;;  %v4873_v30 = vpop.f32.mrf.mxu1 }
 0x61f   : > { %v4803_v29 = vadd.f32 %v4802_v54, %v4731_v58  ;;  %v4874_v19 = vadd.f32 %v4873_v30, %v4731_v58 }
 0x620   : > { %v4804_v43 = vpop.f32.mrf.mxu0  ;;  %v4875_v20 = vpop.f32.mrf.mxu1 }
 0x621   : > { %5020 = vst [vmem:[%s361_s12] sm:$0xff] %v4803_v29  ;;  %5022 = vst [vmem:[%s361_s12 + $0x10] sm:$0xff] %v4874_v19  ;;  %v4805_v57 = vadd.f32 %v4804_v43, %v4731_v58  ;;  %v4876_v50 = vadd.f32 %v4875_v20, %v4731_v58 }
 0x623   : > { %5021 = vst [vmem:[%s361_s12 + $0x8] sm:$0xff] %v4805_v57  ;;  %5023 = vst [vmem:[%s361_s12 + $0x18] sm:$0xff] %v4876_v50 }
 0x652   : > { %v4944_v2 = vpop.f32.mrf.mxu0 }
 0x653   : > { %v4945_v31 = vadd.f32 %v4944_v2, %v4731_v58  ;;  %v5015_v11 = vpop.f32.mrf.mxu1 }
 0x654   : > { %v5016_v3 = vadd.f32 %v5015_v11, %v4731_v58  ;;  %v4946_v33 = vpop.f32.mrf.mxu0 }
 0x655   : > { %5024 = vst [vmem:[%s361_s12 + $0x20] sm:$0xff] %v4945_v31  ;;  %v4947_v41 = vadd.f32 %v4946_v33, %v4731_v58  ;;  %v5017_v10 = vpop.f32.mrf.mxu1 }
 0x656   : > { %5026 = vst [vmem:[%s361_s12 + $0x30] sm:$0xff] %v5016_v3  ;;  %v5018_v22 = vadd.f32 %v5017_v10, %v4731_v58 }
 0x657   : > { %5025 = vst [vmem:[%s361_s12 + $0x28] sm:$0xff] %v4947_v41 }
 0x658   : > { %5027 = vst [vmem:[%s361_s12 + $0x38] sm:$0xff] %v5018_v22 }
 0x659   : > { %6164 = shalt.err (!%p6161_p4)
}
 0x65a   : > { %s6165_s29 = scalar_lea.hbm %s11446_s20, 1024  ;;  %s6169_s13 = scalar_lea.hbm %s11490_s7, 2048 }
 0x65b   : > { %p6166_p10 = scmp.ne.s32.totalorder %s11446_s20, %s6165_s29  ;;  %p6170_p11 = scmp.lt.s32.totalorder %s11446_s20, %s11490_s7 }
 0x65c   : > { %p6171_p2 = scmp.lt.s32.totalorder %s6169_s13, %s6165_s29 }
 0x65d   : > { %p6167_p0 = pnand %p6166_p10, %p12655_p3 }
 0x65e   : > { %p6172_p6 = por %p6171_p2, %p6170_p11 }
 0x65f   : > { %p6168_p8 = pneg %p6167_p0 }
 0x661   : > { %p6173_p12 = pnand %p6172_p6, %p6168_p8 }
 0x663   : > { %6176 = shalt.err (!%p6173_p12)
}
 0x664   : > { %5940 = dma.vmem_to_hbm [thread:$0]  (%p12655_p3), %s5044_s17, 1024, %s11446_s20, %s5029_s22  }
 0x665 PF: > { %s5055_s26 = sand.u32 1, %s6215_s24   ;;  %p12656_p9 = scmp.ne.s32.totalorder %s11756_s8, 0 }
 0x666   : > { %p12657_p13 = scmp.ge.s32.totalorder %s6227_s27, 2  ;;  %s5056_s15 = scalar_lea.sflag [#allocation4], %s5055_s26 }
 0x668   : > { %p5957_p5 = pnand %p12657_p13, %p12656_p9 }
 0x66a   : > { %p5958_p1 = pneg %p5957_p5 }
 0x66c   : > { %6210 = dma.done.wait (%p5958_p1), %s5056_s15, 1024  }
 0x66d   : > { %6212 = vsyncadd (%p5958_p1), %s5056_s15, 4294966272  ;;  %s12658_s12 = sld [smem:[#allocation16_spill]]  ;;  %p24_p7 = scmp.ge.s32.totalorder %s6360_s10, 4  }
 0x66e   : > { %s12659_s26 = sld [smem:[#allocation17_spill]]  ;;  %s12660_s24 = smov %s6219_s25 }
 0x66f   : > { %s12662_s27 = smov %s6360_s10  ;;  %26 = sbr.rel (!%p24_p7) target bundleno = 11 (0xb), region = 114 }
 0x673   : > { %s12661_s25 = smov %s12658_s12 }
 0x674   :  { %5061 = vsyncpa [#allocation3], 1 }
 0x675   :  { %5063 = vsyncpa [#allocation3 + $0x1], 1 }
 0x676   :  { %5064 = vsyncpa [#allocation6], 1 }
 0x677   :  { %5066 = vsyncpa [#allocation6 + $0x1], 1 }
 0x678   :  { %5067 = vsyncpa [#allocation9], 1 }
 0x679   :  { %5068 = vsyncpa [#allocation4], 1 }
 0x67a   :  { %5070 = vsyncpa [#allocation4 + $0x1], 1 }

</bundles_post_ra>
